<compile_context>
chip_gen: v6e
topology: v6e:2x2x1
jax: 0.10.0
libtpu: 0.0.40
codegen_flags: <defaults>
</compile_context>

<pallas_src>
import functools
import math

import jax
import jax.numpy as jnp
import numpy as np
from jax import lax
from jax.experimental import pallas as pl
from jax.experimental.pallas import tpu as pltpu


def _cll_dense_rrp_block_kernel(
    # inputs
    x_ref,          # [Tb, B, in_ch]    block of timesteps (streamed)
    eps_init_ref,   # [2, B, in_ch]     packed (eps0, eps1) initial state (resident)
    arp_init_ref,   # [B, out_ch]       initial arp state (resident)
    w_t_ref,        # [in_ch, out_ch]   pre-transposed weight (resident)
    b_ref,          # [1, out_ch]       bias (resident)
    # outputs
    y_ref,          # [Tb, B, 4*out_ch] packed per-step [output | pv | outpvmem | arp]
    eps_final_ref,  # [2, B, in_ch]     packed final (eps0, eps1)
    # scratch (recurrent state + block staging, persistent across grid steps)
    eps0_s,         # [B, in_ch]
    eps1_s,         # [B, in_ch]
    arp_s,          # [B, out_ch]
    eps1_blk,       # [Tb*B, in_ch]     eps1 for every step of the block
    pvmem_blk,      # [Tb*B, out_ch]    batched dense-layer result
    *, tb, batch, alpha, alphas, alpharp, wrp, tau_s__dt, tau_m__dt,
):
    i = pl.program_id(0)

    @pl.when(i == 0)
    def _():
        eps0_s[...] = eps_init_ref[0]
        eps1_s[...] = eps_init_ref[1]
        arp_s[...] = arp_init_ref[...]

    # ---- Phase A: eps0/eps1 trace recurrence for all Tb steps (VPU only). ----
    # Spike-independent, so it can be fully precomputed before the matmul.
    def eps_step(tl, carry):
        x_t = x_ref[tl]                                     # [B, in_ch]
        eps0 = x_t * tau_s__dt + alphas * eps0_s[...]
        eps1 = alpha * eps1_s[...] + eps0 * tau_m__dt
        eps0_s[...] = eps0
        eps1_s[...] = eps1
        eps1_blk[pl.ds(tl * batch, batch), :] = eps1
        return carry

    lax.fori_loop(0, tb, eps_step, None, unroll=True)

    # ---- Phase B: one batched MXU matmul for the whole block (+ bias, added once). ----
    pvmem_blk[...] = (
        jnp.dot(eps1_blk[...], w_t_ref[...],
                preferred_element_type=jnp.float32,
                precision=lax.Precision.HIGHEST)            # f32: F.linear semantics
        + b_ref[...]                                        # single broadcast per block
    )

    # ---- Phase C: refractory / spike recurrence (cheap [B, out_ch] serial loop). ----
    def arp_step(tl, carry):
        pvmem = pvmem_blk[pl.ds(tl * batch, batch), :]      # [B, out_ch]
        arp_d = alpharp * arp_s[...]
        outpvmem = pvmem + arp_d
        output = (outpvmem > 0.0).astype(jnp.float32)
        pv = jax.nn.sigmoid(outpvmem)
        arp_new = arp_d - output * wrp
        arp_s[...] = arp_new
        # One lane-dense (B, 4*out_ch) store per step: [output | pv | outpvmem | arp].
        y_ref[tl] = jnp.concatenate([output, pv, outpvmem, arp_new], axis=-1)
        return carry

    lax.fori_loop(0, tb, arp_step, None, unroll=True)

    @pl.when(i == pl.num_programs(0) - 1)
    def _():
        eps_final_ref[0] = eps0_s[...]
        eps_final_ref[1] = eps1_s[...]


def _pick_block_timesteps(T, B, max_rows=512):
    """Largest divisor Tb of T with Tb*B <= max_rows (falls back to Tb=1)."""
    target = max(1, max_rows // max(B, 1))
    for cand in range(min(T, target), 0, -1):
        if T % cand == 0:
            return cand
    return 1


def cll_dense_rrp_forward_seq(
    x_seq, eps0, eps1, arp, weight_t, bias,
    *, alpha=0.95, alphas=0.9, alpharp=0.65, wrp=100.0, block_timesteps=None,
):
    """Run T consecutive CLLDenseRRPModule.forward steps in one pallas_call.

    Args:
      x_seq:    [T, B, in_channels]  inputs (one per timestep), f32.
      eps0:     [B, in_channels]     initial state.eps0
      eps1:     [B, in_channels]     initial state.eps1
      arp:      [B, out_channels]    initial state.arp
      weight_t: [in_channels, out_channels]  (= PyTorch weight.T, pre-transposed)
      bias:     [out_channels]

    Returns:
      (output[T,B,out], pv[T,B,out], outpvmem[T,B,out]),
      (eps0_new[B,in], eps1_new[B,in], arp_new[B,out])
    """
    T, B, in_ch = x_seq.shape
    out_ch = weight_t.shape[1]

    tb = block_timesteps if block_timesteps is not None else _pick_block_timesteps(T, B)
    # TODO(synk): pad / pl.when-guard the tail block instead of requiring divisibility.
    assert T % tb == 0, "block_timesteps must divide T"
    n_blocks = T // tb

    # Constants rounded exactly as the PyTorch module stores them (f32 parameters).
    f32 = np.float32
    alpha32, alphas32 = f32(alpha), f32(alphas)
    alpharp32, wrp32 = f32(alpharp), f32(wrp)
    tau_s__dt = float(f32(1.0) / (f32(1.0) - alphas32))
    tau_m__dt = float(f32(1.0) / (f32(1.0) - alpha32))

    eps_init = jnp.stack([eps0, eps1], axis=0)       # [2, B, in_ch]
    b2 = bias.reshape(1, out_ch)                     # [1, out_ch]

    kernel = functools.partial(
        _cll_dense_rrp_block_kernel,
        tb=tb, batch=B,
        alpha=float(alpha32), alphas=float(alphas32),
        alpharp=float(alpharp32), wrp=float(wrp32),
        tau_s__dt=tau_s__dt, tau_m__dt=tau_m__dt,
    )

    y, eps_final = pl.pallas_call(
        kernel,
        out_shape=(
            jax.ShapeDtypeStruct((T, B, 4 * out_ch), jnp.float32),  # packed per-step
            jax.ShapeDtypeStruct((2, B, in_ch), jnp.float32),       # packed eps final
        ),
        grid_spec=pltpu.PrefetchScalarGridSpec(
            num_scalar_prefetch=0,
            grid=(n_blocks,),
            in_specs=[
                pl.BlockSpec((tb, B, in_ch), lambda i: (i, 0, 0)),   # x block streamed
                pl.BlockSpec((2, B, in_ch), lambda i: (0, 0, 0)),    # eps init (resident)
                pl.BlockSpec((B, out_ch), lambda i: (0, 0)),         # arp init (resident)
                pl.BlockSpec((in_ch, out_ch), lambda i: (0, 0)),     # W^T (resident)
                pl.BlockSpec((1, out_ch), lambda i: (0, 0)),         # bias (resident)
            ],
            out_specs=[
                pl.BlockSpec((tb, B, 4 * out_ch), lambda i: (i, 0, 0)),
                pl.BlockSpec((2, B, in_ch), lambda i: (0, 0, 0)),
            ],
            scratch_shapes=[
                pltpu.VMEM((B, in_ch), jnp.float32),        # eps0 state
                pltpu.VMEM((B, in_ch), jnp.float32),        # eps1 state
                pltpu.VMEM((B, out_ch), jnp.float32),       # arp  state
                pltpu.VMEM((tb * B, in_ch), jnp.float32),   # eps1 block staging
                pltpu.VMEM((tb * B, out_ch), jnp.float32),  # pvmem block
            ],
        ),
        compiler_params=pltpu.CompilerParams(
            dimension_semantics=("arbitrary",),              # sequential recurrence
        ),
    )(x_seq, eps_init, arp, weight_t, b2)

    output = y[:, :, 0 * out_ch:1 * out_ch]
    pv = y[:, :, 1 * out_ch:2 * out_ch]
    outpvmem = y[:, :, 2 * out_ch:3 * out_ch]
    arp_new = y[T - 1, :, 3 * out_ch:4 * out_ch]
    return (output, pv, outpvmem), (eps_final[0], eps_final[1], arp_new)


def cll_dense_rrp_forward(x, eps0, eps1, arp, weight_t, bias, **kwargs):
    """Single-step forward (module-equivalent interface); T=1 of the seq kernel."""
    (o, p, v), state = cll_dense_rrp_forward_seq(
        x[None], eps0, eps1, arp, weight_t, bias, **kwargs)
    return (o[0], p[0], v[0]), state


if __name__ == "__main__":
    T, B, IN_CH, OUT_CH = 16, 8, 64, 32
    ALPHA, ALPHAS, ALPHARP, WRP = 0.95, 0.9, 0.65, 100.0

    key = jax.random.PRNGKey(0)
    k_x, k_w, k_b = jax.random.split(key, 3)

    # Parameter init matching reset_parameters():
    #   stdv = 1/sqrt(in_channels); W ~ U(-0.01*stdv, 0.01*stdv); b ~ U(-stdv, stdv)
    stdv = 1.0 / math.sqrt(IN_CH)
    weight = jax.random.uniform(
        k_w, (OUT_CH, IN_CH), jnp.float32, minval=-stdv * 0.01, maxval=stdv * 0.01)
    bias = jax.random.uniform(
        k_b, (OUT_CH,), jnp.float32, minval=-stdv, maxval=stdv)
    weight_t = jnp.asarray(weight.T)   # hoisted transpose (store W^T in module state)

    # Spiking-style Bernoulli inputs; zero-initialized state (matches init_state()).
    x_seq = jax.random.bernoulli(k_x, 0.3, (T, B, IN_CH)).astype(jnp.float32)
    eps0 = jnp.zeros((B, IN_CH), jnp.float32)
    eps1 = jnp.zeros((B, IN_CH), jnp.float32)
    arp = jnp.zeros((B, OUT_CH), jnp.float32)

    (out_seq, pv_seq, opv_seq), (e0_f, e1_f, arp_f) = cll_dense_rrp_forward_seq(
        x_seq, eps0, eps1, arp, weight_t, bias,
        alpha=ALPHA, alphas=ALPHAS, alpharp=ALPHARP, wrp=WRP)
    jax.block_until_ready((out_seq, pv_seq, opv_seq, e0_f, e1_f, arp_f))

    # ---------------- verification vs float64 NumPy ground truth ----------------
    # The arp chain is teacher-forced on the kernel's own spikes so a knife-edge
    # (|outpvmem| ~ 0) threshold flip cannot cascade into a bogus failure; those
    # knife-edge elements are excluded from the spike comparison.
    f32 = np.float32
    a32 = float(f32(ALPHA)); as32 = float(f32(ALPHAS))
    arp32 = float(f32(ALPHARP)); wrp32 = float(f32(WRP))
    tau_s = float(f32(1.0) / (f32(1.0) - f32(ALPHAS)))
    tau_m = float(f32(1.0) / (f32(1.0) - f32(ALPHA)))

    x64 = np.asarray(x_seq, np.float64)
    w64 = np.asarray(weight_t, np.float64)
    b64 = np.asarray(bias, np.float64)
    out_np = np.asarray(out_seq)
    pv_np = np.asarray(pv_seq)
    opv_np = np.asarray(opv_seq)

    e0 = np.zeros((B, IN_CH), np.float64)
    e1 = np.zeros((B, IN_CH), np.float64)
    a = np.zeros((B, OUT_CH), np.float64)
    for t in range(T):
        e0 = x64[t] * tau_s + as32 * e0
        e1 = a32 * e1 + e0 * tau_m
        pvmem = e1 @ w64 + b64
        arp_d = arp32 * a
        opv_ref = pvmem + arp_d
        pv_ref = 0.5 * (1.0 + np.tanh(0.5 * opv_ref))          # stable sigmoid
        assert np.allclose(opv_np[t], opv_ref, atol=2e-2, rtol=2e-3), \
            f"outpvmem mismatch at t={t}"
        assert np.allclose(pv_np[t], pv_ref, atol=1e-2, rtol=2e-3), \
            f"pv mismatch at t={t}"
        spike_ref = (opv_ref > 0).astype(np.float64)
        safe = np.abs(opv_ref) > 5e-2                          # skip knife-edge elements
        assert np.array_equal(out_np[t][safe], spike_ref[safe]), \
            f"spike mismatch at t={t}"
        # Teacher-force the refractory chain on the kernel's spikes.
        a = arp_d - out_np[t].astype(np.float64) * wrp32

    assert np.allclose(np.asarray(e0_f), e0, atol=1e-2, rtol=1e-3), "eps0 final mismatch"
    assert np.allclose(np.asarray(e1_f), e1, atol=1e-2, rtol=1e-3), "eps1 final mismatch"
    assert np.allclose(np.asarray(arp_f), a, atol=1e-2, rtol=1e-3), "arp final mismatch"

    # Single-step wrapper smoke test (module-equivalent interface).
    (o1, p1, v1), (e01, e11, a1) = cll_dense_rrp_forward(
        x_seq[0], eps0, eps1, arp, weight_t, bias,
        alpha=ALPHA, alphas=ALPHAS, alpharp=ALPHARP, wrp=WRP)
    jax.block_until_ready((o1, p1, v1, e01, e11, a1))
    assert np.allclose(np.asarray(v1), opv_np[0], atol=2e-2, rtol=2e-3), \
        "single-step mismatch"

    print("KERNEL_OK")
</pallas_src>

<mosaic_0001>
module attributes {stable_mosaic.version = 11 : i64} {
  func.func @_cll_dense_rrp_block_kernel(%arg0: i32, %arg1: memref<16x8x64xf32, #tpu.memory_space<vmem>>, %arg2: memref<2x8x64xf32, #tpu.memory_space<vmem>>, %arg3: memref<8x32xf32, #tpu.memory_space<vmem>>, %arg4: memref<64x32xf32, #tpu.memory_space<vmem>>, %arg5: memref<1x32xf32, #tpu.memory_space<vmem>>, %arg6: memref<16x8x128xf32, #tpu.memory_space<vmem>>, %arg7: memref<2x8x64xf32, #tpu.memory_space<vmem>>, %arg8: memref<8x64xf32, #tpu.memory_space<vmem>>, %arg9: memref<8x64xf32, #tpu.memory_space<vmem>>, %arg10: memref<8x32xf32, #tpu.memory_space<vmem>>, %arg11: memref<128x64xf32, #tpu.memory_space<vmem>>, %arg12: memref<128x32xf32, #tpu.memory_space<vmem>>) attributes {dimension_semantics = [#tpu.dimension_semantics<arbitrary>], iteration_bounds = array<i64: 1>, scalar_prefetch = 0 : i64, scratch_operands = 5 : i64, tpu.core_type = #tpu.core_type<tc>, window_params = [{transform_indices = @transform_0, window_bounds = array<i64: 16, 8, 64>}, {pipeline_mode = #tpu.pipeline_mode<synchronous>, transform_indices = @transform_1, window_bounds = array<i64: 2, 8, 64>}, {pipeline_mode = #tpu.pipeline_mode<synchronous>, transform_indices = @transform_2, window_bounds = array<i64: 8, 32>}, {pipeline_mode = #tpu.pipeline_mode<synchronous>, transform_indices = @transform_3, window_bounds = array<i64: 64, 32>}, {pipeline_mode = #tpu.pipeline_mode<synchronous>, transform_indices = @transform_4, window_bounds = array<i64: 1, 32>}, {transform_indices = @transform_5, window_bounds = array<i64: 16, 8, 128>}, {pipeline_mode = #tpu.pipeline_mode<synchronous>, transform_indices = @transform_6, window_bounds = array<i64: 2, 8, 64>}]} {
    %c0_i32 = arith.constant 0 : i32
    %0 = arith.cmpi eq, %arg0, %c0_i32 : i32
    %1 = arith.extui %0 : i1 to i32
    %c0_i32_0 = arith.constant 0 : i32
    %2 = arith.cmpi ne, %1, %c0_i32_0 : i32
    scf.if %2 {
      %c0_476 = arith.constant 0 : index
      %c0_477 = arith.constant 0 : index
      %c0_478 = arith.constant 0 : index
      %733 = vector.load %arg2[%c0_476, %c0_477, %c0_478] : memref<2x8x64xf32, #tpu.memory_space<vmem>>, vector<1x8x64xf32>
      %734 = vector.shape_cast %733 : vector<1x8x64xf32> to vector<8x64xf32>
      %c0_479 = arith.constant 0 : index
      %c0_480 = arith.constant 0 : index
      %735 = vector.load %arg8[%c0_479, %c0_480] : memref<8x64xf32, #tpu.memory_space<vmem>>, vector<8x64xf32>
      tpu.vector_store %arg8[%c0_479, %c0_480], %734 {strides = array<i32>} : memref<8x64xf32, #tpu.memory_space<vmem>>, vector<8x64xf32>,
      %c1 = arith.constant 1 : index
      %c0_481 = arith.constant 0 : index
      %c0_482 = arith.constant 0 : index
      %736 = vector.load %arg2[%c1, %c0_481, %c0_482] : memref<2x8x64xf32, #tpu.memory_space<vmem>>, vector<1x8x64xf32>
      %737 = vector.shape_cast %736 : vector<1x8x64xf32> to vector<8x64xf32>
      %c0_483 = arith.constant 0 : index
      %c0_484 = arith.constant 0 : index
      %738 = vector.load %arg9[%c0_483, %c0_484] : memref<8x64xf32, #tpu.memory_space<vmem>>, vector<8x64xf32>
      tpu.vector_store %arg9[%c0_483, %c0_484], %737 {strides = array<i32>} : memref<8x64xf32, #tpu.memory_space<vmem>>, vector<8x64xf32>,
      %c0_485 = arith.constant 0 : index
      %c0_486 = arith.constant 0 : index
      %739 = vector.load %arg3[%c0_485, %c0_486] : memref<8x32xf32, #tpu.memory_space<vmem>>, vector<8x32xf32>
      %c0_487 = arith.constant 0 : index
      %c0_488 = arith.constant 0 : index
      %740 = vector.load %arg10[%c0_487, %c0_488] : memref<8x32xf32, #tpu.memory_space<vmem>>, vector<8x32xf32>
      tpu.vector_store %arg10[%c0_487, %c0_488], %739 {strides = array<i32>} : memref<8x32xf32, #tpu.memory_space<vmem>>, vector<8x32xf32>,
    } else {
    }
    %c0_i32_1 = arith.constant 0 : i32
    %3 = arith.index_cast %c0_i32_1 : i32 to index
    %c0 = arith.constant 0 : index
    %c0_2 = arith.constant 0 : index
    %4 = vector.load %arg1[%3, %c0, %c0_2] : memref<16x8x64xf32, #tpu.memory_space<vmem>>, vector<1x8x64xf32>
    %5 = vector.shape_cast %4 : vector<1x8x64xf32> to vector<8x64xf32>
    %cst = arith.constant 9.99999809 : f32
    %6 = vector.broadcast %cst : f32 to vector<8x64xf32>
    %7 = arith.mulf %5, %6 : vector<8x64xf32>
    %c0_3 = arith.constant 0 : index
    %c0_4 = arith.constant 0 : index
    %8 = vector.load %arg8[%c0_3, %c0_4] : memref<8x64xf32, #tpu.memory_space<vmem>>, vector<8x64xf32>
    %cst_5 = arith.constant 0.899999976 : f32
    %9 = vector.broadcast %cst_5 : f32 to vector<8x64xf32>
    %10 = arith.mulf %9, %8 : vector<8x64xf32>
    %11 = arith.addf %7, %10 : vector<8x64xf32>
    %c0_6 = arith.constant 0 : index
    %c0_7 = arith.constant 0 : index
    %12 = vector.load %arg9[%c0_6, %c0_7] : memref<8x64xf32, #tpu.memory_space<vmem>>, vector<8x64xf32>
    %cst_8 = arith.constant 0.949999988 : f32
    %13 = vector.broadcast %cst_8 : f32 to vector<8x64xf32>
    %14 = arith.mulf %13, %12 : vector<8x64xf32>
    %cst_9 = arith.constant 19.9999962 : f32
    %15 = vector.broadcast %cst_9 : f32 to vector<8x64xf32>
    %16 = arith.mulf %11, %15 : vector<8x64xf32>
    %17 = arith.addf %14, %16 : vector<8x64xf32>
    %c0_10 = arith.constant 0 : index
    %c0_11 = arith.constant 0 : index
    %18 = vector.load %arg8[%c0_10, %c0_11] : memref<8x64xf32, #tpu.memory_space<vmem>>, vector<8x64xf32>
    tpu.vector_store %arg8[%c0_10, %c0_11], %11 {strides = array<i32>} : memref<8x64xf32, #tpu.memory_space<vmem>>, vector<8x64xf32>,
    %c0_12 = arith.constant 0 : index
    %c0_13 = arith.constant 0 : index
    %19 = vector.load %arg9[%c0_12, %c0_13] : memref<8x64xf32, #tpu.memory_space<vmem>>, vector<8x64xf32>
    tpu.vector_store %arg9[%c0_12, %c0_13], %17 {strides = array<i32>} : memref<8x64xf32, #tpu.memory_space<vmem>>, vector<8x64xf32>,
    %c8_i32 = arith.constant 8 : i32
    %20 = arith.muli %c0_i32_1, %c8_i32 : i32
    %21 = arith.index_cast %20 : i32 to index
    %c0_14 = arith.constant 0 : index
    %22 = vector.load %arg11[%21, %c0_14] : memref<128x64xf32, #tpu.memory_space<vmem>>, vector<8x64xf32>
    tpu.vector_store %arg11[%21, %c0_14], %17 {strides = array<i32>} : memref<128x64xf32, #tpu.memory_space<vmem>>, vector<8x64xf32>,
    %c1_i32 = arith.constant 1 : i32
    %23 = arith.index_cast %c1_i32 : i32 to index
    %c0_15 = arith.constant 0 : index
    %c0_16 = arith.constant 0 : index
    %24 = vector.load %arg1[%23, %c0_15, %c0_16] : memref<16x8x64xf32, #tpu.memory_space<vmem>>, vector<1x8x64xf32>
    %25 = vector.shape_cast %24 : vector<1x8x64xf32> to vector<8x64xf32>
    %cst_17 = arith.constant 9.99999809 : f32
    %26 = vector.broadcast %cst_17 : f32 to vector<8x64xf32>
    %27 = arith.mulf %25, %26 : vector<8x64xf32>
    %c0_18 = arith.constant 0 : index
    %c0_19 = arith.constant 0 : index
    %28 = vector.load %arg8[%c0_18, %c0_19] : memref<8x64xf32, #tpu.memory_space<vmem>>, vector<8x64xf32>
    %cst_20 = arith.constant 0.899999976 : f32
    %29 = vector.broadcast %cst_20 : f32 to vector<8x64xf32>
    %30 = arith.mulf %29, %28 : vector<8x64xf32>
    %31 = arith.addf %27, %30 : vector<8x64xf32>
    %c0_21 = arith.constant 0 : index
    %c0_22 = arith.constant 0 : index
    %32 = vector.load %arg9[%c0_21, %c0_22] : memref<8x64xf32, #tpu.memory_space<vmem>>, vector<8x64xf32>
    %cst_23 = arith.constant 0.949999988 : f32
    %33 = vector.broadcast %cst_23 : f32 to vector<8x64xf32>
    %34 = arith.mulf %33, %32 : vector<8x64xf32>
    %cst_24 = arith.constant 19.9999962 : f32
    %35 = vector.broadcast %cst_24 : f32 to vector<8x64xf32>
    %36 = arith.mulf %31, %35 : vector<8x64xf32>
    %37 = arith.addf %34, %36 : vector<8x64xf32>
    %c0_25 = arith.constant 0 : index
    %c0_26 = arith.constant 0 : index
    %38 = vector.load %arg8[%c0_25, %c0_26] : memref<8x64xf32, #tpu.memory_space<vmem>>, vector<8x64xf32>
    tpu.vector_store %arg8[%c0_25, %c0_26], %31 {strides = array<i32>} : memref<8x64xf32, #tpu.memory_space<vmem>>, vector<8x64xf32>,
    %c0_27 = arith.constant 0 : index
    %c0_28 = arith.constant 0 : index
    %39 = vector.load %arg9[%c0_27, %c0_28] : memref<8x64xf32, #tpu.memory_space<vmem>>, vector<8x64xf32>
    tpu.vector_store %arg9[%c0_27, %c0_28], %37 {strides = array<i32>} : memref<8x64xf32, #tpu.memory_space<vmem>>, vector<8x64xf32>,
    %c8_i32_29 = arith.constant 8 : i32
    %40 = arith.muli %c1_i32, %c8_i32_29 : i32
    %41 = arith.index_cast %40 : i32 to index
    %c0_30 = arith.constant 0 : index
    %42 = vector.load %arg11[%41, %c0_30] : memref<128x64xf32, #tpu.memory_space<vmem>>, vector<8x64xf32>
    tpu.vector_store %arg11[%41, %c0_30], %37 {strides = array<i32>} : memref<128x64xf32, #tpu.memory_space<vmem>>, vector<8x64xf32>,
    %c2_i32 = arith.constant 2 : i32
    %43 = arith.index_cast %c2_i32 : i32 to index
    %c0_31 = arith.constant 0 : index
    %c0_32 = arith.constant 0 : index
    %44 = vector.load %arg1[%43, %c0_31, %c0_32] : memref<16x8x64xf32, #tpu.memory_space<vmem>>, vector<1x8x64xf32>
    %45 = vector.shape_cast %44 : vector<1x8x64xf32> to vector<8x64xf32>
    %cst_33 = arith.constant 9.99999809 : f32
    %46 = vector.broadcast %cst_33 : f32 to vector<8x64xf32>
    %47 = arith.mulf %45, %46 : vector<8x64xf32>
    %c0_34 = arith.constant 0 : index
    %c0_35 = arith.constant 0 : index
    %48 = vector.load %arg8[%c0_34, %c0_35] : memref<8x64xf32, #tpu.memory_space<vmem>>, vector<8x64xf32>
    %cst_36 = arith.constant 0.899999976 : f32
    %49 = vector.broadcast %cst_36 : f32 to vector<8x64xf32>
    %50 = arith.mulf %49, %48 : vector<8x64xf32>
    %51 = arith.addf %47, %50 : vector<8x64xf32>
    %c0_37 = arith.constant 0 : index
    %c0_38 = arith.constant 0 : index
    %52 = vector.load %arg9[%c0_37, %c0_38] : memref<8x64xf32, #tpu.memory_space<vmem>>, vector<8x64xf32>
    %cst_39 = arith.constant 0.949999988 : f32
    %53 = vector.broadcast %cst_39 : f32 to vector<8x64xf32>
    %54 = arith.mulf %53, %52 : vector<8x64xf32>
    %cst_40 = arith.constant 19.9999962 : f32
    %55 = vector.broadcast %cst_40 : f32 to vector<8x64xf32>
    %56 = arith.mulf %51, %55 : vector<8x64xf32>
    %57 = arith.addf %54, %56 : vector<8x64xf32>
    %c0_41 = arith.constant 0 : index
    %c0_42 = arith.constant 0 : index
    %58 = vector.load %arg8[%c0_41, %c0_42] : memref<8x64xf32, #tpu.memory_space<vmem>>, vector<8x64xf32>
    tpu.vector_store %arg8[%c0_41, %c0_42], %51 {strides = array<i32>} : memref<8x64xf32, #tpu.memory_space<vmem>>, vector<8x64xf32>,
    %c0_43 = arith.constant 0 : index
    %c0_44 = arith.constant 0 : index
    %59 = vector.load %arg9[%c0_43, %c0_44] : memref<8x64xf32, #tpu.memory_space<vmem>>, vector<8x64xf32>
    tpu.vector_store %arg9[%c0_43, %c0_44], %57 {strides = array<i32>} : memref<8x64xf32, #tpu.memory_space<vmem>>, vector<8x64xf32>,
    %c8_i32_45 = arith.constant 8 : i32
    %60 = arith.muli %c2_i32, %c8_i32_45 : i32
    %61 = arith.index_cast %60 : i32 to index
    %c0_46 = arith.constant 0 : index
    %62 = vector.load %arg11[%61, %c0_46] : memref<128x64xf32, #tpu.memory_space<vmem>>, vector<8x64xf32>
    tpu.vector_store %arg11[%61, %c0_46], %57 {strides = array<i32>} : memref<128x64xf32, #tpu.memory_space<vmem>>, vector<8x64xf32>,
    %c3_i32 = arith.constant 3 : i32
    %63 = arith.index_cast %c3_i32 : i32 to index
    %c0_47 = arith.constant 0 : index
    %c0_48 = arith.constant 0 : index
    %64 = vector.load %arg1[%63, %c0_47, %c0_48] : memref<16x8x64xf32, #tpu.memory_space<vmem>>, vector<1x8x64xf32>
    %65 = vector.shape_cast %64 : vector<1x8x64xf32> to vector<8x64xf32>
    %cst_49 = arith.constant 9.99999809 : f32
    %66 = vector.broadcast %cst_49 : f32 to vector<8x64xf32>
    %67 = arith.mulf %65, %66 : vector<8x64xf32>
    %c0_50 = arith.constant 0 : index
    %c0_51 = arith.constant 0 : index
    %68 = vector.load %arg8[%c0_50, %c0_51] : memref<8x64xf32, #tpu.memory_space<vmem>>, vector<8x64xf32>
    %cst_52 = arith.constant 0.899999976 : f32
    %69 = vector.broadcast %cst_52 : f32 to vector<8x64xf32>
    %70 = arith.mulf %69, %68 : vector<8x64xf32>
    %71 = arith.addf %67, %70 : vector<8x64xf32>
    %c0_53 = arith.constant 0 : index
    %c0_54 = arith.constant 0 : index
    %72 = vector.load %arg9[%c0_53, %c0_54] : memref<8x64xf32, #tpu.memory_space<vmem>>, vector<8x64xf32>
    %cst_55 = arith.constant 0.949999988 : f32
    %73 = vector.broadcast %cst_55 : f32 to vector<8x64xf32>
    %74 = arith.mulf %73, %72 : vector<8x64xf32>
    %cst_56 = arith.constant 19.9999962 : f32
    %75 = vector.broadcast %cst_56 : f32 to vector<8x64xf32>
    %76 = arith.mulf %71, %75 : vector<8x64xf32>
    %77 = arith.addf %74, %76 : vector<8x64xf32>
    %c0_57 = arith.constant 0 : index
    %c0_58 = arith.constant 0 : index
    %78 = vector.load %arg8[%c0_57, %c0_58] : memref<8x64xf32, #tpu.memory_space<vmem>>, vector<8x64xf32>
    tpu.vector_store %arg8[%c0_57, %c0_58], %71 {strides = array<i32>} : memref<8x64xf32, #tpu.memory_space<vmem>>, vector<8x64xf32>,
    %c0_59 = arith.constant 0 : index
    %c0_60 = arith.constant 0 : index
    %79 = vector.load %arg9[%c0_59, %c0_60] : memref<8x64xf32, #tpu.memory_space<vmem>>, vector<8x64xf32>
    tpu.vector_store %arg9[%c0_59, %c0_60], %77 {strides = array<i32>} : memref<8x64xf32, #tpu.memory_space<vmem>>, vector<8x64xf32>,
    %c8_i32_61 = arith.constant 8 : i32
    %80 = arith.muli %c3_i32, %c8_i32_61 : i32
    %81 = arith.index_cast %80 : i32 to index
    %c0_62 = arith.constant 0 : index
    %82 = vector.load %arg11[%81, %c0_62] : memref<128x64xf32, #tpu.memory_space<vmem>>, vector<8x64xf32>
    tpu.vector_store %arg11[%81, %c0_62], %77 {strides = array<i32>} : memref<128x64xf32, #tpu.memory_space<vmem>>, vector<8x64xf32>,
    %c4_i32 = arith.constant 4 : i32
    %83 = arith.index_cast %c4_i32 : i32 to index
    %c0_63 = arith.constant 0 : index
    %c0_64 = arith.constant 0 : index
    %84 = vector.load %arg1[%83, %c0_63, %c0_64] : memref<16x8x64xf32, #tpu.memory_space<vmem>>, vector<1x8x64xf32>
    %85 = vector.shape_cast %84 : vector<1x8x64xf32> to vector<8x64xf32>
    %cst_65 = arith.constant 9.99999809 : f32
    %86 = vector.broadcast %cst_65 : f32 to vector<8x64xf32>
    %87 = arith.mulf %85, %86 : vector<8x64xf32>
    %c0_66 = arith.constant 0 : index
    %c0_67 = arith.constant 0 : index
    %88 = vector.load %arg8[%c0_66, %c0_67] : memref<8x64xf32, #tpu.memory_space<vmem>>, vector<8x64xf32>
    %cst_68 = arith.constant 0.899999976 : f32
    %89 = vector.broadcast %cst_68 : f32 to vector<8x64xf32>
    %90 = arith.mulf %89, %88 : vector<8x64xf32>
    %91 = arith.addf %87, %90 : vector<8x64xf32>
    %c0_69 = arith.constant 0 : index
    %c0_70 = arith.constant 0 : index
    %92 = vector.load %arg9[%c0_69, %c0_70] : memref<8x64xf32, #tpu.memory_space<vmem>>, vector<8x64xf32>
    %cst_71 = arith.constant 0.949999988 : f32
    %93 = vector.broadcast %cst_71 : f32 to vector<8x64xf32>
    %94 = arith.mulf %93, %92 : vector<8x64xf32>
    %cst_72 = arith.constant 19.9999962 : f32
    %95 = vector.broadcast %cst_72 : f32 to vector<8x64xf32>
    %96 = arith.mulf %91, %95 : vector<8x64xf32>
    %97 = arith.addf %94, %96 : vector<8x64xf32>
    %c0_73 = arith.constant 0 : index
    %c0_74 = arith.constant 0 : index
    %98 = vector.load %arg8[%c0_73, %c0_74] : memref<8x64xf32, #tpu.memory_space<vmem>>, vector<8x64xf32>
    tpu.vector_store %arg8[%c0_73, %c0_74], %91 {strides = array<i32>} : memref<8x64xf32, #tpu.memory_space<vmem>>, vector<8x64xf32>,
    %c0_75 = arith.constant 0 : index
    %c0_76 = arith.constant 0 : index
    %99 = vector.load %arg9[%c0_75, %c0_76] : memref<8x64xf32, #tpu.memory_space<vmem>>, vector<8x64xf32>
    tpu.vector_store %arg9[%c0_75, %c0_76], %97 {strides = array<i32>} : memref<8x64xf32, #tpu.memory_space<vmem>>, vector<8x64xf32>,
    %c8_i32_77 = arith.constant 8 : i32
    %100 = arith.muli %c4_i32, %c8_i32_77 : i32
    %101 = arith.index_cast %100 : i32 to index
    %c0_78 = arith.constant 0 : index
    %102 = vector.load %arg11[%101, %c0_78] : memref<128x64xf32, #tpu.memory_space<vmem>>, vector<8x64xf32>
    tpu.vector_store %arg11[%101, %c0_78], %97 {strides = array<i32>} : memref<128x64xf32, #tpu.memory_space<vmem>>, vector<8x64xf32>,
    %c5_i32 = arith.constant 5 : i32
    %103 = arith.index_cast %c5_i32 : i32 to index
    %c0_79 = arith.constant 0 : index
    %c0_80 = arith.constant 0 : index
    %104 = vector.load %arg1[%103, %c0_79, %c0_80] : memref<16x8x64xf32, #tpu.memory_space<vmem>>, vector<1x8x64xf32>
    %105 = vector.shape_cast %104 : vector<1x8x64xf32> to vector<8x64xf32>
    %cst_81 = arith.constant 9.99999809 : f32
    %106 = vector.broadcast %cst_81 : f32 to vector<8x64xf32>
    %107 = arith.mulf %105, %106 : vector<8x64xf32>
    %c0_82 = arith.constant 0 : index
    %c0_83 = arith.constant 0 : index
    %108 = vector.load %arg8[%c0_82, %c0_83] : memref<8x64xf32, #tpu.memory_space<vmem>>, vector<8x64xf32>
    %cst_84 = arith.constant 0.899999976 : f32
    %109 = vector.broadcast %cst_84 : f32 to vector<8x64xf32>
    %110 = arith.mulf %109, %108 : vector<8x64xf32>
    %111 = arith.addf %107, %110 : vector<8x64xf32>
    %c0_85 = arith.constant 0 : index
    %c0_86 = arith.constant 0 : index
    %112 = vector.load %arg9[%c0_85, %c0_86] : memref<8x64xf32, #tpu.memory_space<vmem>>, vector<8x64xf32>
    %cst_87 = arith.constant 0.949999988 : f32
    %113 = vector.broadcast %cst_87 : f32 to vector<8x64xf32>
    %114 = arith.mulf %113, %112 : vector<8x64xf32>
    %cst_88 = arith.constant 19.9999962 : f32
    %115 = vector.broadcast %cst_88 : f32 to vector<8x64xf32>
    %116 = arith.mulf %111, %115 : vector<8x64xf32>
    %117 = arith.addf %114, %116 : vector<8x64xf32>
    %c0_89 = arith.constant 0 : index
    %c0_90 = arith.constant 0 : index
    %118 = vector.load %arg8[%c0_89, %c0_90] : memref<8x64xf32, #tpu.memory_space<vmem>>, vector<8x64xf32>
    tpu.vector_store %arg8[%c0_89, %c0_90], %111 {strides = array<i32>} : memref<8x64xf32, #tpu.memory_space<vmem>>, vector<8x64xf32>,
    %c0_91 = arith.constant 0 : index
    %c0_92 = arith.constant 0 : index
    %119 = vector.load %arg9[%c0_91, %c0_92] : memref<8x64xf32, #tpu.memory_space<vmem>>, vector<8x64xf32>
    tpu.vector_store %arg9[%c0_91, %c0_92], %117 {strides = array<i32>} : memref<8x64xf32, #tpu.memory_space<vmem>>, vector<8x64xf32>,
    %c8_i32_93 = arith.constant 8 : i32
    %120 = arith.muli %c5_i32, %c8_i32_93 : i32
    %121 = arith.index_cast %120 : i32 to index
    %c0_94 = arith.constant 0 : index
    %122 = vector.load %arg11[%121, %c0_94] : memref<128x64xf32, #tpu.memory_space<vmem>>, vector<8x64xf32>
    tpu.vector_store %arg11[%121, %c0_94], %117 {strides = array<i32>} : memref<128x64xf32, #tpu.memory_space<vmem>>, vector<8x64xf32>,
    %c6_i32 = arith.constant 6 : i32
    %123 = arith.index_cast %c6_i32 : i32 to index
    %c0_95 = arith.constant 0 : index
    %c0_96 = arith.constant 0 : index
    %124 = vector.load %arg1[%123, %c0_95, %c0_96] : memref<16x8x64xf32, #tpu.memory_space<vmem>>, vector<1x8x64xf32>
    %125 = vector.shape_cast %124 : vector<1x8x64xf32> to vector<8x64xf32>
    %cst_97 = arith.constant 9.99999809 : f32
    %126 = vector.broadcast %cst_97 : f32 to vector<8x64xf32>
    %127 = arith.mulf %125, %126 : vector<8x64xf32>
    %c0_98 = arith.constant 0 : index
    %c0_99 = arith.constant 0 : index
    %128 = vector.load %arg8[%c0_98, %c0_99] : memref<8x64xf32, #tpu.memory_space<vmem>>, vector<8x64xf32>
    %cst_100 = arith.constant 0.899999976 : f32
    %129 = vector.broadcast %cst_100 : f32 to vector<8x64xf32>
    %130 = arith.mulf %129, %128 : vector<8x64xf32>
    %131 = arith.addf %127, %130 : vector<8x64xf32>
    %c0_101 = arith.constant 0 : index
    %c0_102 = arith.constant 0 : index
    %132 = vector.load %arg9[%c0_101, %c0_102] : memref<8x64xf32, #tpu.memory_space<vmem>>, vector<8x64xf32>
    %cst_103 = arith.constant 0.949999988 : f32
    %133 = vector.broadcast %cst_103 : f32 to vector<8x64xf32>
    %134 = arith.mulf %133, %132 : vector<8x64xf32>
    %cst_104 = arith.constant 19.9999962 : f32
    %135 = vector.broadcast %cst_104 : f32 to vector<8x64xf32>
    %136 = arith.mulf %131, %135 : vector<8x64xf32>
    %137 = arith.addf %134, %136 : vector<8x64xf32>
    %c0_105 = arith.constant 0 : index
    %c0_106 = arith.constant 0 : index
    %138 = vector.load %arg8[%c0_105, %c0_106] : memref<8x64xf32, #tpu.memory_space<vmem>>, vector<8x64xf32>
    tpu.vector_store %arg8[%c0_105, %c0_106], %131 {strides = array<i32>} : memref<8x64xf32, #tpu.memory_space<vmem>>, vector<8x64xf32>,
    %c0_107 = arith.constant 0 : index
    %c0_108 = arith.constant 0 : index
    %139 = vector.load %arg9[%c0_107, %c0_108] : memref<8x64xf32, #tpu.memory_space<vmem>>, vector<8x64xf32>
    tpu.vector_store %arg9[%c0_107, %c0_108], %137 {strides = array<i32>} : memref<8x64xf32, #tpu.memory_space<vmem>>, vector<8x64xf32>,
    %c8_i32_109 = arith.constant 8 : i32
    %140 = arith.muli %c6_i32, %c8_i32_109 : i32
    %141 = arith.index_cast %140 : i32 to index
    %c0_110 = arith.constant 0 : index
    %142 = vector.load %arg11[%141, %c0_110] : memref<128x64xf32, #tpu.memory_space<vmem>>, vector<8x64xf32>
    tpu.vector_store %arg11[%141, %c0_110], %137 {strides = array<i32>} : memref<128x64xf32, #tpu.memory_space<vmem>>, vector<8x64xf32>,
    %c7_i32 = arith.constant 7 : i32
    %143 = arith.index_cast %c7_i32 : i32 to index
    %c0_111 = arith.constant 0 : index
    %c0_112 = arith.constant 0 : index
    %144 = vector.load %arg1[%143, %c0_111, %c0_112] : memref<16x8x64xf32, #tpu.memory_space<vmem>>, vector<1x8x64xf32>
    %145 = vector.shape_cast %144 : vector<1x8x64xf32> to vector<8x64xf32>
    %cst_113 = arith.constant 9.99999809 : f32
    %146 = vector.broadcast %cst_113 : f32 to vector<8x64xf32>
    %147 = arith.mulf %145, %146 : vector<8x64xf32>
    %c0_114 = arith.constant 0 : index
    %c0_115 = arith.constant 0 : index
    %148 = vector.load %arg8[%c0_114, %c0_115] : memref<8x64xf32, #tpu.memory_space<vmem>>, vector<8x64xf32>
    %cst_116 = arith.constant 0.899999976 : f32
    %149 = vector.broadcast %cst_116 : f32 to vector<8x64xf32>
    %150 = arith.mulf %149, %148 : vector<8x64xf32>
    %151 = arith.addf %147, %150 : vector<8x64xf32>
    %c0_117 = arith.constant 0 : index
    %c0_118 = arith.constant 0 : index
    %152 = vector.load %arg9[%c0_117, %c0_118] : memref<8x64xf32, #tpu.memory_space<vmem>>, vector<8x64xf32>
    %cst_119 = arith.constant 0.949999988 : f32
    %153 = vector.broadcast %cst_119 : f32 to vector<8x64xf32>
    %154 = arith.mulf %153, %152 : vector<8x64xf32>
    %cst_120 = arith.constant 19.9999962 : f32
    %155 = vector.broadcast %cst_120 : f32 to vector<8x64xf32>
    %156 = arith.mulf %151, %155 : vector<8x64xf32>
    %157 = arith.addf %154, %156 : vector<8x64xf32>
    %c0_121 = arith.constant 0 : index
    %c0_122 = arith.constant 0 : index
    %158 = vector.load %arg8[%c0_121, %c0_122] : memref<8x64xf32, #tpu.memory_space<vmem>>, vector<8x64xf32>
    tpu.vector_store %arg8[%c0_121, %c0_122], %151 {strides = array<i32>} : memref<8x64xf32, #tpu.memory_space<vmem>>, vector<8x64xf32>,
    %c0_123 = arith.constant 0 : index
    %c0_124 = arith.constant 0 : index
    %159 = vector.load %arg9[%c0_123, %c0_124] : memref<8x64xf32, #tpu.memory_space<vmem>>, vector<8x64xf32>
    tpu.vector_store %arg9[%c0_123, %c0_124], %157 {strides = array<i32>} : memref<8x64xf32, #tpu.memory_space<vmem>>, vector<8x64xf32>,
    %c8_i32_125 = arith.constant 8 : i32
    %160 = arith.muli %c7_i32, %c8_i32_125 : i32
    %161 = arith.index_cast %160 : i32 to index
    %c0_126 = arith.constant 0 : index
    %162 = vector.load %arg11[%161, %c0_126] : memref<128x64xf32, #tpu.memory_space<vmem>>, vector<8x64xf32>
    tpu.vector_store %arg11[%161, %c0_126], %157 {strides = array<i32>} : memref<128x64xf32, #tpu.memory_space<vmem>>, vector<8x64xf32>,
    %c8_i32_127 = arith.constant 8 : i32
    %163 = arith.index_cast %c8_i32_127 : i32 to index
    %c0_128 = arith.constant 0 : index
    %c0_129 = arith.constant 0 : index
    %164 = vector.load %arg1[%163, %c0_128, %c0_129] : memref<16x8x64xf32, #tpu.memory_space<vmem>>, vector<1x8x64xf32>
    %165 = vector.shape_cast %164 : vector<1x8x64xf32> to vector<8x64xf32>
    %cst_130 = arith.constant 9.99999809 : f32
    %166 = vector.broadcast %cst_130 : f32 to vector<8x64xf32>
    %167 = arith.mulf %165, %166 : vector<8x64xf32>
    %c0_131 = arith.constant 0 : index
    %c0_132 = arith.constant 0 : index
    %168 = vector.load %arg8[%c0_131, %c0_132] : memref<8x64xf32, #tpu.memory_space<vmem>>, vector<8x64xf32>
    %cst_133 = arith.constant 0.899999976 : f32
    %169 = vector.broadcast %cst_133 : f32 to vector<8x64xf32>
    %170 = arith.mulf %169, %168 : vector<8x64xf32>
    %171 = arith.addf %167, %170 : vector<8x64xf32>
    %c0_134 = arith.constant 0 : index
    %c0_135 = arith.constant 0 : index
    %172 = vector.load %arg9[%c0_134, %c0_135] : memref<8x64xf32, #tpu.memory_space<vmem>>, vector<8x64xf32>
    %cst_136 = arith.constant 0.949999988 : f32
    %173 = vector.broadcast %cst_136 : f32 to vector<8x64xf32>
    %174 = arith.mulf %173, %172 : vector<8x64xf32>
    %cst_137 = arith.constant 19.9999962 : f32
    %175 = vector.broadcast %cst_137 : f32 to vector<8x64xf32>
    %176 = arith.mulf %171, %175 : vector<8x64xf32>
    %177 = arith.addf %174, %176 : vector<8x64xf32>
    %c0_138 = arith.constant 0 : index
    %c0_139 = arith.constant 0 : index
    %178 = vector.load %arg8[%c0_138, %c0_139] : memref<8x64xf32, #tpu.memory_space<vmem>>, vector<8x64xf32>
    tpu.vector_store %arg8[%c0_138, %c0_139], %171 {strides = array<i32>} : memref<8x64xf32, #tpu.memory_space<vmem>>, vector<8x64xf32>,
    %c0_140 = arith.constant 0 : index
    %c0_141 = arith.constant 0 : index
    %179 = vector.load %arg9[%c0_140, %c0_141] : memref<8x64xf32, #tpu.memory_space<vmem>>, vector<8x64xf32>
    tpu.vector_store %arg9[%c0_140, %c0_141], %177 {strides = array<i32>} : memref<8x64xf32, #tpu.memory_space<vmem>>, vector<8x64xf32>,
    %c8_i32_142 = arith.constant 8 : i32
    %180 = arith.muli %c8_i32_127, %c8_i32_142 : i32
    %181 = arith.index_cast %180 : i32 to index
    %c0_143 = arith.constant 0 : index
    %182 = vector.load %arg11[%181, %c0_143] : memref<128x64xf32, #tpu.memory_space<vmem>>, vector<8x64xf32>
    tpu.vector_store %arg11[%181, %c0_143], %177 {strides = array<i32>} : memref<128x64xf32, #tpu.memory_space<vmem>>, vector<8x64xf32>,
    %c9_i32 = arith.constant 9 : i32
    %183 = arith.index_cast %c9_i32 : i32 to index
    %c0_144 = arith.constant 0 : index
    %c0_145 = arith.constant 0 : index
    %184 = vector.load %arg1[%183, %c0_144, %c0_145] : memref<16x8x64xf32, #tpu.memory_space<vmem>>, vector<1x8x64xf32>
    %185 = vector.shape_cast %184 : vector<1x8x64xf32> to vector<8x64xf32>
    %cst_146 = arith.constant 9.99999809 : f32
    %186 = vector.broadcast %cst_146 : f32 to vector<8x64xf32>
    %187 = arith.mulf %185, %186 : vector<8x64xf32>
    %c0_147 = arith.constant 0 : index
    %c0_148 = arith.constant 0 : index
    %188 = vector.load %arg8[%c0_147, %c0_148] : memref<8x64xf32, #tpu.memory_space<vmem>>, vector<8x64xf32>
    %cst_149 = arith.constant 0.899999976 : f32
    %189 = vector.broadcast %cst_149 : f32 to vector<8x64xf32>
    %190 = arith.mulf %189, %188 : vector<8x64xf32>
    %191 = arith.addf %187, %190 : vector<8x64xf32>
    %c0_150 = arith.constant 0 : index
    %c0_151 = arith.constant 0 : index
    %192 = vector.load %arg9[%c0_150, %c0_151] : memref<8x64xf32, #tpu.memory_space<vmem>>, vector<8x64xf32>
    %cst_152 = arith.constant 0.949999988 : f32
    %193 = vector.broadcast %cst_152 : f32 to vector<8x64xf32>
    %194 = arith.mulf %193, %192 : vector<8x64xf32>
    %cst_153 = arith.constant 19.9999962 : f32
    %195 = vector.broadcast %cst_153 : f32 to vector<8x64xf32>
    %196 = arith.mulf %191, %195 : vector<8x64xf32>
    %197 = arith.addf %194, %196 : vector<8x64xf32>
    %c0_154 = arith.constant 0 : index
    %c0_155 = arith.constant 0 : index
    %198 = vector.load %arg8[%c0_154, %c0_155] : memref<8x64xf32, #tpu.memory_space<vmem>>, vector<8x64xf32>
    tpu.vector_store %arg8[%c0_154, %c0_155], %191 {strides = array<i32>} : memref<8x64xf32, #tpu.memory_space<vmem>>, vector<8x64xf32>,
    %c0_156 = arith.constant 0 : index
    %c0_157 = arith.constant 0 : index
    %199 = vector.load %arg9[%c0_156, %c0_157] : memref<8x64xf32, #tpu.memory_space<vmem>>, vector<8x64xf32>
    tpu.vector_store %arg9[%c0_156, %c0_157], %197 {strides = array<i32>} : memref<8x64xf32, #tpu.memory_space<vmem>>, vector<8x64xf32>,
    %c8_i32_158 = arith.constant 8 : i32
    %200 = arith.muli %c9_i32, %c8_i32_158 : i32
    %201 = arith.index_cast %200 : i32 to index
    %c0_159 = arith.constant 0 : index
    %202 = vector.load %arg11[%201, %c0_159] : memref<128x64xf32, #tpu.memory_space<vmem>>, vector<8x64xf32>
    tpu.vector_store %arg11[%201, %c0_159], %197 {strides = array<i32>} : memref<128x64xf32, #tpu.memory_space<vmem>>, vector<8x64xf32>,
    %c10_i32 = arith.constant 10 : i32
    %203 = arith.index_cast %c10_i32 : i32 to index
    %c0_160 = arith.constant 0 : index
    %c0_161 = arith.constant 0 : index
    %204 = vector.load %arg1[%203, %c0_160, %c0_161] : memref<16x8x64xf32, #tpu.memory_space<vmem>>, vector<1x8x64xf32>
    %205 = vector.shape_cast %204 : vector<1x8x64xf32> to vector<8x64xf32>
    %cst_162 = arith.constant 9.99999809 : f32
    %206 = vector.broadcast %cst_162 : f32 to vector<8x64xf32>
    %207 = arith.mulf %205, %206 : vector<8x64xf32>
    %c0_163 = arith.constant 0 : index
    %c0_164 = arith.constant 0 : index
    %208 = vector.load %arg8[%c0_163, %c0_164] : memref<8x64xf32, #tpu.memory_space<vmem>>, vector<8x64xf32>
    %cst_165 = arith.constant 0.899999976 : f32
    %209 = vector.broadcast %cst_165 : f32 to vector<8x64xf32>
    %210 = arith.mulf %209, %208 : vector<8x64xf32>
    %211 = arith.addf %207, %210 : vector<8x64xf32>
    %c0_166 = arith.constant 0 : index
    %c0_167 = arith.constant 0 : index
    %212 = vector.load %arg9[%c0_166, %c0_167] : memref<8x64xf32, #tpu.memory_space<vmem>>, vector<8x64xf32>
    %cst_168 = arith.constant 0.949999988 : f32
    %213 = vector.broadcast %cst_168 : f32 to vector<8x64xf32>
    %214 = arith.mulf %213, %212 : vector<8x64xf32>
    %cst_169 = arith.constant 19.9999962 : f32
    %215 = vector.broadcast %cst_169 : f32 to vector<8x64xf32>
    %216 = arith.mulf %211, %215 : vector<8x64xf32>
    %217 = arith.addf %214, %216 : vector<8x64xf32>
    %c0_170 = arith.constant 0 : index
    %c0_171 = arith.constant 0 : index
    %218 = vector.load %arg8[%c0_170, %c0_171] : memref<8x64xf32, #tpu.memory_space<vmem>>, vector<8x64xf32>
    tpu.vector_store %arg8[%c0_170, %c0_171], %211 {strides = array<i32>} : memref<8x64xf32, #tpu.memory_space<vmem>>, vector<8x64xf32>,
    %c0_172 = arith.constant 0 : index
    %c0_173 = arith.constant 0 : index
    %219 = vector.load %arg9[%c0_172, %c0_173] : memref<8x64xf32, #tpu.memory_space<vmem>>, vector<8x64xf32>
    tpu.vector_store %arg9[%c0_172, %c0_173], %217 {strides = array<i32>} : memref<8x64xf32, #tpu.memory_space<vmem>>, vector<8x64xf32>,
    %c8_i32_174 = arith.constant 8 : i32
    %220 = arith.muli %c10_i32, %c8_i32_174 : i32
    %221 = arith.index_cast %220 : i32 to index
    %c0_175 = arith.constant 0 : index
    %222 = vector.load %arg11[%221, %c0_175] : memref<128x64xf32, #tpu.memory_space<vmem>>, vector<8x64xf32>
    tpu.vector_store %arg11[%221, %c0_175], %217 {strides = array<i32>} : memref<128x64xf32, #tpu.memory_space<vmem>>, vector<8x64xf32>,
    %c11_i32 = arith.constant 11 : i32
    %223 = arith.index_cast %c11_i32 : i32 to index
    %c0_176 = arith.constant 0 : index
    %c0_177 = arith.constant 0 : index
    %224 = vector.load %arg1[%223, %c0_176, %c0_177] : memref<16x8x64xf32, #tpu.memory_space<vmem>>, vector<1x8x64xf32>
    %225 = vector.shape_cast %224 : vector<1x8x64xf32> to vector<8x64xf32>
    %cst_178 = arith.constant 9.99999809 : f32
    %226 = vector.broadcast %cst_178 : f32 to vector<8x64xf32>
    %227 = arith.mulf %225, %226 : vector<8x64xf32>
    %c0_179 = arith.constant 0 : index
    %c0_180 = arith.constant 0 : index
    %228 = vector.load %arg8[%c0_179, %c0_180] : memref<8x64xf32, #tpu.memory_space<vmem>>, vector<8x64xf32>
    %cst_181 = arith.constant 0.899999976 : f32
    %229 = vector.broadcast %cst_181 : f32 to vector<8x64xf32>
    %230 = arith.mulf %229, %228 : vector<8x64xf32>
    %231 = arith.addf %227, %230 : vector<8x64xf32>
    %c0_182 = arith.constant 0 : index
    %c0_183 = arith.constant 0 : index
    %232 = vector.load %arg9[%c0_182, %c0_183] : memref<8x64xf32, #tpu.memory_space<vmem>>, vector<8x64xf32>
    %cst_184 = arith.constant 0.949999988 : f32
    %233 = vector.broadcast %cst_184 : f32 to vector<8x64xf32>
    %234 = arith.mulf %233, %232 : vector<8x64xf32>
    %cst_185 = arith.constant 19.9999962 : f32
    %235 = vector.broadcast %cst_185 : f32 to vector<8x64xf32>
    %236 = arith.mulf %231, %235 : vector<8x64xf32>
    %237 = arith.addf %234, %236 : vector<8x64xf32>
    %c0_186 = arith.constant 0 : index
    %c0_187 = arith.constant 0 : index
    %238 = vector.load %arg8[%c0_186, %c0_187] : memref<8x64xf32, #tpu.memory_space<vmem>>, vector<8x64xf32>
    tpu.vector_store %arg8[%c0_186, %c0_187], %231 {strides = array<i32>} : memref<8x64xf32, #tpu.memory_space<vmem>>, vector<8x64xf32>,
    %c0_188 = arith.constant 0 : index
    %c0_189 = arith.constant 0 : index
    %239 = vector.load %arg9[%c0_188, %c0_189] : memref<8x64xf32, #tpu.memory_space<vmem>>, vector<8x64xf32>
    tpu.vector_store %arg9[%c0_188, %c0_189], %237 {strides = array<i32>} : memref<8x64xf32, #tpu.memory_space<vmem>>, vector<8x64xf32>,
    %c8_i32_190 = arith.constant 8 : i32
    %240 = arith.muli %c11_i32, %c8_i32_190 : i32
    %241 = arith.index_cast %240 : i32 to index
    %c0_191 = arith.constant 0 : index
    %242 = vector.load %arg11[%241, %c0_191] : memref<128x64xf32, #tpu.memory_space<vmem>>, vector<8x64xf32>
    tpu.vector_store %arg11[%241, %c0_191], %237 {strides = array<i32>} : memref<128x64xf32, #tpu.memory_space<vmem>>, vector<8x64xf32>,
    %c12_i32 = arith.constant 12 : i32
    %243 = arith.index_cast %c12_i32 : i32 to index
    %c0_192 = arith.constant 0 : index
    %c0_193 = arith.constant 0 : index
    %244 = vector.load %arg1[%243, %c0_192, %c0_193] : memref<16x8x64xf32, #tpu.memory_space<vmem>>, vector<1x8x64xf32>
    %245 = vector.shape_cast %244 : vector<1x8x64xf32> to vector<8x64xf32>
    %cst_194 = arith.constant 9.99999809 : f32
    %246 = vector.broadcast %cst_194 : f32 to vector<8x64xf32>
    %247 = arith.mulf %245, %246 : vector<8x64xf32>
    %c0_195 = arith.constant 0 : index
    %c0_196 = arith.constant 0 : index
    %248 = vector.load %arg8[%c0_195, %c0_196] : memref<8x64xf32, #tpu.memory_space<vmem>>, vector<8x64xf32>
    %cst_197 = arith.constant 0.899999976 : f32
    %249 = vector.broadcast %cst_197 : f32 to vector<8x64xf32>
    %250 = arith.mulf %249, %248 : vector<8x64xf32>
    %251 = arith.addf %247, %250 : vector<8x64xf32>
    %c0_198 = arith.constant 0 : index
    %c0_199 = arith.constant 0 : index
    %252 = vector.load %arg9[%c0_198, %c0_199] : memref<8x64xf32, #tpu.memory_space<vmem>>, vector<8x64xf32>
    %cst_200 = arith.constant 0.949999988 : f32
    %253 = vector.broadcast %cst_200 : f32 to vector<8x64xf32>
    %254 = arith.mulf %253, %252 : vector<8x64xf32>
    %cst_201 = arith.constant 19.9999962 : f32
    %255 = vector.broadcast %cst_201 : f32 to vector<8x64xf32>
    %256 = arith.mulf %251, %255 : vector<8x64xf32>
    %257 = arith.addf %254, %256 : vector<8x64xf32>
    %c0_202 = arith.constant 0 : index
    %c0_203 = arith.constant 0 : index
    %258 = vector.load %arg8[%c0_202, %c0_203] : memref<8x64xf32, #tpu.memory_space<vmem>>, vector<8x64xf32>
    tpu.vector_store %arg8[%c0_202, %c0_203], %251 {strides = array<i32>} : memref<8x64xf32, #tpu.memory_space<vmem>>, vector<8x64xf32>,
    %c0_204 = arith.constant 0 : index
    %c0_205 = arith.constant 0 : index
    %259 = vector.load %arg9[%c0_204, %c0_205] : memref<8x64xf32, #tpu.memory_space<vmem>>, vector<8x64xf32>
    tpu.vector_store %arg9[%c0_204, %c0_205], %257 {strides = array<i32>} : memref<8x64xf32, #tpu.memory_space<vmem>>, vector<8x64xf32>,
    %c8_i32_206 = arith.constant 8 : i32
    %260 = arith.muli %c12_i32, %c8_i32_206 : i32
    %261 = arith.index_cast %260 : i32 to index
    %c0_207 = arith.constant 0 : index
    %262 = vector.load %arg11[%261, %c0_207] : memref<128x64xf32, #tpu.memory_space<vmem>>, vector<8x64xf32>
    tpu.vector_store %arg11[%261, %c0_207], %257 {strides = array<i32>} : memref<128x64xf32, #tpu.memory_space<vmem>>, vector<8x64xf32>,
    %c13_i32 = arith.constant 13 : i32
    %263 = arith.index_cast %c13_i32 : i32 to index
    %c0_208 = arith.constant 0 : index
    %c0_209 = arith.constant 0 : index
    %264 = vector.load %arg1[%263, %c0_208, %c0_209] : memref<16x8x64xf32, #tpu.memory_space<vmem>>, vector<1x8x64xf32>
    %265 = vector.shape_cast %264 : vector<1x8x64xf32> to vector<8x64xf32>
    %cst_210 = arith.constant 9.99999809 : f32
    %266 = vector.broadcast %cst_210 : f32 to vector<8x64xf32>
    %267 = arith.mulf %265, %266 : vector<8x64xf32>
    %c0_211 = arith.constant 0 : index
    %c0_212 = arith.constant 0 : index
    %268 = vector.load %arg8[%c0_211, %c0_212] : memref<8x64xf32, #tpu.memory_space<vmem>>, vector<8x64xf32>
    %cst_213 = arith.constant 0.899999976 : f32
    %269 = vector.broadcast %cst_213 : f32 to vector<8x64xf32>
    %270 = arith.mulf %269, %268 : vector<8x64xf32>
    %271 = arith.addf %267, %270 : vector<8x64xf32>
    %c0_214 = arith.constant 0 : index
    %c0_215 = arith.constant 0 : index
    %272 = vector.load %arg9[%c0_214, %c0_215] : memref<8x64xf32, #tpu.memory_space<vmem>>, vector<8x64xf32>
    %cst_216 = arith.constant 0.949999988 : f32
    %273 = vector.broadcast %cst_216 : f32 to vector<8x64xf32>
    %274 = arith.mulf %273, %272 : vector<8x64xf32>
    %cst_217 = arith.constant 19.9999962 : f32
    %275 = vector.broadcast %cst_217 : f32 to vector<8x64xf32>
    %276 = arith.mulf %271, %275 : vector<8x64xf32>
    %277 = arith.addf %274, %276 : vector<8x64xf32>
    %c0_218 = arith.constant 0 : index
    %c0_219 = arith.constant 0 : index
    %278 = vector.load %arg8[%c0_218, %c0_219] : memref<8x64xf32, #tpu.memory_space<vmem>>, vector<8x64xf32>
    tpu.vector_store %arg8[%c0_218, %c0_219], %271 {strides = array<i32>} : memref<8x64xf32, #tpu.memory_space<vmem>>, vector<8x64xf32>,
    %c0_220 = arith.constant 0 : index
    %c0_221 = arith.constant 0 : index
    %279 = vector.load %arg9[%c0_220, %c0_221] : memref<8x64xf32, #tpu.memory_space<vmem>>, vector<8x64xf32>
    tpu.vector_store %arg9[%c0_220, %c0_221], %277 {strides = array<i32>} : memref<8x64xf32, #tpu.memory_space<vmem>>, vector<8x64xf32>,
    %c8_i32_222 = arith.constant 8 : i32
    %280 = arith.muli %c13_i32, %c8_i32_222 : i32
    %281 = arith.index_cast %280 : i32 to index
    %c0_223 = arith.constant 0 : index
    %282 = vector.load %arg11[%281, %c0_223] : memref<128x64xf32, #tpu.memory_space<vmem>>, vector<8x64xf32>
    tpu.vector_store %arg11[%281, %c0_223], %277 {strides = array<i32>} : memref<128x64xf32, #tpu.memory_space<vmem>>, vector<8x64xf32>,
    %c14_i32 = arith.constant 14 : i32
    %283 = arith.index_cast %c14_i32 : i32 to index
    %c0_224 = arith.constant 0 : index
    %c0_225 = arith.constant 0 : index
    %284 = vector.load %arg1[%283, %c0_224, %c0_225] : memref<16x8x64xf32, #tpu.memory_space<vmem>>, vector<1x8x64xf32>
    %285 = vector.shape_cast %284 : vector<1x8x64xf32> to vector<8x64xf32>
    %cst_226 = arith.constant 9.99999809 : f32
    %286 = vector.broadcast %cst_226 : f32 to vector<8x64xf32>
    %287 = arith.mulf %285, %286 : vector<8x64xf32>
    %c0_227 = arith.constant 0 : index
    %c0_228 = arith.constant 0 : index
    %288 = vector.load %arg8[%c0_227, %c0_228] : memref<8x64xf32, #tpu.memory_space<vmem>>, vector<8x64xf32>
    %cst_229 = arith.constant 0.899999976 : f32
    %289 = vector.broadcast %cst_229 : f32 to vector<8x64xf32>
    %290 = arith.mulf %289, %288 : vector<8x64xf32>
    %291 = arith.addf %287, %290 : vector<8x64xf32>
    %c0_230 = arith.constant 0 : index
    %c0_231 = arith.constant 0 : index
    %292 = vector.load %arg9[%c0_230, %c0_231] : memref<8x64xf32, #tpu.memory_space<vmem>>, vector<8x64xf32>
    %cst_232 = arith.constant 0.949999988 : f32
    %293 = vector.broadcast %cst_232 : f32 to vector<8x64xf32>
    %294 = arith.mulf %293, %292 : vector<8x64xf32>
    %cst_233 = arith.constant 19.9999962 : f32
    %295 = vector.broadcast %cst_233 : f32 to vector<8x64xf32>
    %296 = arith.mulf %291, %295 : vector<8x64xf32>
    %297 = arith.addf %294, %296 : vector<8x64xf32>
    %c0_234 = arith.constant 0 : index
    %c0_235 = arith.constant 0 : index
    %298 = vector.load %arg8[%c0_234, %c0_235] : memref<8x64xf32, #tpu.memory_space<vmem>>, vector<8x64xf32>
    tpu.vector_store %arg8[%c0_234, %c0_235], %291 {strides = array<i32>} : memref<8x64xf32, #tpu.memory_space<vmem>>, vector<8x64xf32>,
    %c0_236 = arith.constant 0 : index
    %c0_237 = arith.constant 0 : index
    %299 = vector.load %arg9[%c0_236, %c0_237] : memref<8x64xf32, #tpu.memory_space<vmem>>, vector<8x64xf32>
    tpu.vector_store %arg9[%c0_236, %c0_237], %297 {strides = array<i32>} : memref<8x64xf32, #tpu.memory_space<vmem>>, vector<8x64xf32>,
    %c8_i32_238 = arith.constant 8 : i32
    %300 = arith.muli %c14_i32, %c8_i32_238 : i32
    %301 = arith.index_cast %300 : i32 to index
    %c0_239 = arith.constant 0 : index
    %302 = vector.load %arg11[%301, %c0_239] : memref<128x64xf32, #tpu.memory_space<vmem>>, vector<8x64xf32>
    tpu.vector_store %arg11[%301, %c0_239], %297 {strides = array<i32>} : memref<128x64xf32, #tpu.memory_space<vmem>>, vector<8x64xf32>,
    %c15_i32 = arith.constant 15 : i32
    %303 = arith.index_cast %c15_i32 : i32 to index
    %c0_240 = arith.constant 0 : index
    %c0_241 = arith.constant 0 : index
    %304 = vector.load %arg1[%303, %c0_240, %c0_241] : memref<16x8x64xf32, #tpu.memory_space<vmem>>, vector<1x8x64xf32>
    %305 = vector.shape_cast %304 : vector<1x8x64xf32> to vector<8x64xf32>
    %cst_242 = arith.constant 9.99999809 : f32
    %306 = vector.broadcast %cst_242 : f32 to vector<8x64xf32>
    %307 = arith.mulf %305, %306 : vector<8x64xf32>
    %c0_243 = arith.constant 0 : index
    %c0_244 = arith.constant 0 : index
    %308 = vector.load %arg8[%c0_243, %c0_244] : memref<8x64xf32, #tpu.memory_space<vmem>>, vector<8x64xf32>
    %cst_245 = arith.constant 0.899999976 : f32
    %309 = vector.broadcast %cst_245 : f32 to vector<8x64xf32>
    %310 = arith.mulf %309, %308 : vector<8x64xf32>
    %311 = arith.addf %307, %310 : vector<8x64xf32>
    %c0_246 = arith.constant 0 : index
    %c0_247 = arith.constant 0 : index
    %312 = vector.load %arg9[%c0_246, %c0_247] : memref<8x64xf32, #tpu.memory_space<vmem>>, vector<8x64xf32>
    %cst_248 = arith.constant 0.949999988 : f32
    %313 = vector.broadcast %cst_248 : f32 to vector<8x64xf32>
    %314 = arith.mulf %313, %312 : vector<8x64xf32>
    %cst_249 = arith.constant 19.9999962 : f32
    %315 = vector.broadcast %cst_249 : f32 to vector<8x64xf32>
    %316 = arith.mulf %311, %315 : vector<8x64xf32>
    %317 = arith.addf %314, %316 : vector<8x64xf32>
    %c0_250 = arith.constant 0 : index
    %c0_251 = arith.constant 0 : index
    %318 = vector.load %arg8[%c0_250, %c0_251] : memref<8x64xf32, #tpu.memory_space<vmem>>, vector<8x64xf32>
    tpu.vector_store %arg8[%c0_250, %c0_251], %311 {strides = array<i32>} : memref<8x64xf32, #tpu.memory_space<vmem>>, vector<8x64xf32>,
    %c0_252 = arith.constant 0 : index
    %c0_253 = arith.constant 0 : index
    %319 = vector.load %arg9[%c0_252, %c0_253] : memref<8x64xf32, #tpu.memory_space<vmem>>, vector<8x64xf32>
    tpu.vector_store %arg9[%c0_252, %c0_253], %317 {strides = array<i32>} : memref<8x64xf32, #tpu.memory_space<vmem>>, vector<8x64xf32>,
    %c8_i32_254 = arith.constant 8 : i32
    %320 = arith.muli %c15_i32, %c8_i32_254 : i32
    %321 = arith.index_cast %320 : i32 to index
    %c0_255 = arith.constant 0 : index
    %322 = vector.load %arg11[%321, %c0_255] : memref<128x64xf32, #tpu.memory_space<vmem>>, vector<8x64xf32>
    tpu.vector_store %arg11[%321, %c0_255], %317 {strides = array<i32>} : memref<128x64xf32, #tpu.memory_space<vmem>>, vector<8x64xf32>,
    %c16_i32 = arith.constant 16 : i32
    %c0_256 = arith.constant 0 : index
    %c0_257 = arith.constant 0 : index
    %323 = vector.load %arg11[%c0_256, %c0_257] : memref<128x64xf32, #tpu.memory_space<vmem>>, vector<128x64xf32>
    %c0_258 = arith.constant 0 : index
    %c0_259 = arith.constant 0 : index
    %324 = vector.load %arg4[%c0_258, %c0_259] : memref<64x32xf32, #tpu.memory_space<vmem>>, vector<64x32xf32>
    %cst_260 = arith.constant dense<0.000000e+00> : vector<128x32xf32>
    %325 = tpu.matmul %323, %324, %cst_260 {dimension_numbers = #tpu.dot_dimension_numbers<[1], [0], [0], [1], [0, 0, 1, 1], [], []>, precision = #tpu.contract_precision<fp32>} : vector<128x64xf32>, vector<64x32xf32>, vector<128x32xf32> -> vector<128x32xf32>
    %c0_261 = arith.constant 0 : index
    %c0_262 = arith.constant 0 : index
    %326 = vector.load %arg5[%c0_261, %c0_262] : memref<1x32xf32, #tpu.memory_space<vmem>>, vector<1x32xf32>
    %327 = vector.broadcast %326 : vector<1x32xf32> to vector<128x32xf32>
    %328 = arith.addf %325, %327 : vector<128x32xf32>
    %c0_263 = arith.constant 0 : index
    %c0_264 = arith.constant 0 : index
    %329 = vector.load %arg12[%c0_263, %c0_264] : memref<128x32xf32, #tpu.memory_space<vmem>>, vector<128x32xf32>
    tpu.vector_store %arg12[%c0_263, %c0_264], %328 {strides = array<i32>} : memref<128x32xf32, #tpu.memory_space<vmem>>, vector<128x32xf32>,
    %c0_i32_265 = arith.constant 0 : i32
    %c8_i32_266 = arith.constant 8 : i32
    %330 = arith.muli %c0_i32_265, %c8_i32_266 : i32
    %331 = arith.index_cast %330 : i32 to index
    %c0_267 = arith.constant 0 : index
    %332 = vector.load %arg12[%331, %c0_267] : memref<128x32xf32, #tpu.memory_space<vmem>>, vector<8x32xf32>
    %c0_268 = arith.constant 0 : index
    %c0_269 = arith.constant 0 : index
    %333 = vector.load %arg10[%c0_268, %c0_269] : memref<8x32xf32, #tpu.memory_space<vmem>>, vector<8x32xf32>
    %cst_270 = arith.constant 6.500000e-01 : f32
    %334 = vector.broadcast %cst_270 : f32 to vector<8x32xf32>
    %335 = arith.mulf %334, %333 : vector<8x32xf32>
    %336 = arith.addf %332, %335 : vector<8x32xf32>
    %cst_271 = arith.constant 0.000000e+00 : f32
    %337 = vector.broadcast %cst_271 : f32 to vector<8x32xf32>
    %338 = arith.cmpf ogt, %336, %337 : vector<8x32xf32>
    %339 = arith.extui %338 : vector<8x32xi1> to vector<8x32xi32>
    %340 = arith.sitofp %339 : vector<8x32xi32> to vector<8x32xf32>
    %341 = arith.negf %336 : vector<8x32xf32>
    %342 = math.exp %341 : vector<8x32xf32>
    %cst_272 = arith.constant 1.000000e+00 : f32
    %343 = vector.broadcast %cst_272 : f32 to vector<8x32xf32>
    %344 = arith.addf %343, %342 : vector<8x32xf32>
    %345 = arith.divf %343, %344 : vector<8x32xf32>
    %cst_273 = arith.constant 1.000000e+02 : f32
    %346 = vector.broadcast %cst_273 : f32 to vector<8x32xf32>
    %347 = arith.mulf %340, %346 : vector<8x32xf32>
    %348 = arith.subf %335, %347 : vector<8x32xf32>
    %c0_274 = arith.constant 0 : index
    %c0_275 = arith.constant 0 : index
    %349 = vector.load %arg10[%c0_274, %c0_275] : memref<8x32xf32, #tpu.memory_space<vmem>>, vector<8x32xf32>
    tpu.vector_store %arg10[%c0_274, %c0_275], %348 {strides = array<i32>} : memref<8x32xf32, #tpu.memory_space<vmem>>, vector<8x32xf32>,
    %350 = tpu.concatenate %340, %345, %336, %348 in 1 : vector<8x32xf32>, vector<8x32xf32>, vector<8x32xf32>, vector<8x32xf32> -> vector<8x128xf32>
    %351 = arith.index_cast %c0_i32_265 : i32 to index
    %c0_276 = arith.constant 0 : index
    %c0_277 = arith.constant 0 : index
    %352 = vector.load %arg6[%351, %c0_276, %c0_277] : memref<16x8x128xf32, #tpu.memory_space<vmem>>, vector<1x8x128xf32>
    %353 = vector.shape_cast %352 : vector<1x8x128xf32> to vector<8x128xf32>
    %354 = vector.shape_cast %350 : vector<8x128xf32> to vector<1x8x128xf32>
    tpu.vector_store %arg6[%351, %c0_276, %c0_277], %354 {strides = array<i32>} : memref<16x8x128xf32, #tpu.memory_space<vmem>>, vector<1x8x128xf32>,
    %c1_i32_278 = arith.constant 1 : i32
    %c8_i32_279 = arith.constant 8 : i32
    %355 = arith.muli %c1_i32_278, %c8_i32_279 : i32
    %356 = arith.index_cast %355 : i32 to index
    %c0_280 = arith.constant 0 : index
    %357 = vector.load %arg12[%356, %c0_280] : memref<128x32xf32, #tpu.memory_space<vmem>>, vector<8x32xf32>
    %c0_281 = arith.constant 0 : index
    %c0_282 = arith.constant 0 : index
    %358 = vector.load %arg10[%c0_281, %c0_282] : memref<8x32xf32, #tpu.memory_space<vmem>>, vector<8x32xf32>
    %cst_283 = arith.constant 6.500000e-01 : f32
    %359 = vector.broadcast %cst_283 : f32 to vector<8x32xf32>
    %360 = arith.mulf %359, %358 : vector<8x32xf32>
    %361 = arith.addf %357, %360 : vector<8x32xf32>
    %cst_284 = arith.constant 0.000000e+00 : f32
    %362 = vector.broadcast %cst_284 : f32 to vector<8x32xf32>
    %363 = arith.cmpf ogt, %361, %362 : vector<8x32xf32>
    %364 = arith.extui %363 : vector<8x32xi1> to vector<8x32xi32>
    %365 = arith.sitofp %364 : vector<8x32xi32> to vector<8x32xf32>
    %366 = arith.negf %361 : vector<8x32xf32>
    %367 = math.exp %366 : vector<8x32xf32>
    %cst_285 = arith.constant 1.000000e+00 : f32
    %368 = vector.broadcast %cst_285 : f32 to vector<8x32xf32>
    %369 = arith.addf %368, %367 : vector<8x32xf32>
    %370 = arith.divf %368, %369 : vector<8x32xf32>
    %cst_286 = arith.constant 1.000000e+02 : f32
    %371 = vector.broadcast %cst_286 : f32 to vector<8x32xf32>
    %372 = arith.mulf %365, %371 : vector<8x32xf32>
    %373 = arith.subf %360, %372 : vector<8x32xf32>
    %c0_287 = arith.constant 0 : index
    %c0_288 = arith.constant 0 : index
    %374 = vector.load %arg10[%c0_287, %c0_288] : memref<8x32xf32, #tpu.memory_space<vmem>>, vector<8x32xf32>
    tpu.vector_store %arg10[%c0_287, %c0_288], %373 {strides = array<i32>} : memref<8x32xf32, #tpu.memory_space<vmem>>, vector<8x32xf32>,
    %375 = tpu.concatenate %365, %370, %361, %373 in 1 : vector<8x32xf32>, vector<8x32xf32>, vector<8x32xf32>, vector<8x32xf32> -> vector<8x128xf32>
    %376 = arith.index_cast %c1_i32_278 : i32 to index
    %c0_289 = arith.constant 0 : index
    %c0_290 = arith.constant 0 : index
    %377 = vector.load %arg6[%376, %c0_289, %c0_290] : memref<16x8x128xf32, #tpu.memory_space<vmem>>, vector<1x8x128xf32>
    %378 = vector.shape_cast %377 : vector<1x8x128xf32> to vector<8x128xf32>
    %379 = vector.shape_cast %375 : vector<8x128xf32> to vector<1x8x128xf32>
    tpu.vector_store %arg6[%376, %c0_289, %c0_290], %379 {strides = array<i32>} : memref<16x8x128xf32, #tpu.memory_space<vmem>>, vector<1x8x128xf32>,
    %c2_i32_291 = arith.constant 2 : i32
    %c8_i32_292 = arith.constant 8 : i32
    %380 = arith.muli %c2_i32_291, %c8_i32_292 : i32
    %381 = arith.index_cast %380 : i32 to index
    %c0_293 = arith.constant 0 : index
    %382 = vector.load %arg12[%381, %c0_293] : memref<128x32xf32, #tpu.memory_space<vmem>>, vector<8x32xf32>
    %c0_294 = arith.constant 0 : index
    %c0_295 = arith.constant 0 : index
    %383 = vector.load %arg10[%c0_294, %c0_295] : memref<8x32xf32, #tpu.memory_space<vmem>>, vector<8x32xf32>
    %cst_296 = arith.constant 6.500000e-01 : f32
    %384 = vector.broadcast %cst_296 : f32 to vector<8x32xf32>
    %385 = arith.mulf %384, %383 : vector<8x32xf32>
    %386 = arith.addf %382, %385 : vector<8x32xf32>
    %cst_297 = arith.constant 0.000000e+00 : f32
    %387 = vector.broadcast %cst_297 : f32 to vector<8x32xf32>
    %388 = arith.cmpf ogt, %386, %387 : vector<8x32xf32>
    %389 = arith.extui %388 : vector<8x32xi1> to vector<8x32xi32>
    %390 = arith.sitofp %389 : vector<8x32xi32> to vector<8x32xf32>
    %391 = arith.negf %386 : vector<8x32xf32>
    %392 = math.exp %391 : vector<8x32xf32>
    %cst_298 = arith.constant 1.000000e+00 : f32
    %393 = vector.broadcast %cst_298 : f32 to vector<8x32xf32>
    %394 = arith.addf %393, %392 : vector<8x32xf32>
    %395 = arith.divf %393, %394 : vector<8x32xf32>
    %cst_299 = arith.constant 1.000000e+02 : f32
    %396 = vector.broadcast %cst_299 : f32 to vector<8x32xf32>
    %397 = arith.mulf %390, %396 : vector<8x32xf32>
    %398 = arith.subf %385, %397 : vector<8x32xf32>
    %c0_300 = arith.constant 0 : index
    %c0_301 = arith.constant 0 : index
    %399 = vector.load %arg10[%c0_300, %c0_301] : memref<8x32xf32, #tpu.memory_space<vmem>>, vector<8x32xf32>
    tpu.vector_store %arg10[%c0_300, %c0_301], %398 {strides = array<i32>} : memref<8x32xf32, #tpu.memory_space<vmem>>, vector<8x32xf32>,
    %400 = tpu.concatenate %390, %395, %386, %398 in 1 : vector<8x32xf32>, vector<8x32xf32>, vector<8x32xf32>, vector<8x32xf32> -> vector<8x128xf32>
    %401 = arith.index_cast %c2_i32_291 : i32 to index
    %c0_302 = arith.constant 0 : index
    %c0_303 = arith.constant 0 : index
    %402 = vector.load %arg6[%401, %c0_302, %c0_303] : memref<16x8x128xf32, #tpu.memory_space<vmem>>, vector<1x8x128xf32>
    %403 = vector.shape_cast %402 : vector<1x8x128xf32> to vector<8x128xf32>
    %404 = vector.shape_cast %400 : vector<8x128xf32> to vector<1x8x128xf32>
    tpu.vector_store %arg6[%401, %c0_302, %c0_303], %404 {strides = array<i32>} : memref<16x8x128xf32, #tpu.memory_space<vmem>>, vector<1x8x128xf32>,
    %c3_i32_304 = arith.constant 3 : i32
    %c8_i32_305 = arith.constant 8 : i32
    %405 = arith.muli %c3_i32_304, %c8_i32_305 : i32
    %406 = arith.index_cast %405 : i32 to index
    %c0_306 = arith.constant 0 : index
    %407 = vector.load %arg12[%406, %c0_306] : memref<128x32xf32, #tpu.memory_space<vmem>>, vector<8x32xf32>
    %c0_307 = arith.constant 0 : index
    %c0_308 = arith.constant 0 : index
    %408 = vector.load %arg10[%c0_307, %c0_308] : memref<8x32xf32, #tpu.memory_space<vmem>>, vector<8x32xf32>
    %cst_309 = arith.constant 6.500000e-01 : f32
    %409 = vector.broadcast %cst_309 : f32 to vector<8x32xf32>
    %410 = arith.mulf %409, %408 : vector<8x32xf32>
    %411 = arith.addf %407, %410 : vector<8x32xf32>
    %cst_310 = arith.constant 0.000000e+00 : f32
    %412 = vector.broadcast %cst_310 : f32 to vector<8x32xf32>
    %413 = arith.cmpf ogt, %411, %412 : vector<8x32xf32>
    %414 = arith.extui %413 : vector<8x32xi1> to vector<8x32xi32>
    %415 = arith.sitofp %414 : vector<8x32xi32> to vector<8x32xf32>
    %416 = arith.negf %411 : vector<8x32xf32>
    %417 = math.exp %416 : vector<8x32xf32>
    %cst_311 = arith.constant 1.000000e+00 : f32
    %418 = vector.broadcast %cst_311 : f32 to vector<8x32xf32>
    %419 = arith.addf %418, %417 : vector<8x32xf32>
    %420 = arith.divf %418, %419 : vector<8x32xf32>
    %cst_312 = arith.constant 1.000000e+02 : f32
    %421 = vector.broadcast %cst_312 : f32 to vector<8x32xf32>
    %422 = arith.mulf %415, %421 : vector<8x32xf32>
    %423 = arith.subf %410, %422 : vector<8x32xf32>
    %c0_313 = arith.constant 0 : index
    %c0_314 = arith.constant 0 : index
    %424 = vector.load %arg10[%c0_313, %c0_314] : memref<8x32xf32, #tpu.memory_space<vmem>>, vector<8x32xf32>
    tpu.vector_store %arg10[%c0_313, %c0_314], %423 {strides = array<i32>} : memref<8x32xf32, #tpu.memory_space<vmem>>, vector<8x32xf32>,
    %425 = tpu.concatenate %415, %420, %411, %423 in 1 : vector<8x32xf32>, vector<8x32xf32>, vector<8x32xf32>, vector<8x32xf32> -> vector<8x128xf32>
    %426 = arith.index_cast %c3_i32_304 : i32 to index
    %c0_315 = arith.constant 0 : index
    %c0_316 = arith.constant 0 : index
    %427 = vector.load %arg6[%426, %c0_315, %c0_316] : memref<16x8x128xf32, #tpu.memory_space<vmem>>, vector<1x8x128xf32>
    %428 = vector.shape_cast %427 : vector<1x8x128xf32> to vector<8x128xf32>
    %429 = vector.shape_cast %425 : vector<8x128xf32> to vector<1x8x128xf32>
    tpu.vector_store %arg6[%426, %c0_315, %c0_316], %429 {strides = array<i32>} : memref<16x8x128xf32, #tpu.memory_space<vmem>>, vector<1x8x128xf32>,
    %c4_i32_317 = arith.constant 4 : i32
    %c8_i32_318 = arith.constant 8 : i32
    %430 = arith.muli %c4_i32_317, %c8_i32_318 : i32
    %431 = arith.index_cast %430 : i32 to index
    %c0_319 = arith.constant 0 : index
    %432 = vector.load %arg12[%431, %c0_319] : memref<128x32xf32, #tpu.memory_space<vmem>>, vector<8x32xf32>
    %c0_320 = arith.constant 0 : index
    %c0_321 = arith.constant 0 : index
    %433 = vector.load %arg10[%c0_320, %c0_321] : memref<8x32xf32, #tpu.memory_space<vmem>>, vector<8x32xf32>
    %cst_322 = arith.constant 6.500000e-01 : f32
    %434 = vector.broadcast %cst_322 : f32 to vector<8x32xf32>
    %435 = arith.mulf %434, %433 : vector<8x32xf32>
    %436 = arith.addf %432, %435 : vector<8x32xf32>
    %cst_323 = arith.constant 0.000000e+00 : f32
    %437 = vector.broadcast %cst_323 : f32 to vector<8x32xf32>
    %438 = arith.cmpf ogt, %436, %437 : vector<8x32xf32>
    %439 = arith.extui %438 : vector<8x32xi1> to vector<8x32xi32>
    %440 = arith.sitofp %439 : vector<8x32xi32> to vector<8x32xf32>
    %441 = arith.negf %436 : vector<8x32xf32>
    %442 = math.exp %441 : vector<8x32xf32>
    %cst_324 = arith.constant 1.000000e+00 : f32
    %443 = vector.broadcast %cst_324 : f32 to vector<8x32xf32>
    %444 = arith.addf %443, %442 : vector<8x32xf32>
    %445 = arith.divf %443, %444 : vector<8x32xf32>
    %cst_325 = arith.constant 1.000000e+02 : f32
    %446 = vector.broadcast %cst_325 : f32 to vector<8x32xf32>
    %447 = arith.mulf %440, %446 : vector<8x32xf32>
    %448 = arith.subf %435, %447 : vector<8x32xf32>
    %c0_326 = arith.constant 0 : index
    %c0_327 = arith.constant 0 : index
    %449 = vector.load %arg10[%c0_326, %c0_327] : memref<8x32xf32, #tpu.memory_space<vmem>>, vector<8x32xf32>
    tpu.vector_store %arg10[%c0_326, %c0_327], %448 {strides = array<i32>} : memref<8x32xf32, #tpu.memory_space<vmem>>, vector<8x32xf32>,
    %450 = tpu.concatenate %440, %445, %436, %448 in 1 : vector<8x32xf32>, vector<8x32xf32>, vector<8x32xf32>, vector<8x32xf32> -> vector<8x128xf32>
    %451 = arith.index_cast %c4_i32_317 : i32 to index
    %c0_328 = arith.constant 0 : index
    %c0_329 = arith.constant 0 : index
    %452 = vector.load %arg6[%451, %c0_328, %c0_329] : memref<16x8x128xf32, #tpu.memory_space<vmem>>, vector<1x8x128xf32>
    %453 = vector.shape_cast %452 : vector<1x8x128xf32> to vector<8x128xf32>
    %454 = vector.shape_cast %450 : vector<8x128xf32> to vector<1x8x128xf32>
    tpu.vector_store %arg6[%451, %c0_328, %c0_329], %454 {strides = array<i32>} : memref<16x8x128xf32, #tpu.memory_space<vmem>>, vector<1x8x128xf32>,
    %c5_i32_330 = arith.constant 5 : i32
    %c8_i32_331 = arith.constant 8 : i32
    %455 = arith.muli %c5_i32_330, %c8_i32_331 : i32
    %456 = arith.index_cast %455 : i32 to index
    %c0_332 = arith.constant 0 : index
    %457 = vector.load %arg12[%456, %c0_332] : memref<128x32xf32, #tpu.memory_space<vmem>>, vector<8x32xf32>
    %c0_333 = arith.constant 0 : index
    %c0_334 = arith.constant 0 : index
    %458 = vector.load %arg10[%c0_333, %c0_334] : memref<8x32xf32, #tpu.memory_space<vmem>>, vector<8x32xf32>
    %cst_335 = arith.constant 6.500000e-01 : f32
    %459 = vector.broadcast %cst_335 : f32 to vector<8x32xf32>
    %460 = arith.mulf %459, %458 : vector<8x32xf32>
    %461 = arith.addf %457, %460 : vector<8x32xf32>
    %cst_336 = arith.constant 0.000000e+00 : f32
    %462 = vector.broadcast %cst_336 : f32 to vector<8x32xf32>
    %463 = arith.cmpf ogt, %461, %462 : vector<8x32xf32>
    %464 = arith.extui %463 : vector<8x32xi1> to vector<8x32xi32>
    %465 = arith.sitofp %464 : vector<8x32xi32> to vector<8x32xf32>
    %466 = arith.negf %461 : vector<8x32xf32>
    %467 = math.exp %466 : vector<8x32xf32>
    %cst_337 = arith.constant 1.000000e+00 : f32
    %468 = vector.broadcast %cst_337 : f32 to vector<8x32xf32>
    %469 = arith.addf %468, %467 : vector<8x32xf32>
    %470 = arith.divf %468, %469 : vector<8x32xf32>
    %cst_338 = arith.constant 1.000000e+02 : f32
    %471 = vector.broadcast %cst_338 : f32 to vector<8x32xf32>
    %472 = arith.mulf %465, %471 : vector<8x32xf32>
    %473 = arith.subf %460, %472 : vector<8x32xf32>
    %c0_339 = arith.constant 0 : index
    %c0_340 = arith.constant 0 : index
    %474 = vector.load %arg10[%c0_339, %c0_340] : memref<8x32xf32, #tpu.memory_space<vmem>>, vector<8x32xf32>
    tpu.vector_store %arg10[%c0_339, %c0_340], %473 {strides = array<i32>} : memref<8x32xf32, #tpu.memory_space<vmem>>, vector<8x32xf32>,
    %475 = tpu.concatenate %465, %470, %461, %473 in 1 : vector<8x32xf32>, vector<8x32xf32>, vector<8x32xf32>, vector<8x32xf32> -> vector<8x128xf32>
    %476 = arith.index_cast %c5_i32_330 : i32 to index
    %c0_341 = arith.constant 0 : index
    %c0_342 = arith.constant 0 : index
    %477 = vector.load %arg6[%476, %c0_341, %c0_342] : memref<16x8x128xf32, #tpu.memory_space<vmem>>, vector<1x8x128xf32>
    %478 = vector.shape_cast %477 : vector<1x8x128xf32> to vector<8x128xf32>
    %479 = vector.shape_cast %475 : vector<8x128xf32> to vector<1x8x128xf32>
    tpu.vector_store %arg6[%476, %c0_341, %c0_342], %479 {strides = array<i32>} : memref<16x8x128xf32, #tpu.memory_space<vmem>>, vector<1x8x128xf32>,
    %c6_i32_343 = arith.constant 6 : i32
    %c8_i32_344 = arith.constant 8 : i32
    %480 = arith.muli %c6_i32_343, %c8_i32_344 : i32
    %481 = arith.index_cast %480 : i32 to index
    %c0_345 = arith.constant 0 : index
    %482 = vector.load %arg12[%481, %c0_345] : memref<128x32xf32, #tpu.memory_space<vmem>>, vector<8x32xf32>
    %c0_346 = arith.constant 0 : index
    %c0_347 = arith.constant 0 : index
    %483 = vector.load %arg10[%c0_346, %c0_347] : memref<8x32xf32, #tpu.memory_space<vmem>>, vector<8x32xf32>
    %cst_348 = arith.constant 6.500000e-01 : f32
    %484 = vector.broadcast %cst_348 : f32 to vector<8x32xf32>
    %485 = arith.mulf %484, %483 : vector<8x32xf32>
    %486 = arith.addf %482, %485 : vector<8x32xf32>
    %cst_349 = arith.constant 0.000000e+00 : f32
    %487 = vector.broadcast %cst_349 : f32 to vector<8x32xf32>
    %488 = arith.cmpf ogt, %486, %487 : vector<8x32xf32>
    %489 = arith.extui %488 : vector<8x32xi1> to vector<8x32xi32>
    %490 = arith.sitofp %489 : vector<8x32xi32> to vector<8x32xf32>
    %491 = arith.negf %486 : vector<8x32xf32>
    %492 = math.exp %491 : vector<8x32xf32>
    %cst_350 = arith.constant 1.000000e+00 : f32
    %493 = vector.broadcast %cst_350 : f32 to vector<8x32xf32>
    %494 = arith.addf %493, %492 : vector<8x32xf32>
    %495 = arith.divf %493, %494 : vector<8x32xf32>
    %cst_351 = arith.constant 1.000000e+02 : f32
    %496 = vector.broadcast %cst_351 : f32 to vector<8x32xf32>
    %497 = arith.mulf %490, %496 : vector<8x32xf32>
    %498 = arith.subf %485, %497 : vector<8x32xf32>
    %c0_352 = arith.constant 0 : index
    %c0_353 = arith.constant 0 : index
    %499 = vector.load %arg10[%c0_352, %c0_353] : memref<8x32xf32, #tpu.memory_space<vmem>>, vector<8x32xf32>
    tpu.vector_store %arg10[%c0_352, %c0_353], %498 {strides = array<i32>} : memref<8x32xf32, #tpu.memory_space<vmem>>, vector<8x32xf32>,
    %500 = tpu.concatenate %490, %495, %486, %498 in 1 : vector<8x32xf32>, vector<8x32xf32>, vector<8x32xf32>, vector<8x32xf32> -> vector<8x128xf32>
    %501 = arith.index_cast %c6_i32_343 : i32 to index
    %c0_354 = arith.constant 0 : index
    %c0_355 = arith.constant 0 : index
    %502 = vector.load %arg6[%501, %c0_354, %c0_355] : memref<16x8x128xf32, #tpu.memory_space<vmem>>, vector<1x8x128xf32>
    %503 = vector.shape_cast %502 : vector<1x8x128xf32> to vector<8x128xf32>
    %504 = vector.shape_cast %500 : vector<8x128xf32> to vector<1x8x128xf32>
    tpu.vector_store %arg6[%501, %c0_354, %c0_355], %504 {strides = array<i32>} : memref<16x8x128xf32, #tpu.memory_space<vmem>>, vector<1x8x128xf32>,
    %c7_i32_356 = arith.constant 7 : i32
    %c8_i32_357 = arith.constant 8 : i32
    %505 = arith.muli %c7_i32_356, %c8_i32_357 : i32
    %506 = arith.index_cast %505 : i32 to index
    %c0_358 = arith.constant 0 : index
    %507 = vector.load %arg12[%506, %c0_358] : memref<128x32xf32, #tpu.memory_space<vmem>>, vector<8x32xf32>
    %c0_359 = arith.constant 0 : index
    %c0_360 = arith.constant 0 : index
    %508 = vector.load %arg10[%c0_359, %c0_360] : memref<8x32xf32, #tpu.memory_space<vmem>>, vector<8x32xf32>
    %cst_361 = arith.constant 6.500000e-01 : f32
    %509 = vector.broadcast %cst_361 : f32 to vector<8x32xf32>
    %510 = arith.mulf %509, %508 : vector<8x32xf32>
    %511 = arith.addf %507, %510 : vector<8x32xf32>
    %cst_362 = arith.constant 0.000000e+00 : f32
    %512 = vector.broadcast %cst_362 : f32 to vector<8x32xf32>
    %513 = arith.cmpf ogt, %511, %512 : vector<8x32xf32>
    %514 = arith.extui %513 : vector<8x32xi1> to vector<8x32xi32>
    %515 = arith.sitofp %514 : vector<8x32xi32> to vector<8x32xf32>
    %516 = arith.negf %511 : vector<8x32xf32>
    %517 = math.exp %516 : vector<8x32xf32>
    %cst_363 = arith.constant 1.000000e+00 : f32
    %518 = vector.broadcast %cst_363 : f32 to vector<8x32xf32>
    %519 = arith.addf %518, %517 : vector<8x32xf32>
    %520 = arith.divf %518, %519 : vector<8x32xf32>
    %cst_364 = arith.constant 1.000000e+02 : f32
    %521 = vector.broadcast %cst_364 : f32 to vector<8x32xf32>
    %522 = arith.mulf %515, %521 : vector<8x32xf32>
    %523 = arith.subf %510, %522 : vector<8x32xf32>
    %c0_365 = arith.constant 0 : index
    %c0_366 = arith.constant 0 : index
    %524 = vector.load %arg10[%c0_365, %c0_366] : memref<8x32xf32, #tpu.memory_space<vmem>>, vector<8x32xf32>
    tpu.vector_store %arg10[%c0_365, %c0_366], %523 {strides = array<i32>} : memref<8x32xf32, #tpu.memory_space<vmem>>, vector<8x32xf32>,
    %525 = tpu.concatenate %515, %520, %511, %523 in 1 : vector<8x32xf32>, vector<8x32xf32>, vector<8x32xf32>, vector<8x32xf32> -> vector<8x128xf32>
    %526 = arith.index_cast %c7_i32_356 : i32 to index
    %c0_367 = arith.constant 0 : index
    %c0_368 = arith.constant 0 : index
    %527 = vector.load %arg6[%526, %c0_367, %c0_368] : memref<16x8x128xf32, #tpu.memory_space<vmem>>, vector<1x8x128xf32>
    %528 = vector.shape_cast %527 : vector<1x8x128xf32> to vector<8x128xf32>
    %529 = vector.shape_cast %525 : vector<8x128xf32> to vector<1x8x128xf32>
    tpu.vector_store %arg6[%526, %c0_367, %c0_368], %529 {strides = array<i32>} : memref<16x8x128xf32, #tpu.memory_space<vmem>>, vector<1x8x128xf32>,
    %c8_i32_369 = arith.constant 8 : i32
    %c8_i32_370 = arith.constant 8 : i32
    %530 = arith.muli %c8_i32_369, %c8_i32_370 : i32
    %531 = arith.index_cast %530 : i32 to index
    %c0_371 = arith.constant 0 : index
    %532 = vector.load %arg12[%531, %c0_371] : memref<128x32xf32, #tpu.memory_space<vmem>>, vector<8x32xf32>
    %c0_372 = arith.constant 0 : index
    %c0_373 = arith.constant 0 : index
    %533 = vector.load %arg10[%c0_372, %c0_373] : memref<8x32xf32, #tpu.memory_space<vmem>>, vector<8x32xf32>
    %cst_374 = arith.constant 6.500000e-01 : f32
    %534 = vector.broadcast %cst_374 : f32 to vector<8x32xf32>
    %535 = arith.mulf %534, %533 : vector<8x32xf32>
    %536 = arith.addf %532, %535 : vector<8x32xf32>
    %cst_375 = arith.constant 0.000000e+00 : f32
    %537 = vector.broadcast %cst_375 : f32 to vector<8x32xf32>
    %538 = arith.cmpf ogt, %536, %537 : vector<8x32xf32>
    %539 = arith.extui %538 : vector<8x32xi1> to vector<8x32xi32>
    %540 = arith.sitofp %539 : vector<8x32xi32> to vector<8x32xf32>
    %541 = arith.negf %536 : vector<8x32xf32>
    %542 = math.exp %541 : vector<8x32xf32>
    %cst_376 = arith.constant 1.000000e+00 : f32
    %543 = vector.broadcast %cst_376 : f32 to vector<8x32xf32>
    %544 = arith.addf %543, %542 : vector<8x32xf32>
    %545 = arith.divf %543, %544 : vector<8x32xf32>
    %cst_377 = arith.constant 1.000000e+02 : f32
    %546 = vector.broadcast %cst_377 : f32 to vector<8x32xf32>
    %547 = arith.mulf %540, %546 : vector<8x32xf32>
    %548 = arith.subf %535, %547 : vector<8x32xf32>
    %c0_378 = arith.constant 0 : index
    %c0_379 = arith.constant 0 : index
    %549 = vector.load %arg10[%c0_378, %c0_379] : memref<8x32xf32, #tpu.memory_space<vmem>>, vector<8x32xf32>
    tpu.vector_store %arg10[%c0_378, %c0_379], %548 {strides = array<i32>} : memref<8x32xf32, #tpu.memory_space<vmem>>, vector<8x32xf32>,
    %550 = tpu.concatenate %540, %545, %536, %548 in 1 : vector<8x32xf32>, vector<8x32xf32>, vector<8x32xf32>, vector<8x32xf32> -> vector<8x128xf32>
    %551 = arith.index_cast %c8_i32_369 : i32 to index
    %c0_380 = arith.constant 0 : index
    %c0_381 = arith.constant 0 : index
    %552 = vector.load %arg6[%551, %c0_380, %c0_381] : memref<16x8x128xf32, #tpu.memory_space<vmem>>, vector<1x8x128xf32>
    %553 = vector.shape_cast %552 : vector<1x8x128xf32> to vector<8x128xf32>
    %554 = vector.shape_cast %550 : vector<8x128xf32> to vector<1x8x128xf32>
    tpu.vector_store %arg6[%551, %c0_380, %c0_381], %554 {strides = array<i32>} : memref<16x8x128xf32, #tpu.memory_space<vmem>>, vector<1x8x128xf32>,
    %c9_i32_382 = arith.constant 9 : i32
    %c8_i32_383 = arith.constant 8 : i32
    %555 = arith.muli %c9_i32_382, %c8_i32_383 : i32
    %556 = arith.index_cast %555 : i32 to index
    %c0_384 = arith.constant 0 : index
    %557 = vector.load %arg12[%556, %c0_384] : memref<128x32xf32, #tpu.memory_space<vmem>>, vector<8x32xf32>
    %c0_385 = arith.constant 0 : index
    %c0_386 = arith.constant 0 : index
    %558 = vector.load %arg10[%c0_385, %c0_386] : memref<8x32xf32, #tpu.memory_space<vmem>>, vector<8x32xf32>
    %cst_387 = arith.constant 6.500000e-01 : f32
    %559 = vector.broadcast %cst_387 : f32 to vector<8x32xf32>
    %560 = arith.mulf %559, %558 : vector<8x32xf32>
    %561 = arith.addf %557, %560 : vector<8x32xf32>
    %cst_388 = arith.constant 0.000000e+00 : f32
    %562 = vector.broadcast %cst_388 : f32 to vector<8x32xf32>
    %563 = arith.cmpf ogt, %561, %562 : vector<8x32xf32>
    %564 = arith.extui %563 : vector<8x32xi1> to vector<8x32xi32>
    %565 = arith.sitofp %564 : vector<8x32xi32> to vector<8x32xf32>
    %566 = arith.negf %561 : vector<8x32xf32>
    %567 = math.exp %566 : vector<8x32xf32>
    %cst_389 = arith.constant 1.000000e+00 : f32
    %568 = vector.broadcast %cst_389 : f32 to vector<8x32xf32>
    %569 = arith.addf %568, %567 : vector<8x32xf32>
    %570 = arith.divf %568, %569 : vector<8x32xf32>
    %cst_390 = arith.constant 1.000000e+02 : f32
    %571 = vector.broadcast %cst_390 : f32 to vector<8x32xf32>
    %572 = arith.mulf %565, %571 : vector<8x32xf32>
    %573 = arith.subf %560, %572 : vector<8x32xf32>
    %c0_391 = arith.constant 0 : index
    %c0_392 = arith.constant 0 : index
    %574 = vector.load %arg10[%c0_391, %c0_392] : memref<8x32xf32, #tpu.memory_space<vmem>>, vector<8x32xf32>
    tpu.vector_store %arg10[%c0_391, %c0_392], %573 {strides = array<i32>} : memref<8x32xf32, #tpu.memory_space<vmem>>, vector<8x32xf32>,
    %575 = tpu.concatenate %565, %570, %561, %573 in 1 : vector<8x32xf32>, vector<8x32xf32>, vector<8x32xf32>, vector<8x32xf32> -> vector<8x128xf32>
    %576 = arith.index_cast %c9_i32_382 : i32 to index
    %c0_393 = arith.constant 0 : index
    %c0_394 = arith.constant 0 : index
    %577 = vector.load %arg6[%576, %c0_393, %c0_394] : memref<16x8x128xf32, #tpu.memory_space<vmem>>, vector<1x8x128xf32>
    %578 = vector.shape_cast %577 : vector<1x8x128xf32> to vector<8x128xf32>
    %579 = vector.shape_cast %575 : vector<8x128xf32> to vector<1x8x128xf32>
    tpu.vector_store %arg6[%576, %c0_393, %c0_394], %579 {strides = array<i32>} : memref<16x8x128xf32, #tpu.memory_space<vmem>>, vector<1x8x128xf32>,
    %c10_i32_395 = arith.constant 10 : i32
    %c8_i32_396 = arith.constant 8 : i32
    %580 = arith.muli %c10_i32_395, %c8_i32_396 : i32
    %581 = arith.index_cast %580 : i32 to index
    %c0_397 = arith.constant 0 : index
    %582 = vector.load %arg12[%581, %c0_397] : memref<128x32xf32, #tpu.memory_space<vmem>>, vector<8x32xf32>
    %c0_398 = arith.constant 0 : index
    %c0_399 = arith.constant 0 : index
    %583 = vector.load %arg10[%c0_398, %c0_399] : memref<8x32xf32, #tpu.memory_space<vmem>>, vector<8x32xf32>
    %cst_400 = arith.constant 6.500000e-01 : f32
    %584 = vector.broadcast %cst_400 : f32 to vector<8x32xf32>
    %585 = arith.mulf %584, %583 : vector<8x32xf32>
    %586 = arith.addf %582, %585 : vector<8x32xf32>
    %cst_401 = arith.constant 0.000000e+00 : f32
    %587 = vector.broadcast %cst_401 : f32 to vector<8x32xf32>
    %588 = arith.cmpf ogt, %586, %587 : vector<8x32xf32>
    %589 = arith.extui %588 : vector<8x32xi1> to vector<8x32xi32>
    %590 = arith.sitofp %589 : vector<8x32xi32> to vector<8x32xf32>
    %591 = arith.negf %586 : vector<8x32xf32>
    %592 = math.exp %591 : vector<8x32xf32>
    %cst_402 = arith.constant 1.000000e+00 : f32
    %593 = vector.broadcast %cst_402 : f32 to vector<8x32xf32>
    %594 = arith.addf %593, %592 : vector<8x32xf32>
    %595 = arith.divf %593, %594 : vector<8x32xf32>
    %cst_403 = arith.constant 1.000000e+02 : f32
    %596 = vector.broadcast %cst_403 : f32 to vector<8x32xf32>
    %597 = arith.mulf %590, %596 : vector<8x32xf32>
    %598 = arith.subf %585, %597 : vector<8x32xf32>
    %c0_404 = arith.constant 0 : index
    %c0_405 = arith.constant 0 : index
    %599 = vector.load %arg10[%c0_404, %c0_405] : memref<8x32xf32, #tpu.memory_space<vmem>>, vector<8x32xf32>
    tpu.vector_store %arg10[%c0_404, %c0_405], %598 {strides = array<i32>} : memref<8x32xf32, #tpu.memory_space<vmem>>, vector<8x32xf32>,
    %600 = tpu.concatenate %590, %595, %586, %598 in 1 : vector<8x32xf32>, vector<8x32xf32>, vector<8x32xf32>, vector<8x32xf32> -> vector<8x128xf32>
    %601 = arith.index_cast %c10_i32_395 : i32 to index
    %c0_406 = arith.constant 0 : index
    %c0_407 = arith.constant 0 : index
    %602 = vector.load %arg6[%601, %c0_406, %c0_407] : memref<16x8x128xf32, #tpu.memory_space<vmem>>, vector<1x8x128xf32>
    %603 = vector.shape_cast %602 : vector<1x8x128xf32> to vector<8x128xf32>
    %604 = vector.shape_cast %600 : vector<8x128xf32> to vector<1x8x128xf32>
    tpu.vector_store %arg6[%601, %c0_406, %c0_407], %604 {strides = array<i32>} : memref<16x8x128xf32, #tpu.memory_space<vmem>>, vector<1x8x128xf32>,
    %c11_i32_408 = arith.constant 11 : i32
    %c8_i32_409 = arith.constant 8 : i32
    %605 = arith.muli %c11_i32_408, %c8_i32_409 : i32
    %606 = arith.index_cast %605 : i32 to index
    %c0_410 = arith.constant 0 : index
    %607 = vector.load %arg12[%606, %c0_410] : memref<128x32xf32, #tpu.memory_space<vmem>>, vector<8x32xf32>
    %c0_411 = arith.constant 0 : index
    %c0_412 = arith.constant 0 : index
    %608 = vector.load %arg10[%c0_411, %c0_412] : memref<8x32xf32, #tpu.memory_space<vmem>>, vector<8x32xf32>
    %cst_413 = arith.constant 6.500000e-01 : f32
    %609 = vector.broadcast %cst_413 : f32 to vector<8x32xf32>
    %610 = arith.mulf %609, %608 : vector<8x32xf32>
    %611 = arith.addf %607, %610 : vector<8x32xf32>
    %cst_414 = arith.constant 0.000000e+00 : f32
    %612 = vector.broadcast %cst_414 : f32 to vector<8x32xf32>
    %613 = arith.cmpf ogt, %611, %612 : vector<8x32xf32>
    %614 = arith.extui %613 : vector<8x32xi1> to vector<8x32xi32>
    %615 = arith.sitofp %614 : vector<8x32xi32> to vector<8x32xf32>
    %616 = arith.negf %611 : vector<8x32xf32>
    %617 = math.exp %616 : vector<8x32xf32>
    %cst_415 = arith.constant 1.000000e+00 : f32
    %618 = vector.broadcast %cst_415 : f32 to vector<8x32xf32>
    %619 = arith.addf %618, %617 : vector<8x32xf32>
    %620 = arith.divf %618, %619 : vector<8x32xf32>
    %cst_416 = arith.constant 1.000000e+02 : f32
    %621 = vector.broadcast %cst_416 : f32 to vector<8x32xf32>
    %622 = arith.mulf %615, %621 : vector<8x32xf32>
    %623 = arith.subf %610, %622 : vector<8x32xf32>
    %c0_417 = arith.constant 0 : index
    %c0_418 = arith.constant 0 : index
    %624 = vector.load %arg10[%c0_417, %c0_418] : memref<8x32xf32, #tpu.memory_space<vmem>>, vector<8x32xf32>
    tpu.vector_store %arg10[%c0_417, %c0_418], %623 {strides = array<i32>} : memref<8x32xf32, #tpu.memory_space<vmem>>, vector<8x32xf32>,
    %625 = tpu.concatenate %615, %620, %611, %623 in 1 : vector<8x32xf32>, vector<8x32xf32>, vector<8x32xf32>, vector<8x32xf32> -> vector<8x128xf32>
    %626 = arith.index_cast %c11_i32_408 : i32 to index
    %c0_419 = arith.constant 0 : index
    %c0_420 = arith.constant 0 : index
    %627 = vector.load %arg6[%626, %c0_419, %c0_420] : memref<16x8x128xf32, #tpu.memory_space<vmem>>, vector<1x8x128xf32>
    %628 = vector.shape_cast %627 : vector<1x8x128xf32> to vector<8x128xf32>
    %629 = vector.shape_cast %625 : vector<8x128xf32> to vector<1x8x128xf32>
    tpu.vector_store %arg6[%626, %c0_419, %c0_420], %629 {strides = array<i32>} : memref<16x8x128xf32, #tpu.memory_space<vmem>>, vector<1x8x128xf32>,
    %c12_i32_421 = arith.constant 12 : i32
    %c8_i32_422 = arith.constant 8 : i32
    %630 = arith.muli %c12_i32_421, %c8_i32_422 : i32
    %631 = arith.index_cast %630 : i32 to index
    %c0_423 = arith.constant 0 : index
    %632 = vector.load %arg12[%631, %c0_423] : memref<128x32xf32, #tpu.memory_space<vmem>>, vector<8x32xf32>
    %c0_424 = arith.constant 0 : index
    %c0_425 = arith.constant 0 : index
    %633 = vector.load %arg10[%c0_424, %c0_425] : memref<8x32xf32, #tpu.memory_space<vmem>>, vector<8x32xf32>
    %cst_426 = arith.constant 6.500000e-01 : f32
    %634 = vector.broadcast %cst_426 : f32 to vector<8x32xf32>
    %635 = arith.mulf %634, %633 : vector<8x32xf32>
    %636 = arith.addf %632, %635 : vector<8x32xf32>
    %cst_427 = arith.constant 0.000000e+00 : f32
    %637 = vector.broadcast %cst_427 : f32 to vector<8x32xf32>
    %638 = arith.cmpf ogt, %636, %637 : vector<8x32xf32>
    %639 = arith.extui %638 : vector<8x32xi1> to vector<8x32xi32>
    %640 = arith.sitofp %639 : vector<8x32xi32> to vector<8x32xf32>
    %641 = arith.negf %636 : vector<8x32xf32>
    %642 = math.exp %641 : vector<8x32xf32>
    %cst_428 = arith.constant 1.000000e+00 : f32
    %643 = vector.broadcast %cst_428 : f32 to vector<8x32xf32>
    %644 = arith.addf %643, %642 : vector<8x32xf32>
    %645 = arith.divf %643, %644 : vector<8x32xf32>
    %cst_429 = arith.constant 1.000000e+02 : f32
    %646 = vector.broadcast %cst_429 : f32 to vector<8x32xf32>
    %647 = arith.mulf %640, %646 : vector<8x32xf32>
    %648 = arith.subf %635, %647 : vector<8x32xf32>
    %c0_430 = arith.constant 0 : index
    %c0_431 = arith.constant 0 : index
    %649 = vector.load %arg10[%c0_430, %c0_431] : memref<8x32xf32, #tpu.memory_space<vmem>>, vector<8x32xf32>
    tpu.vector_store %arg10[%c0_430, %c0_431], %648 {strides = array<i32>} : memref<8x32xf32, #tpu.memory_space<vmem>>, vector<8x32xf32>,
    %650 = tpu.concatenate %640, %645, %636, %648 in 1 : vector<8x32xf32>, vector<8x32xf32>, vector<8x32xf32>, vector<8x32xf32> -> vector<8x128xf32>
    %651 = arith.index_cast %c12_i32_421 : i32 to index
    %c0_432 = arith.constant 0 : index
    %c0_433 = arith.constant 0 : index
    %652 = vector.load %arg6[%651, %c0_432, %c0_433] : memref<16x8x128xf32, #tpu.memory_space<vmem>>, vector<1x8x128xf32>
    %653 = vector.shape_cast %652 : vector<1x8x128xf32> to vector<8x128xf32>
    %654 = vector.shape_cast %650 : vector<8x128xf32> to vector<1x8x128xf32>
    tpu.vector_store %arg6[%651, %c0_432, %c0_433], %654 {strides = array<i32>} : memref<16x8x128xf32, #tpu.memory_space<vmem>>, vector<1x8x128xf32>,
    %c13_i32_434 = arith.constant 13 : i32
    %c8_i32_435 = arith.constant 8 : i32
    %655 = arith.muli %c13_i32_434, %c8_i32_435 : i32
    %656 = arith.index_cast %655 : i32 to index
    %c0_436 = arith.constant 0 : index
    %657 = vector.load %arg12[%656, %c0_436] : memref<128x32xf32, #tpu.memory_space<vmem>>, vector<8x32xf32>
    %c0_437 = arith.constant 0 : index
    %c0_438 = arith.constant 0 : index
    %658 = vector.load %arg10[%c0_437, %c0_438] : memref<8x32xf32, #tpu.memory_space<vmem>>, vector<8x32xf32>
    %cst_439 = arith.constant 6.500000e-01 : f32
    %659 = vector.broadcast %cst_439 : f32 to vector<8x32xf32>
    %660 = arith.mulf %659, %658 : vector<8x32xf32>
    %661 = arith.addf %657, %660 : vector<8x32xf32>
    %cst_440 = arith.constant 0.000000e+00 : f32
    %662 = vector.broadcast %cst_440 : f32 to vector<8x32xf32>
    %663 = arith.cmpf ogt, %661, %662 : vector<8x32xf32>
    %664 = arith.extui %663 : vector<8x32xi1> to vector<8x32xi32>
    %665 = arith.sitofp %664 : vector<8x32xi32> to vector<8x32xf32>
    %666 = arith.negf %661 : vector<8x32xf32>
    %667 = math.exp %666 : vector<8x32xf32>
    %cst_441 = arith.constant 1.000000e+00 : f32
    %668 = vector.broadcast %cst_441 : f32 to vector<8x32xf32>
    %669 = arith.addf %668, %667 : vector<8x32xf32>
    %670 = arith.divf %668, %669 : vector<8x32xf32>
    %cst_442 = arith.constant 1.000000e+02 : f32
    %671 = vector.broadcast %cst_442 : f32 to vector<8x32xf32>
    %672 = arith.mulf %665, %671 : vector<8x32xf32>
    %673 = arith.subf %660, %672 : vector<8x32xf32>
    %c0_443 = arith.constant 0 : index
    %c0_444 = arith.constant 0 : index
    %674 = vector.load %arg10[%c0_443, %c0_444] : memref<8x32xf32, #tpu.memory_space<vmem>>, vector<8x32xf32>
    tpu.vector_store %arg10[%c0_443, %c0_444], %673 {strides = array<i32>} : memref<8x32xf32, #tpu.memory_space<vmem>>, vector<8x32xf32>,
    %675 = tpu.concatenate %665, %670, %661, %673 in 1 : vector<8x32xf32>, vector<8x32xf32>, vector<8x32xf32>, vector<8x32xf32> -> vector<8x128xf32>
    %676 = arith.index_cast %c13_i32_434 : i32 to index
    %c0_445 = arith.constant 0 : index
    %c0_446 = arith.constant 0 : index
    %677 = vector.load %arg6[%676, %c0_445, %c0_446] : memref<16x8x128xf32, #tpu.memory_space<vmem>>, vector<1x8x128xf32>
    %678 = vector.shape_cast %677 : vector<1x8x128xf32> to vector<8x128xf32>
    %679 = vector.shape_cast %675 : vector<8x128xf32> to vector<1x8x128xf32>
    tpu.vector_store %arg6[%676, %c0_445, %c0_446], %679 {strides = array<i32>} : memref<16x8x128xf32, #tpu.memory_space<vmem>>, vector<1x8x128xf32>,
    %c14_i32_447 = arith.constant 14 : i32
    %c8_i32_448 = arith.constant 8 : i32
    %680 = arith.muli %c14_i32_447, %c8_i32_448 : i32
    %681 = arith.index_cast %680 : i32 to index
    %c0_449 = arith.constant 0 : index
    %682 = vector.load %arg12[%681, %c0_449] : memref<128x32xf32, #tpu.memory_space<vmem>>, vector<8x32xf32>
    %c0_450 = arith.constant 0 : index
    %c0_451 = arith.constant 0 : index
    %683 = vector.load %arg10[%c0_450, %c0_451] : memref<8x32xf32, #tpu.memory_space<vmem>>, vector<8x32xf32>
    %cst_452 = arith.constant 6.500000e-01 : f32
    %684 = vector.broadcast %cst_452 : f32 to vector<8x32xf32>
    %685 = arith.mulf %684, %683 : vector<8x32xf32>
    %686 = arith.addf %682, %685 : vector<8x32xf32>
    %cst_453 = arith.constant 0.000000e+00 : f32
    %687 = vector.broadcast %cst_453 : f32 to vector<8x32xf32>
    %688 = arith.cmpf ogt, %686, %687 : vector<8x32xf32>
    %689 = arith.extui %688 : vector<8x32xi1> to vector<8x32xi32>
    %690 = arith.sitofp %689 : vector<8x32xi32> to vector<8x32xf32>
    %691 = arith.negf %686 : vector<8x32xf32>
    %692 = math.exp %691 : vector<8x32xf32>
    %cst_454 = arith.constant 1.000000e+00 : f32
    %693 = vector.broadcast %cst_454 : f32 to vector<8x32xf32>
    %694 = arith.addf %693, %692 : vector<8x32xf32>
    %695 = arith.divf %693, %694 : vector<8x32xf32>
    %cst_455 = arith.constant 1.000000e+02 : f32
    %696 = vector.broadcast %cst_455 : f32 to vector<8x32xf32>
    %697 = arith.mulf %690, %696 : vector<8x32xf32>
    %698 = arith.subf %685, %697 : vector<8x32xf32>
    %c0_456 = arith.constant 0 : index
    %c0_457 = arith.constant 0 : index
    %699 = vector.load %arg10[%c0_456, %c0_457] : memref<8x32xf32, #tpu.memory_space<vmem>>, vector<8x32xf32>
    tpu.vector_store %arg10[%c0_456, %c0_457], %698 {strides = array<i32>} : memref<8x32xf32, #tpu.memory_space<vmem>>, vector<8x32xf32>,
    %700 = tpu.concatenate %690, %695, %686, %698 in 1 : vector<8x32xf32>, vector<8x32xf32>, vector<8x32xf32>, vector<8x32xf32> -> vector<8x128xf32>
    %701 = arith.index_cast %c14_i32_447 : i32 to index
    %c0_458 = arith.constant 0 : index
    %c0_459 = arith.constant 0 : index
    %702 = vector.load %arg6[%701, %c0_458, %c0_459] : memref<16x8x128xf32, #tpu.memory_space<vmem>>, vector<1x8x128xf32>
    %703 = vector.shape_cast %702 : vector<1x8x128xf32> to vector<8x128xf32>
    %704 = vector.shape_cast %700 : vector<8x128xf32> to vector<1x8x128xf32>
    tpu.vector_store %arg6[%701, %c0_458, %c0_459], %704 {strides = array<i32>} : memref<16x8x128xf32, #tpu.memory_space<vmem>>, vector<1x8x128xf32>,
    %c15_i32_460 = arith.constant 15 : i32
    %c8_i32_461 = arith.constant 8 : i32
    %705 = arith.muli %c15_i32_460, %c8_i32_461 : i32
    %706 = arith.index_cast %705 : i32 to index
    %c0_462 = arith.constant 0 : index
    %707 = vector.load %arg12[%706, %c0_462] : memref<128x32xf32, #tpu.memory_space<vmem>>, vector<8x32xf32>
    %c0_463 = arith.constant 0 : index
    %c0_464 = arith.constant 0 : index
    %708 = vector.load %arg10[%c0_463, %c0_464] : memref<8x32xf32, #tpu.memory_space<vmem>>, vector<8x32xf32>
    %cst_465 = arith.constant 6.500000e-01 : f32
    %709 = vector.broadcast %cst_465 : f32 to vector<8x32xf32>
    %710 = arith.mulf %709, %708 : vector<8x32xf32>
    %711 = arith.addf %707, %710 : vector<8x32xf32>
    %cst_466 = arith.constant 0.000000e+00 : f32
    %712 = vector.broadcast %cst_466 : f32 to vector<8x32xf32>
    %713 = arith.cmpf ogt, %711, %712 : vector<8x32xf32>
    %714 = arith.extui %713 : vector<8x32xi1> to vector<8x32xi32>
    %715 = arith.sitofp %714 : vector<8x32xi32> to vector<8x32xf32>
    %716 = arith.negf %711 : vector<8x32xf32>
    %717 = math.exp %716 : vector<8x32xf32>
    %cst_467 = arith.constant 1.000000e+00 : f32
    %718 = vector.broadcast %cst_467 : f32 to vector<8x32xf32>
    %719 = arith.addf %718, %717 : vector<8x32xf32>
    %720 = arith.divf %718, %719 : vector<8x32xf32>
    %cst_468 = arith.constant 1.000000e+02 : f32
    %721 = vector.broadcast %cst_468 : f32 to vector<8x32xf32>
    %722 = arith.mulf %715, %721 : vector<8x32xf32>
    %723 = arith.subf %710, %722 : vector<8x32xf32>
    %c0_469 = arith.constant 0 : index
    %c0_470 = arith.constant 0 : index
    %724 = vector.load %arg10[%c0_469, %c0_470] : memref<8x32xf32, #tpu.memory_space<vmem>>, vector<8x32xf32>
    tpu.vector_store %arg10[%c0_469, %c0_470], %723 {strides = array<i32>} : memref<8x32xf32, #tpu.memory_space<vmem>>, vector<8x32xf32>,
    %725 = tpu.concatenate %715, %720, %711, %723 in 1 : vector<8x32xf32>, vector<8x32xf32>, vector<8x32xf32>, vector<8x32xf32> -> vector<8x128xf32>
    %726 = arith.index_cast %c15_i32_460 : i32 to index
    %c0_471 = arith.constant 0 : index
    %c0_472 = arith.constant 0 : index
    %727 = vector.load %arg6[%726, %c0_471, %c0_472] : memref<16x8x128xf32, #tpu.memory_space<vmem>>, vector<1x8x128xf32>
    %728 = vector.shape_cast %727 : vector<1x8x128xf32> to vector<8x128xf32>
    %729 = vector.shape_cast %725 : vector<8x128xf32> to vector<1x8x128xf32>
    tpu.vector_store %arg6[%726, %c0_471, %c0_472], %729 {strides = array<i32>} : memref<16x8x128xf32, #tpu.memory_space<vmem>>, vector<1x8x128xf32>,
    %c16_i32_473 = arith.constant 16 : i32
    %c0_i32_474 = arith.constant 0 : i32
    %730 = arith.cmpi eq, %arg0, %c0_i32_474 : i32
    %731 = arith.extui %730 : i1 to i32
    %c0_i32_475 = arith.constant 0 : i32
    %732 = arith.cmpi ne, %731, %c0_i32_475 : i32
    scf.if %732 {
      %c0_476 = arith.constant 0 : index
      %c0_477 = arith.constant 0 : index
      %733 = vector.load %arg8[%c0_476, %c0_477] : memref<8x64xf32, #tpu.memory_space<vmem>>, vector<8x64xf32>
      %c0_478 = arith.constant 0 : index
      %c0_479 = arith.constant 0 : index
      %c0_480 = arith.constant 0 : index
      %734 = vector.load %arg7[%c0_478, %c0_479, %c0_480] : memref<2x8x64xf32, #tpu.memory_space<vmem>>, vector<1x8x64xf32>
      %735 = vector.shape_cast %734 : vector<1x8x64xf32> to vector<8x64xf32>
      %736 = vector.shape_cast %733 : vector<8x64xf32> to vector<1x8x64xf32>
      tpu.vector_store %arg7[%c0_478, %c0_479, %c0_480], %736 {strides = array<i32>} : memref<2x8x64xf32, #tpu.memory_space<vmem>>, vector<1x8x64xf32>,
      %c0_481 = arith.constant 0 : index
      %c0_482 = arith.constant 0 : index
      %737 = vector.load %arg9[%c0_481, %c0_482] : memref<8x64xf32, #tpu.memory_space<vmem>>, vector<8x64xf32>
      %c1 = arith.constant 1 : index
      %c0_483 = arith.constant 0 : index
      %c0_484 = arith.constant 0 : index
      %738 = vector.load %arg7[%c1, %c0_483, %c0_484] : memref<2x8x64xf32, #tpu.memory_space<vmem>>, vector<1x8x64xf32>
      %739 = vector.shape_cast %738 : vector<1x8x64xf32> to vector<8x64xf32>
      %740 = vector.shape_cast %737 : vector<8x64xf32> to vector<1x8x64xf32>
      tpu.vector_store %arg7[%c1, %c0_483, %c0_484], %740 {strides = array<i32>} : memref<2x8x64xf32, #tpu.memory_space<vmem>>, vector<1x8x64xf32>,
    } else {
    }
    return
  }
  func.func @transform_0(%arg0: i32) -> (i32, i32, i32) {
    %c0_i32 = arith.constant 0 : i32
    %c0_i32_0 = arith.constant 0 : i32
    %c0_i32_1 = arith.constant 0 : i32
    return %arg0, %c0_i32, %c0_i32_0 : i32, i32, i32
  }
  func.func @transform_1(%arg0: i32) -> (i32, i32, i32) {
    %c0_i32 = arith.constant 0 : i32
    %c0_i32_0 = arith.constant 0 : i32
    %c0_i32_1 = arith.constant 0 : i32
    %c0_i32_2 = arith.constant 0 : i32
    return %c0_i32, %c0_i32_0, %c0_i32_1 : i32, i32, i32
  }
  func.func @transform_2(%arg0: i32) -> (i32, i32) {
    %c0_i32 = arith.constant 0 : i32
    %c0_i32_0 = arith.constant 0 : i32
    %c0_i32_1 = arith.constant 0 : i32
    return %c0_i32, %c0_i32_0 : i32, i32
  }
  func.func @transform_3(%arg0: i32) -> (i32, i32) {
    %c0_i32 = arith.constant 0 : i32
    %c0_i32_0 = arith.constant 0 : i32
    %c0_i32_1 = arith.constant 0 : i32
    return %c0_i32, %c0_i32_0 : i32, i32
  }
  func.func @transform_4(%arg0: i32) -> (i32, i32) {
    %c0_i32 = arith.constant 0 : i32
    %c0_i32_0 = arith.constant 0 : i32
    %c0_i32_1 = arith.constant 0 : i32
    return %c0_i32, %c0_i32_0 : i32, i32
  }
  func.func @transform_5(%arg0: i32) -> (i32, i32, i32) {
    %c0_i32 = arith.constant 0 : i32
    %c0_i32_0 = arith.constant 0 : i32
    %c0_i32_1 = arith.constant 0 : i32
    return %arg0, %c0_i32, %c0_i32_0 : i32, i32, i32
  }
  func.func @transform_6(%arg0: i32) -> (i32, i32, i32) {
    %c0_i32 = arith.constant 0 : i32
    %c0_i32_0 = arith.constant 0 : i32
    %c0_i32_1 = arith.constant 0 : i32
    %c0_i32_2 = arith.constant 0 : i32
    return %c0_i32, %c0_i32_0, %c0_i32_1 : i32, i32, i32
  }
}

</mosaic_0001>

<bundles_post_ra>
// kernel: tpu_custom_call.1
= control target key start
LH: loop header
LB: loop body
LE: loop exit
PB: predicated region body
PF: predicated region fallthrough
CT: control target
= control target key end

     0   :  { %12 = vsyncpa [#allocation8], 0  ;;  %s3601_s0 = inlined_call_operand.hbm [shape: f32[16,8,64], index: 0, kind: input, shape index: {}]   ;;  %s3602_s1 = inlined_call_operand.vmem [shape: f32[2,8,64], index: 1, kind: input, shape index: {}]   ;;  %s3603_s2 = inlined_call_operand.vmem [shape: f32[8,32], index: 2, kind: input, shape index: {}]   ;;  %s3604_s3 = inlined_call_operand.vmem [shape: f32[64,32], index: 3, kind: input, shape index: {}]   ;;  %s3605_s4 = inlined_call_operand.vmem [shape: f32[1,32], index: 4, kind: input, shape index: {}]   ;;  %s3606_s5 = inlined_call_operand.hbm [shape: f32[16,8,128], index: 5, kind: output, shape index: {0}]   ;;  %s3607_s6 = inlined_call_operand.hbm [shape: f32[2,8,64], index: 6, kind: output, shape index: {1}]  }
   0x1   :  { %13 = vsyncpa [#allocation9], 0 }
   0x2   :  { %14 = vsyncpa [#allocation12], 0  ;;  %s2663_s21 = smov [#allocation7]  }
   0x3   :  { %s20_s22 = sshll.u32 %s2663_s21, 4  ;;  %s21_s22 = int_to_ptr.vmem [resolvable:$true] %s20_s22 }
   0x4   :  { %s2605_s23 = scalar_lea.vmem %s21_s22, 2048  ;;  %p2610_p1 = scmp.lt.s32.totalorder %s21_s22, %s21_s22 }
   0x5   :  { %p2606_p0 = scmp.ne.s32.totalorder %s21_s22, %s2605_s23  ;;  %p2611_p2 = scmp.lt.s32.totalorder %s2605_s23, %s2605_s23 }
   0x7   :  { %p2612_p3 = por %p2611_p2, %p2610_p1 }
   0x9   :  { %p2613_p4 = pnand %p2612_p3, %p2606_p0 }
   0xb   :  { %2616 = shalt.err (!%p2613_p4)
}
   0xc   :  { %s2664_s24 = smov 128   ;;  %s2665_s25 = smov 8  }
   0xd   :  { %26 = dma.hbm_to_vmem [thread:$0]  %s3601_s0, 2048, %s21_s22, [#allocation8], %s2664_s24, %s2664_s24, %s2665_s25  }
   0xe   :  { %2657 = dma.done.wait [#allocation8], 2048  }
   0xf   :  { %2658 = vsyncadd [#allocation8], 4294965248  ;;  %v282_v0 = vld [vmem:[%s3604_s3 + $0x38] sm:$0xff]  ;;  %v281_v1 = vld [vmem:[%s3604_s3 + $0x30] sm:$0xff]  ;;  %vm43_vm0 = vcmask 523264   ;;  %vm49_vm1 = vcmask 261120  }
  0x10   :  { %v280_v2 = vld [vmem:[%s3604_s3 + $0x28] sm:$0xff]  ;;  %v2722_v3 = vand.u32 4294901760, %v282_v0  ;;  %v2724_v4 = vand.u32 4294901760, %v281_v1  ;;  %v279_v6 = vld [vmem:[%s3604_s3 + $0x20] sm:$0xff]  ;;  %v278_v7 = vld [vmem:[%s3604_s3 + $0x18] sm:$0xff]  ;;  %s2668_s26 = smov 96  }
  0x11   :  { %v2726_v5 = vand.u32 4294901760, %v280_v2  ;;  %v277_v8 = vld [vmem:[%s3604_s3 + $0x10] sm:$0xff]  ;;  %v2737_v9 = vand.u32 4294901760, %v279_v6  ;;  %v2739_v10 = vand.u32 4294901760, %v278_v7  ;;  %v276_v12 = vld [vmem:[%s3604_s3 + $0x8] sm:$0xff]  ;;  %v42_v13 = vld [vmem:[%s3602_s1] sm:$0xff] }
  0x12   :  { %v2741_v11 = vand.u32 4294901760, %v277_v8  ;;  %2284 = vmatprep.subr.mxu0 %v2722_v3  ;;  %v2751_v14 = vsub.f32 %v282_v0, %v2722_v3  ;;  %v2754_v15 = vsub.f32 %v281_v1, %v2724_v4  ;;  %v2759_v17 = vand.u32 4294901760, %v276_v12  ;;  %v275_v18 = vld [vmem:[%s3604_s3] sm:$0xff]  ;;  %44 = vst.msk [vmem:[#allocation2] sm:$0xff] %vm43_vm0, %v42_v13  ;;  %v2106_v19 = vld [vmem:[%s3602_s1 + $0x8] sm:$0xff]  ;;  %v51_v29 = vld [vmem:[#allocation7] sm:$0xff] }
  0x13   :  { %v2757_v16 = vsub.f32 %v280_v2, %v2726_v5  ;;  %2285 = vmatpush3.msra.mxu0 %v2722_v3  ;;  %v2770_v20 = vsub.f32 %v279_v6, %v2737_v9  ;;  %v2773_v21 = vsub.f32 %v278_v7, %v2739_v10  ;;  %47 = vst.msk [vmem:[#allocation3] sm:$0xff] %vm43_vm0, %v2106_v19  ;;  %v2793_v27 = vand.u32 4294901760, %v275_v18  ;;  %v65_v57 = vld [vmem:[#allocation7 + $0x8] sm:$0xff]  ;;  %s2669_s27 = smov 32   ;;  %s2670_s28 = smov [#allocation11]  }
  0x14   :  { %v2776_v22 = vsub.f32 %v277_v8, %v2741_v11  ;;  %2286 = vmatprep.subr.mxu0 %v2724_v4  ;;  %v2781_v23 = vand.u32 4294901760, %v2751_v14  ;;  %v2784_v24 = vand.u32 4294901760, %v2754_v15  ;;  %v2796_v28 = vsub.f32 %v276_v12, %v2759_v17  ;;  %s2090_s29 = sshll.u32 %s2670_s28, 4  ;;  %s2091_s29 = int_to_ptr.vmem [resolvable:$true] %s2090_s29 }
  0x15   :  { %v2787_v25 = vand.u32 4294901760, %v2757_v16  ;;  %2287 = vmatpush3.msra.mxu0 %v2724_v4  ;;  %v2791_v26 = vand.u32 4294901760, %v2770_v20  ;;  %v2806_v33 = vand.u32 4294901760, %v2773_v21  ;;  %v52_v38 = vmul.f32 9.999998, %v51_v29  ;;  %s2617_s30 = scalar_lea.vmem %s2091_s29, 256  ;;  %p2622_p6 = scmp.lt.s32.totalorder %s2091_s29, %s2091_s29 }
  0x16   :  { %v591_v30 = vsub.f32 %v2751_v14, %v2781_v23  ;;  %2288 = vmatprep.subr.mxu0 %v2726_v5  ;;  %v598_v31 = vsub.f32 %v2754_v15, %v2784_v24  ;;  %v2810_v34 = vand.u32 4294901760, %v2776_v22  ;;  %v2817_v40 = vsub.f32 %v275_v18, %v2793_v27  ;;  %v78_v18 = vld [vmem:[#allocation7 + $0x10] sm:$0xff]  ;;  %p2618_p5 = scmp.ne.s32.totalorder %s2091_s29, %s2617_s30  ;;  %p2623_p7 = scmp.lt.s32.totalorder %s2617_s30, %s2617_s30 }
  0x17   :  { %v605_v32 = vsub.f32 %v2757_v16, %v2787_v25  ;;  %2289 = vmatpush3.msra.mxu0 %v2726_v5  ;;  %v612_v37 = vsub.f32 %v2770_v20, %v2791_v26  ;;  %v619_v42 = vsub.f32 %v2773_v21, %v2806_v33  ;;  %v2823_v43 = vand.u32 4294901760, %v2796_v28 }
  0x18   :  { %v592_v35 = vand.u32 4294901760, %v591_v30  ;;  %v599_v36 = vand.u32 4294901760, %v598_v31  ;;  %2290 = vmatprep.subr.mxu0 %v2737_v9  ;;  %v626_v46 = vsub.f32 %v2776_v22, %v2810_v34  ;;  %v2830_v50 = vand.u32 4294901760, %v2817_v40  ;;  %p2624_p8 = por %p2623_p7, %p2622_p6 }
  0x19   :  { %2291 = vmatpush3.msra.mxu0 %v2737_v9  ;;  %v53_v39 = vld [vmem:[#allocation2] sm:$0xff]  ;;  %v606_v41 = vand.u32 4294901760, %v605_v32  ;;  %v613_v47 = vand.u32 4294901760, %v612_v37  ;;  %v620_v51 = vand.u32 4294901760, %v619_v42  ;;  %v633_v52 = vsub.f32 %v2796_v28, %v2823_v43 }
  0x1a   :  { %2324 = vmatprep.subr.mxu1 %v592_v35  ;;  %2292 = vmatprep.subr.mxu0 %v2739_v10  ;;  %v54_v44 = vmul.f32 0.9, %v53_v39  ;;  %v56_v45 = vld [vmem:[#allocation3] sm:$0xff]  ;;  %v627_v54 = vand.u32 4294901760, %v626_v46  ;;  %v640_v56 = vsub.f32 %v2817_v40, %v2830_v50  ;;  %v66_v59 = vmul.f32 9.999998, %v65_v57  ;;  %p2625_p9 = pnand %p2624_p8, %p2618_p5 }
  0x1b   :  { %2325 = vmatpush3.msra.mxu1 %v592_v35  ;;  %2293 = vmatpush3.msra.mxu0 %v2739_v10  ;;  %v57_v49 = vmul.f32 0.95, %v56_v45  ;;  %v634_v58 = vand.u32 4294901760, %v633_v52  ;;  %v79_v29 = vmul.f32 9.999998, %v78_v18  ;;  %vm1567_vm11 = vcmask 785408  }
  0x1c   :  { %2326 = vmatprep.subr.mxu1 %v599_v36  ;;  %2294 = vmatprep.subr.mxu0 %v2741_v11  ;;  %v55_v48 = vadd.f32 %v54_v44, %v52_v38  ;;  %v641_v60 = vand.u32 4294901760, %v640_v56 }
  0x1d   :  { %2327 = vmatpush3.msra.mxu1 %v599_v36  ;;  %2295 = vmatpush3.msra.mxu0 %v2741_v11 }
  0x1e   :  { %2328 = vmatprep.subr.mxu1 %v606_v41  ;;  %2296 = vmatprep.subr.mxu0 %v2759_v17  ;;  %v58_v53 = vmul.f32 19.999996, %v55_v48  ;;  %61 = vst.msk [vmem:[#allocation2] sm:$0xff] %vm43_vm0, %v55_v48 }
  0x1f   :  { %2329 = vmatpush3.msra.mxu1 %v606_v41  ;;  %2297 = vmatpush3.msra.mxu0 %v2759_v17 }
  0x20   :  { %2330 = vmatprep.subr.mxu1 %v613_v47  ;;  %2298 = vmatprep.subr.mxu0 %v2793_v27  ;;  %v59_v55 = vadd.f32 %v58_v53, %v57_v49 }
  0x21   :  { %2331 = vmatpush3.msra.mxu1 %v613_v47  ;;  %2299 = vmatpush3.msra.mxu0 %v2793_v27  ;;  %v91_v47 = vld [vmem:[#allocation7 + $0x18] sm:$0xff] }
  0x22   :  { %2332 = vmatprep.subr.mxu1 %v620_v51  ;;  %62 = vst.msk [vmem:[#allocation3] sm:$0xff] %vm43_vm0, %v59_v55  ;;  %63 = vst.msk [vmem:[#allocation5] sm:$0xff] %vm43_vm0, %v59_v55  ;;  %2364 = vmatprep.subr.mxu0 %v2751_v14  ;;  %v92_v49 = vmul.f32 9.999998, %v91_v47 }
  0x23   :  { %2333 = vmatpush3.msra.mxu1 %v620_v51 }
  0x24   :  { %2334 = vmatprep.subr.mxu1 %v627_v54 }
  0x25   :  { %2335 = vmatpush3.msra.mxu1 %v627_v54  ;;  %v67_v61 = vld [vmem:[#allocation2] sm:$0xff] }
  0x26   :  { %2336 = vmatprep.subr.mxu1 %v634_v58  ;;  %v68_v62 = vmul.f32 0.9, %v67_v61 }
  0x27   :  { %2337 = vmatpush3.msra.mxu1 %v634_v58 }
  0x28   :  { %v69_v63 = vadd.f32 %v68_v62, %v66_v59  ;;  %2338 = vmatprep.subr.mxu1 %v641_v60 }
  0x29   :  { %v259_v0 = vld [vmem:[#allocation5] sm:$0xff]  ;;  %v70_v1 = vld [vmem:[#allocation3] sm:$0xff]  ;;  %2339 = vmatpush3.msra.mxu1 %v641_v60 }
  0x2a   :  { %v291_v2 = vsel %vm43_vm0, %v259_v0, 0  ;;  %v71_v6 = vmul.f32 0.95, %v70_v1  ;;  %v72_v7 = vmul.f32 19.999996, %v69_v63  ;;  %74 = vst.msk [vmem:[#allocation2] sm:$0xff] %vm43_vm0, %v69_v63  ;;  %2404 = vmatprep.subr.mxu1 %v2722_v3 }
  0x2b   :  { %v2848_v8 = vand.u32 4294901760, %v291_v2  ;;  %v104_v63 = vld [vmem:[#allocation7 + $0x20] sm:$0xff] }
  0x2c   :  { %v73_v12 = vadd.f32 %v72_v7, %v71_v6  ;;  %v105_v0 = vmul.f32 9.999998, %v104_v63 }
  0x2d   :  { %v2851_v13 = vsub.f32 %v291_v2, %v2848_v8  ;;  %2340 = vmatprep.mubr.f32.mxu1 %v2848_v8 }
  0x2e   :  { %75 = vst.msk [vmem:[#allocation3] sm:$0xff] %vm43_vm0, %v73_v12  ;;  %76 = vst.msk [vmem:[#allocation5 + $0x8] sm:$0xff] %vm43_vm0, %v73_v12 }
  0x2f   :  { %v413_v19 = vand.u32 4294901760, %v2851_v13 }
  0x31   :  { %v414_v30 = vsub.f32 %v2851_v13, %v413_v19  ;;  %v80_v31 = vld [vmem:[#allocation2] sm:$0xff] }
  0x32   :  { %v81_v32 = vmul.f32 0.9, %v80_v31 }
  0x33   :  { %v415_v35 = vand.u32 4294901760, %v414_v30 }
  0x34   :  { %v82_v36 = vadd.f32 %v81_v32, %v79_v29  ;;  %v117_v32 = vld [vmem:[#allocation7 + $0x28] sm:$0xff] }
  0x35   :  { %2300 = vmatprep.mubr.f32.mxu0 %v415_v35  ;;  %v260_v37 = vld [vmem:[#allocation5 + $0x8] sm:$0xff]  ;;  %v83_v38 = vld [vmem:[#allocation3] sm:$0xff]  ;;  %v118_v35 = vmul.f32 9.999998, %v117_v32 }
  0x36   :  { %v294_v39 = vsel %vm43_vm0, %v260_v37, 0  ;;  %v84_v41 = vmul.f32 0.95, %v83_v38  ;;  %v85_v42 = vmul.f32 19.999996, %v82_v36  ;;  %87 = vst.msk [vmem:[#allocation2] sm:$0xff] %vm43_vm0, %v82_v36 }
  0x37   :  { %v2862_v44 = vand.u32 4294901760, %v294_v39 }
  0x38   :  { %v86_v45 = vadd.f32 %v85_v42, %v84_v41 }
  0x39   :  { %v2865_v46 = vsub.f32 %v294_v39, %v2862_v44  ;;  %2341 = vmatmul.mubr.f32.vlgmr.msra.gmra.mxu1 %v2862_v44 }
  0x3a   :  { %88 = vst.msk [vmem:[#allocation3] sm:$0xff] %vm43_vm0, %v86_v45  ;;  %89 = vst.msk [vmem:[#allocation5 + $0x10] sm:$0xff] %vm43_vm0, %v86_v45  ;;  %2405 = vmatpush3.msra.mxu1 %v2722_v3 }
  0x3b   :  { %v423_v48 = vand.u32 4294901760, %v2865_v46  ;;  %2406 = vmatprep.subr.mxu1 %v2724_v4 }
  0x3c   :  { %2407 = vmatpush3.msra.mxu1 %v2724_v4 }
  0x3d   :  { %v424_v51 = vsub.f32 %v2865_v46, %v423_v48  ;;  %v93_v52 = vld [vmem:[#allocation2] sm:$0xff]  ;;  %2408 = vmatprep.subr.mxu1 %v2726_v5 }
  0x3e   :  { %v94_v53 = vmul.f32 0.9, %v93_v52  ;;  %2409 = vmatpush3.msra.mxu1 %v2726_v5 }
  0x3f   :  { %v425_v54 = vand.u32 4294901760, %v424_v51  ;;  %2410 = vmatprep.subr.mxu1 %v2737_v9 }
  0x40   :  { %v95_v55 = vadd.f32 %v94_v53, %v92_v49  ;;  %2411 = vmatpush3.msra.mxu1 %v2737_v9 }
  0x41   :  { %2301 = vmatmul.mubr.f32.vlgmr.msra.gmra.mxu0 %v425_v54  ;;  %v261_v56 = vld [vmem:[#allocation5 + $0x10] sm:$0xff]  ;;  %2412 = vmatprep.subr.mxu1 %v2739_v10 }
  0x42   :  { %v96_v57 = vld [vmem:[#allocation3] sm:$0xff]  ;;  %2365 = vmatpush3.msra.mxu0 %v2751_v14  ;;  %v297_v58 = vsel %vm43_vm0, %v261_v56, 0  ;;  %v98_v60 = vmul.f32 19.999996, %v95_v55  ;;  %100 = vst.msk [vmem:[#allocation2] sm:$0xff] %vm43_vm0, %v95_v55  ;;  %2413 = vmatpush3.msra.mxu1 %v2739_v10 }
  0x43   :  { %v97_v59 = vmul.f32 0.95, %v96_v57  ;;  %v2886_v61 = vand.u32 4294901760, %v297_v58  ;;  %2366 = vmatprep.subr.mxu0 %v2754_v15  ;;  %2414 = vmatprep.subr.mxu1 %v2741_v11  ;;  %v130_v54 = vld [vmem:[#allocation7 + $0x30] sm:$0xff] }
  0x44   :  { %2367 = vmatpush3.msra.mxu0 %v2754_v15  ;;  %2415 = vmatpush3.msra.mxu1 %v2741_v11  ;;  %v131_v56 = vmul.f32 9.999998, %v130_v54 }
  0x45   :  { %v99_v62 = vadd.f32 %v98_v60, %v97_v59  ;;  %v2893_v14 = vsub.f32 %v297_v58, %v2886_v61  ;;  %2343 = vmatprep.mubr.f32.mxu1 %v2886_v61  ;;  %2368 = vmatprep.subr.mxu0 %v2757_v16 }
  0x46   :  { %2369 = vmatpush3.msra.mxu0 %v2757_v16  ;;  %2416 = vmatprep.subr.mxu1 %v2759_v17 }
  0x47   :  { %101 = vst.msk [vmem:[#allocation3] sm:$0xff] %vm43_vm0, %v99_v62  ;;  %102 = vst.msk [vmem:[#allocation5 + $0x18] sm:$0xff] %vm43_vm0, %v99_v62  ;;  %v433_v15 = vand.u32 4294901760, %v2893_v14  ;;  %2370 = vmatprep.subr.mxu0 %v2770_v20  ;;  %2417 = vmatpush3.msra.mxu1 %v2759_v17 }
  0x48   :  { %2371 = vmatpush3.msra.mxu0 %v2770_v20  ;;  %2418 = vmatprep.subr.mxu1 %v2793_v27 }
  0x49   :  { %v434_v1 = vsub.f32 %v2893_v14, %v433_v15  ;;  %v106_v2 = vld [vmem:[#allocation2] sm:$0xff]  ;;  %2372 = vmatprep.subr.mxu0 %v2773_v21  ;;  %2419 = vmatpush3.msra.mxu1 %v2793_v27 }
  0x4a   :  { %v107_v16 = vmul.f32 0.9, %v106_v2  ;;  %2373 = vmatpush3.msra.mxu0 %v2773_v21  ;;  %2484 = vmatprep.subr.mxu1 %v2722_v3 }
  0x4b   :  { %v435_v6 = vand.u32 4294901760, %v434_v1  ;;  %2374 = vmatprep.subr.mxu0 %v2776_v22 }
  0x4c   :  { %v108_v20 = vadd.f32 %v107_v16, %v105_v0  ;;  %2375 = vmatpush3.msra.mxu0 %v2776_v22 }
  0x4d   :  { %2303 = vmatprep.mubr.f32.mxu0 %v435_v6  ;;  %2376 = vmatprep.subr.mxu0 %v2796_v28 }
  0x4e   :  { %v262_v7 = vld [vmem:[#allocation5 + $0x18] sm:$0xff]  ;;  %v109_v12 = vld [vmem:[#allocation3] sm:$0xff]  ;;  %v111_v30 = vmul.f32 19.999996, %v108_v20  ;;  %113 = vst.msk [vmem:[#allocation2] sm:$0xff] %vm43_vm0, %v108_v20  ;;  %2377 = vmatpush3.msra.mxu0 %v2796_v28 }
  0x4f   :  { %v300_v18 = vsel %vm43_vm0, %v262_v7, 0  ;;  %v110_v29 = vmul.f32 0.95, %v109_v12  ;;  %2378 = vmatprep.subr.mxu0 %v2817_v40  ;;  %v143_v12 = vld [vmem:[#allocation7 + $0x38] sm:$0xff] }
  0x50   :  { %v2919_v21 = vand.u32 4294901760, %v300_v18  ;;  %2379 = vmatpush3.msra.mxu0 %v2817_v40 }
  0x51   :  { %v112_v31 = vadd.f32 %v111_v30, %v110_v29  ;;  %2444 = vmatprep.subr.mxu0 %v2781_v23  ;;  %v144_v29 = vmul.f32 9.999998, %v143_v12 }
  0x52   :  { %v2924_v22 = vsub.f32 %v300_v18, %v2919_v21  ;;  %2344 = vmatmul.mubr.f32.gmra.mxu1 %v2919_v21 }
  0x53   :  { %114 = vst.msk [vmem:[#allocation3] sm:$0xff] %vm43_vm0, %v112_v31  ;;  %115 = vst.msk [vmem:[#allocation5 + $0x20] sm:$0xff] %vm43_vm0, %v112_v31 }
  0x54   :  { %v443_v28 = vand.u32 4294901760, %v2924_v22 }
  0x55   :  { %v119_v40 = vld [vmem:[#allocation2] sm:$0xff] }
  0x56   :  { %v444_v36 = vsub.f32 %v2924_v22, %v443_v28  ;;  %v120_v37 = vmul.f32 0.9, %v119_v40 }
  0x58   :  { %v445_v38 = vand.u32 4294901760, %v444_v36  ;;  %v121_v39 = vadd.f32 %v120_v37, %v118_v35 }
  0x5a   :  { %2304 = vmatmul.mubr.f32.gmra.mxu0 %v445_v38  ;;  %v263_v41 = vld [vmem:[#allocation5 + $0x20] sm:$0xff]  ;;  %v122_v42 = vld [vmem:[#allocation3] sm:$0xff]  ;;  %v124_v49 = vmul.f32 19.999996, %v121_v39  ;;  %126 = vst.msk [vmem:[#allocation2] sm:$0xff] %vm43_vm0, %v121_v39 }
  0x5b   :  { %v303_v45 = vsel %vm43_vm0, %v263_v41, 0  ;;  %v123_v47 = vmul.f32 0.95, %v122_v42 }
  0x5c   :  { %v2936_v51 = vand.u32 4294901760, %v303_v45 }
  0x5d   :  { %v125_v52 = vadd.f32 %v124_v49, %v123_v47  ;;  %v156_v49 = vld [vmem:[#allocation7 + $0x40] sm:$0xff] }
  0x5e   :  { %v2939_v53 = vsub.f32 %v303_v45, %v2936_v51  ;;  %2346 = vmatprep.mubr.f32.mxu1 %v2936_v51  ;;  %v157_v54 = vmul.f32 9.999998, %v156_v49 }
  0x5f   :  { %127 = vst.msk [vmem:[#allocation3] sm:$0xff] %vm43_vm0, %v125_v52  ;;  %128 = vst.msk [vmem:[#allocation5 + $0x28] sm:$0xff] %vm43_vm0, %v125_v52 }
  0x60   :  { %v453_v55 = vand.u32 4294901760, %v2939_v53 }
  0x61   :  { %v132_v58 = vld [vmem:[#allocation2] sm:$0xff] }
  0x62   :  { %v454_v57 = vsub.f32 %v2939_v53, %v453_v55  ;;  %v133_v59 = vmul.f32 0.9, %v132_v58 }
  0x64   :  { %v455_v60 = vand.u32 4294901760, %v454_v57  ;;  %v134_v62 = vadd.f32 %v133_v59, %v131_v56 }
  0x66   :  { %2306 = vmatprep.mubr.f32.mxu0 %v455_v60  ;;  %v264_v63 = vld [vmem:[#allocation5 + $0x28] sm:$0xff]  ;;  %v135_v0 = vld [vmem:[#allocation3] sm:$0xff]  ;;  %v137_v16 = vmul.f32 19.999996, %v134_v62  ;;  %139 = vst.msk [vmem:[#allocation2] sm:$0xff] %vm43_vm0, %v134_v62 }
  0x67   :  { %v306_v1 = vsel %vm43_vm0, %v264_v63, 0  ;;  %v136_v2 = vmul.f32 0.95, %v135_v0 }
  0x68   :  { %v2950_v6 = vand.u32 4294901760, %v306_v1 }
  0x69   :  { %v138_v20 = vadd.f32 %v137_v16, %v136_v2 }
  0x6a   :  { %v2953_v7 = vsub.f32 %v306_v1, %v2950_v6  ;;  %2347 = vmatmul.mubr.f32.gmra.mxu1 %v2950_v6 }
  0x6b   :  { %140 = vst.msk [vmem:[#allocation3] sm:$0xff] %vm43_vm0, %v138_v20  ;;  %141 = vst.msk [vmem:[#allocation5 + $0x30] sm:$0xff] %vm43_vm0, %v138_v20 }
  0x6c   :  { %v3615_v18 = vand.u32 4294901760, %v2953_v7 }
  0x6d   :  { %v145_v31 = vld [vmem:[#allocation2] sm:$0xff] }
  0x6e   :  { %v464_v30 = vsub.f32 %v2953_v7, %v3615_v18  ;;  %v146_v32 = vmul.f32 0.9, %v145_v31 }
  0x70   :  { %v465_v35 = vand.u32 4294901760, %v464_v30  ;;  %v147_v36 = vadd.f32 %v146_v32, %v144_v29  ;;  %v169_v29 = vld [vmem:[#allocation7 + $0x48] sm:$0xff] }
  0x71   :  { %v170_v31 = vmul.f32 9.999998, %v169_v29 }
  0x72   :  { %2307 = vmatmul.mubr.f32.gmra.mxu0 %v465_v35  ;;  %v265_v40 = vld [vmem:[#allocation5 + $0x30] sm:$0xff]  ;;  %v150_v41 = vmul.f32 19.999996, %v147_v36  ;;  %152 = vst.msk [vmem:[#allocation2] sm:$0xff] %vm43_vm0, %v147_v36 }
  0x73   :  { %v148_v37 = vld [vmem:[#allocation3] sm:$0xff]  ;;  %v309_v38 = vsel %vm43_vm0, %v265_v40, 0 }
  0x74   :  { %v149_v39 = vmul.f32 0.95, %v148_v37  ;;  %v2964_v42 = vand.u32 4294901760, %v309_v38 }
  0x76   :  { %v151_v45 = vadd.f32 %v150_v41, %v149_v39  ;;  %v2967_v47 = vsub.f32 %v309_v38, %v2964_v42  ;;  %2349 = vmatprep.mubr.f32.mxu1 %v2964_v42 }
  0x78   :  { %153 = vst.msk [vmem:[#allocation3] sm:$0xff] %vm43_vm0, %v151_v45  ;;  %154 = vst.msk [vmem:[#allocation5 + $0x38] sm:$0xff] %vm43_vm0, %v151_v45  ;;  %v3614_v52 = vand.u32 4294901760, %v2967_v47 }
  0x79   :  { %v158_v57 = vld [vmem:[#allocation2] sm:$0xff] }
  0x7a   :  { %v474_v56 = vsub.f32 %v2967_v47, %v3614_v52  ;;  %v159_v58 = vmul.f32 0.9, %v158_v57 }
  0x7c   :  { %v475_v59 = vand.u32 4294901760, %v474_v56  ;;  %v160_v60 = vadd.f32 %v159_v58, %v157_v54  ;;  %v182_v58 = vld [vmem:[#allocation7 + $0x50] sm:$0xff] }
  0x7e   :  { %2309 = vmatprep.mubr.f32.mxu0 %v475_v59  ;;  %v163_v2 = vmul.f32 19.999996, %v160_v60  ;;  %165 = vst.msk [vmem:[#allocation2] sm:$0xff] %vm43_vm0, %v160_v60  ;;  %v183_v60 = vmul.f32 9.999998, %v182_v58 }
  0x7f   :  { %v266_v62 = vld [vmem:[#allocation5 + $0x38] sm:$0xff]  ;;  %v161_v63 = vld [vmem:[#allocation3] sm:$0xff] }
  0x80   :  { %v312_v0 = vsel %vm43_vm0, %v266_v62, 0  ;;  %v162_v1 = vmul.f32 0.95, %v161_v63 }
  0x81   :  { %v2978_v16 = vand.u32 4294901760, %v312_v0 }
  0x82   :  { %v164_v20 = vadd.f32 %v163_v2, %v162_v1 }
  0x83   :  { %v2981_v12 = vsub.f32 %v312_v0, %v2978_v16  ;;  %2350 = vmatmul.mubr.f32.gmra.mxu1 %v2978_v16 }
  0x84   :  { %166 = vst.msk [vmem:[#allocation3] sm:$0xff] %vm43_vm0, %v164_v20  ;;  %167 = vst.msk [vmem:[#allocation5 + $0x40] sm:$0xff] %vm43_vm0, %v164_v20 }
  0x85   :  { %v3612_v30 = vand.u32 4294901760, %v2981_v12  ;;  %v171_v35 = vld [vmem:[#allocation2] sm:$0xff] }
  0x86   :  { %v172_v36 = vmul.f32 0.9, %v171_v35 }
  0x87   :  { %v484_v32 = vsub.f32 %v2981_v12, %v3612_v30 }
  0x88   :  { %v173_v37 = vadd.f32 %v172_v36, %v170_v31 }
  0x89   :  { %v485_v40 = vand.u32 4294901760, %v484_v32 }
  0x8a   :  { %v176_v49 = vmul.f32 19.999996, %v173_v37  ;;  %178 = vst.msk [vmem:[#allocation2] sm:$0xff] %vm43_vm0, %v173_v37 }
  0x8b   :  { %2310 = vmatmul.mubr.f32.gmra.mxu0 %v485_v40  ;;  %v267_v38 = vld [vmem:[#allocation5 + $0x40] sm:$0xff]  ;;  %v174_v39 = vld [vmem:[#allocation3] sm:$0xff] }
  0x8c   :  { %v315_v41 = vsel %vm43_vm0, %v267_v38, 0  ;;  %v175_v45 = vmul.f32 0.95, %v174_v39  ;;  %v195_v38 = vld [vmem:[#allocation7 + $0x58] sm:$0xff] }
  0x8d   :  { %v2992_v54 = vand.u32 4294901760, %v315_v41 }
  0x8e   :  { %v177_v56 = vadd.f32 %v176_v49, %v175_v45 }
  0x8f   :  { %v2995_v57 = vsub.f32 %v315_v41, %v2992_v54  ;;  %2352 = vmatprep.mubr.f32.mxu1 %v2992_v54  ;;  %v196_v41 = vmul.f32 9.999998, %v195_v38 }
  0x90   :  { %179 = vst.msk [vmem:[#allocation3] sm:$0xff] %vm43_vm0, %v177_v56  ;;  %180 = vst.msk [vmem:[#allocation5 + $0x48] sm:$0xff] %vm43_vm0, %v177_v56 }
  0x91   :  { %v3611_v59 = vand.u32 4294901760, %v2995_v57  ;;  %v184_v63 = vld [vmem:[#allocation2] sm:$0xff] }
  0x92   :  { %v185_v0 = vmul.f32 0.9, %v184_v63 }
  0x93   :  { %v494_v62 = vsub.f32 %v2995_v57, %v3611_v59 }
  0x94   :  { %v186_v2 = vadd.f32 %v185_v0, %v183_v60 }
  0x95   :  { %v495_v1 = vand.u32 4294901760, %v494_v62 }
  0x96   :  { %v189_v35 = vmul.f32 19.999996, %v186_v2  ;;  %191 = vst.msk [vmem:[#allocation2] sm:$0xff] %vm43_vm0, %v186_v2 }
  0x97   :  { %2312 = vmatprep.mubr.f32.mxu0 %v495_v1  ;;  %v268_v20 = vld [vmem:[#allocation5 + $0x48] sm:$0xff]  ;;  %v187_v29 = vld [vmem:[#allocation3] sm:$0xff] }
  0x98   :  { %v318_v31 = vsel %vm43_vm0, %v268_v20, 0  ;;  %v188_v32 = vmul.f32 0.95, %v187_v29 }
  0x99   :  { %v3006_v36 = vand.u32 4294901760, %v318_v31 }
  0x9a   :  { %v190_v40 = vadd.f32 %v189_v35, %v188_v32  ;;  %v208_v32 = vld [vmem:[#allocation7 + $0x60] sm:$0xff] }
  0x9b   :  { %v3009_v37 = vsub.f32 %v318_v31, %v3006_v36  ;;  %2353 = vmatmul.mubr.f32.gmra.mxu1 %v3006_v36 }
  0x9c   :  { %192 = vst.msk [vmem:[#allocation3] sm:$0xff] %vm43_vm0, %v190_v40  ;;  %193 = vst.msk [vmem:[#allocation5 + $0x50] sm:$0xff] %vm43_vm0, %v190_v40  ;;  %v209_v40 = vmul.f32 9.999998, %v208_v32  ;;  %v221_v32 = vld [vmem:[#allocation7 + $0x68] sm:$0xff] }
  0x9d   :  { %v3609_v39 = vand.u32 4294901760, %v3009_v37  ;;  %v197_v49 = vld [vmem:[#allocation2] sm:$0xff] }
  0x9e   :  { %v198_v56 = vmul.f32 0.9, %v197_v49 }
  0x9f   :  { %v504_v45 = vsub.f32 %v3009_v37, %v3609_v39 }
  0xa0   :  { %v199_v60 = vadd.f32 %v198_v56, %v196_v41 }
  0xa1   :  { %v505_v58 = vand.u32 4294901760, %v504_v45 }
  0xa2   :  { %v202_v2 = vmul.f32 19.999996, %v199_v60  ;;  %204 = vst.msk [vmem:[#allocation2] sm:$0xff] %vm43_vm0, %v199_v60 }
  0xa3   :  { %2313 = vmatmul.mubr.f32.gmra.mxu0 %v505_v58  ;;  %v269_v62 = vld [vmem:[#allocation5 + $0x50] sm:$0xff] }
  0xa4   :  { %v200_v63 = vld [vmem:[#allocation3] sm:$0xff]  ;;  %v321_v0 = vsel %vm43_vm0, %v269_v62, 0 }
  0xa5   :  { %v201_v1 = vmul.f32 0.95, %v200_v63  ;;  %v3020_v20 = vand.u32 4294901760, %v321_v0 }
  0xa7   :  { %v203_v29 = vadd.f32 %v202_v2, %v201_v1  ;;  %v3023_v31 = vsub.f32 %v321_v0, %v3020_v20  ;;  %2355 = vmatprep.mubr.f32.mxu1 %v3020_v20 }
  0xa9   :  { %205 = vst.msk [vmem:[#allocation3] sm:$0xff] %vm43_vm0, %v203_v29  ;;  %206 = vst.msk [vmem:[#allocation5 + $0x58] sm:$0xff] %vm43_vm0, %v203_v29  ;;  %v3608_v35 = vand.u32 4294901760, %v3023_v31  ;;  %v210_v41 = vld [vmem:[#allocation2] sm:$0xff] }
  0xaa   :  { %v211_v45 = vmul.f32 0.9, %v210_v41 }
  0xab   :  { %v514_v38 = vsub.f32 %v3023_v31, %v3608_v35 }
  0xac   :  { %v212_v56 = vadd.f32 %v211_v45, %v209_v40 }
  0xad   :  { %v515_v49 = vand.u32 4294901760, %v514_v38  ;;  %v222_v38 = vmul.f32 9.999998, %v221_v32 }
  0xae   :  { %v215_v0 = vmul.f32 19.999996, %v212_v56  ;;  %217 = vst.msk [vmem:[#allocation2] sm:$0xff] %vm43_vm0, %v212_v56 }
  0xaf   :  { %2315 = vmatprep.mubr.f32.mxu0 %v515_v49 }
  0xb0   :  { %v270_v58 = vld [vmem:[#allocation5 + $0x58] sm:$0xff]  ;;  %v213_v60 = vld [vmem:[#allocation3] sm:$0xff] }
  0xb1   :  { %v324_v62 = vsel %vm43_vm0, %v270_v58, 0  ;;  %v214_v63 = vmul.f32 0.95, %v213_v60 }
  0xb2   :  { %v3034_v1 = vand.u32 4294901760, %v324_v62 }
  0xb3   :  { %v216_v2 = vadd.f32 %v215_v0, %v214_v63 }
  0xb4   :  { %v3037_v29 = vsub.f32 %v324_v62, %v3034_v1  ;;  %2356 = vmatmul.mubr.f32.gmra.mxu1 %v3034_v1 }
  0xb5   :  { %218 = vst.msk [vmem:[#allocation3] sm:$0xff] %vm43_vm0, %v216_v2  ;;  %219 = vst.msk [vmem:[#allocation5 + $0x60] sm:$0xff] %vm43_vm0, %v216_v2  ;;  %v223_v45 = vld [vmem:[#allocation2] sm:$0xff] }
  0xb6   :  { %v3610_v40 = vand.u32 4294901760, %v3037_v29  ;;  %v224_v49 = vmul.f32 0.9, %v223_v45  ;;  %v234_v45 = vld [vmem:[#allocation7 + $0x70] sm:$0xff] }
  0xb8   :  { %v524_v41 = vsub.f32 %v3037_v29, %v3610_v40  ;;  %v225_v58 = vadd.f32 %v224_v49, %v222_v38 }
  0xba   :  { %v525_v56 = vand.u32 4294901760, %v524_v41  ;;  %v228_v35 = vmul.f32 19.999996, %v225_v58  ;;  %230 = vst.msk [vmem:[#allocation2] sm:$0xff] %vm43_vm0, %v225_v58  ;;  %v235_v41 = vmul.f32 9.999998, %v234_v45 }
  0xbc   :  { %2316 = vmatmul.mubr.f32.gmra.mxu0 %v525_v56  ;;  %v271_v60 = vld [vmem:[#allocation5 + $0x60] sm:$0xff]  ;;  %v226_v62 = vld [vmem:[#allocation3] sm:$0xff] }
  0xbd   :  { %v327_v63 = vsel %vm43_vm0, %v271_v60, 0  ;;  %v227_v0 = vmul.f32 0.95, %v226_v62 }
  0xbe   :  { %v3048_v2 = vand.u32 4294901760, %v327_v63 }
  0xbf   :  { %v229_v32 = vadd.f32 %v228_v35, %v227_v0 }
  0xc0   :  { %v3051_v39 = vsub.f32 %v327_v63, %v3048_v2  ;;  %2358 = vmatprep.mubr.f32.mxu1 %v3048_v2 }
  0xc1   :  { %231 = vst.msk [vmem:[#allocation3] sm:$0xff] %vm43_vm0, %v229_v32  ;;  %232 = vst.msk [vmem:[#allocation5 + $0x68] sm:$0xff] %vm43_vm0, %v229_v32  ;;  %v236_v56 = vld [vmem:[#allocation2] sm:$0xff] }
  0xc2   :  { %v3613_v38 = vand.u32 4294901760, %v3051_v39  ;;  %v237_v58 = vmul.f32 0.9, %v236_v56  ;;  %v247_v56 = vld [vmem:[#allocation7 + $0x78] sm:$0xff] }
  0xc4   :  { %v534_v49 = vsub.f32 %v3051_v39, %v3613_v38  ;;  %v238_v60 = vadd.f32 %v237_v58, %v235_v41 }
  0xc6   :  { %v535_v35 = vand.u32 4294901760, %v534_v49  ;;  %v241_v59 = vmul.f32 19.999996, %v238_v60  ;;  %243 = vst.msk [vmem:[#allocation2] sm:$0xff] %vm43_vm0, %v238_v60  ;;  %v248_v49 = vmul.f32 9.999998, %v247_v56 }
  0xc8   :  { %2318 = vmatprep.mubr.f32.mxu0 %v535_v35  ;;  %v272_v62 = vld [vmem:[#allocation5 + $0x68] sm:$0xff]  ;;  %v239_v63 = vld [vmem:[#allocation3] sm:$0xff] }
  0xc9   :  { %v330_v0 = vsel %vm43_vm0, %v272_v62, 0  ;;  %v240_v40 = vmul.f32 0.95, %v239_v63 }
  0xca   :  { %v3062_v32 = vand.u32 4294901760, %v330_v0 }
  0xcb   :  { %v242_v45 = vadd.f32 %v241_v59, %v240_v40 }
  0xcc   :  { %v3065_v30 = vsub.f32 %v330_v0, %v3062_v32  ;;  %2359 = vmatmul.mubr.f32.gmra.mxu1 %v3062_v32 }
  0xcd   :  { %244 = vst.msk [vmem:[#allocation3] sm:$0xff] %vm43_vm0, %v242_v45  ;;  %245 = vst.msk [vmem:[#allocation5 + $0x70] sm:$0xff] %vm43_vm0, %v242_v45  ;;  %v249_v35 = vld [vmem:[#allocation2] sm:$0xff] }
  0xce   :  { %v543_v41 = vand.u32 4294901760, %v3065_v30  ;;  %v250_v60 = vmul.f32 0.9, %v249_v35 }
  0xd0   :  { %v544_v58 = vsub.f32 %v3065_v30, %v543_v41  ;;  %v251_v40 = vadd.f32 %v250_v60, %v248_v49 }
  0xd2   :  { %v545_v59 = vand.u32 4294901760, %v544_v58  ;;  %v254_v52 = vmul.f32 19.999996, %v251_v40  ;;  %256 = vst.msk [vmem:[#allocation2] sm:$0xff] %vm43_vm0, %v251_v40 }
  0xd4   :  { %2319 = vmatmul.mubr.f32.gmra.mxu0 %v545_v59  ;;  %v273_v62 = vld [vmem:[#allocation5 + $0x70] sm:$0xff] }
  0xd5   :  { %v252_v63 = vld [vmem:[#allocation3] sm:$0xff]  ;;  %v333_v0 = vsel %vm43_vm0, %v273_v62, 0 }
  0xd6   :  { %v253_v38 = vmul.f32 0.95, %v252_v63  ;;  %v3076_v45 = vand.u32 4294901760, %v333_v0 }
  0xd8   :  { %v255_v56 = vadd.f32 %v254_v52, %v253_v38  ;;  %v3079_v18 = vsub.f32 %v333_v0, %v3076_v45  ;;  %2361 = vmatprep.mubr.f32.mxu1 %v3076_v45 }
  0xda   :  { %258 = vst.msk [vmem:[#allocation5 + $0x78] sm:$0xff] %vm43_vm0, %v255_v56  ;;  %257 = vst.msk [vmem:[#allocation3] sm:$0xff] %vm43_vm0, %v255_v56  ;;  %v553_v49 = vand.u32 4294901760, %v3079_v18 }
  0xdc   :  { %v554_v58 = vsub.f32 %v3079_v18, %v553_v49 }
  0xde   :  { %v555_v35 = vand.u32 4294901760, %v554_v58 }
  0xe0   :  { %2321 = vmatprep.mubr.f32.mxu0 %v555_v35 }
  0xe1   :  { %v274_v60 = vld [vmem:[#allocation5 + $0x78] sm:$0xff] }
  0xe2   :  { %v336_v59 = vsel %vm43_vm0, %v274_v60, 0 }
  0xe3   :  { %v3087_v40 = vand.u32 4294901760, %v336_v59 }
  0xe5   :  { %v3090_v52 = vsub.f32 %v336_v59, %v3087_v40  ;;  %2362 = vmatmul.mubr.f32.gmra.mxu1 %v3087_v40 }
  0xe6   :  { %2420 = vmatprep.mubr.f32.mxu1 %v413_v19 }
  0xe7   :  { %v563_v38 = vand.u32 4294901760, %v3090_v52 }
  0xe9   :  { %v564_v62 = vsub.f32 %v3090_v52, %v563_v38  ;;  %2421 = vmatmul.mubr.f32.vlgmr.msra.gmra.mxu1 %v423_v48 }
  0xea   :  { %2485 = vmatpush3.msra.mxu1 %v2722_v3  ;;  %2423 = vmatprep.mubr.f32.mxu1 %v433_v15  ;;  %v3616_v3 = vand.u32 4294901760, %v2953_v7 }
  0xeb   :  { %v565_v63 = vand.u32 4294901760, %v564_v62  ;;  %2486 = vmatprep.subr.mxu1 %v2724_v4  ;;  %v3288_v62 = vld [vmem:[%s3605_s4] ss:$0 sm:$0xff]  ;;  %s2666_s4 = smov 64  }
  0xec   :  { %2487 = vmatpush3.msra.mxu1 %v2724_v4  ;;  %v3617_v4 = vand.u32 4294901760, %v2967_v47 }
  0xed   :  { %2322 = vmatmul.mubr.f32.gmra.mxu0 %v565_v63  ;;  %2424 = vmatmul.mubr.f32.gmra.mxu1 %v443_v28 }
  0xee   :  { %2380 = vmatprep.mubr.f32.mxu0 %v2851_v13  ;;  %2426 = vmatprep.mubr.f32.mxu1 %v453_v55 }
  0xef   :  { %2488 = vmatprep.subr.mxu1 %v2726_v5 }
  0xf0   :  { %2489 = vmatpush3.msra.mxu1 %v2726_v5  ;;  %v3618_v5 = vand.u32 4294901760, %v2981_v12 }
  0xf1   :  { %2381 = vmatmul.mubr.f32.vlgmr.msra.gmra.mxu0 %v2865_v46  ;;  %2427 = vmatmul.mubr.f32.gmra.mxu1 %v3616_v3 }
  0xf2   :  { %2445 = vmatpush3.msra.mxu0 %v2781_v23  ;;  %2383 = vmatprep.mubr.f32.mxu0 %v2893_v14  ;;  %v3619_v23 = vand.u32 4294901760, %v2995_v57 }
  0xf3   :  { %2446 = vmatprep.subr.mxu0 %v2784_v24  ;;  %2429 = vmatprep.mubr.f32.mxu1 %v3617_v4 }
  0xf4   :  { %2447 = vmatpush3.msra.mxu0 %v2784_v24  ;;  %2490 = vmatprep.subr.mxu1 %v2737_v9  ;;  %v3620_v24 = vand.u32 4294901760, %v3009_v37 }
  0xf5   :  { %2384 = vmatmul.mubr.f32.gmra.mxu0 %v2924_v22  ;;  %2448 = vmatprep.subr.mxu0 %v2787_v25 }
  0xf6   :  { %2386 = vmatprep.mubr.f32.mxu0 %v2939_v53  ;;  %2449 = vmatpush3.msra.mxu0 %v2787_v25  ;;  %v3621_v25 = vand.u32 4294901760, %v3023_v31 }
  0xf7   :  { %2450 = vmatprep.subr.mxu0 %v2791_v26  ;;  %2430 = vmatmul.mubr.f32.gmra.mxu1 %v3618_v5 }
  0xf8   :  { %2451 = vmatpush3.msra.mxu0 %v2791_v26  ;;  %2491 = vmatpush3.msra.mxu1 %v2737_v9  ;;  %v3622_v9 = vand.u32 4294901760, %v3037_v29  ;;  %v3623_v26 = vand.u32 4294901760, %v3051_v39 }
  0xf9   :  { %2387 = vmatmul.mubr.f32.gmra.mxu0 %v2953_v7  ;;  %2432 = vmatprep.mubr.f32.mxu1 %v3619_v23 }
  0xfa   :  { %2389 = vmatprep.mubr.f32.mxu0 %v2967_v47  ;;  %2452 = vmatprep.subr.mxu0 %v2806_v33 }
  0xfb   :  { %2433 = vmatmul.mubr.f32.gmra.mxu1 %v3620_v24  ;;  %2453 = vmatpush3.msra.mxu0 %v2806_v33 }
  0xfc   :  { %2492 = vmatprep.subr.mxu1 %v2739_v10  ;;  %2435 = vmatprep.mubr.f32.mxu1 %v3621_v25 }
  0xfd   :  { %2390 = vmatmul.mubr.f32.gmra.mxu0 %v2981_v12  ;;  %2493 = vmatpush3.msra.mxu1 %v2739_v10  ;;  %v48_v10 = vld [vmem:[%s3603_s2] sm:$0xff] }
  0xfe   :  { %2392 = vmatprep.mubr.f32.mxu0 %v2995_v57  ;;  %2454 = vmatprep.subr.mxu0 %v2810_v34  ;;  %50 = vst.msk [vmem:[#allocation4] sm:$0xff] %vm49_vm1, %v48_v10 }
  0xff   :  { %2436 = vmatmul.mubr.f32.gmra.mxu1 %v3622_v9  ;;  %2455 = vmatpush3.msra.mxu0 %v2810_v34 }
 0x100   :  { %2494 = vmatprep.subr.mxu1 %v2741_v11  ;;  %2438 = vmatprep.mubr.f32.mxu1 %v3623_v26 }
 0x101   :  { %2393 = vmatmul.mubr.f32.gmra.mxu0 %v3009_v37  ;;  %2495 = vmatpush3.msra.mxu1 %v2741_v11  ;;  %v3205_v11 = vpop.f32.mrf.mxu1  ;;  %v2302_v33 = vpop.f32.mrf.mxu0 }
 0x102   :  { %2395 = vmatprep.mubr.f32.mxu0 %v3023_v31  ;;  %2456 = vmatprep.subr.mxu0 %v2823_v43  ;;  %v428_v23 = vadd.f32 %v2302_v33, %v3288_v62 }
 0x103   :  { %2439 = vmatmul.mubr.f32.gmra.mxu1 %v543_v41  ;;  %2457 = vmatpush3.msra.mxu0 %v2823_v43  ;;  %v417_v43 = vpop.f32.mrf.mxu0 }
 0x104   :  { %2496 = vmatprep.subr.mxu1 %v2759_v17  ;;  %2441 = vmatprep.mubr.f32.mxu1 %v553_v49  ;;  %v418_v9 = vadd.f32 %v3288_v62, %v417_v43 }
 0x105   :  { %2396 = vmatmul.mubr.f32.gmra.mxu0 %v3037_v29  ;;  %2497 = vmatpush3.msra.mxu1 %v2759_v17  ;;  %v3207_v17 = vpop.f32.mrf.mxu1 }
 0x106   :  { %2398 = vmatprep.mubr.f32.mxu0 %v3051_v39  ;;  %2458 = vmatprep.subr.mxu0 %v2830_v50 }
 0x107   :  { %2442 = vmatmul.mubr.f32.gmra.mxu1 %v563_v38  ;;  %2459 = vmatpush3.msra.mxu0 %v2830_v50 }
 0x108   :  { %2498 = vmatprep.subr.mxu1 %v2793_v27  ;;  %2500 = vmatprep.mubr.f32.mxu1 %v2848_v8 }
 0x109   :  { %2399 = vmatmul.mubr.f32.gmra.mxu0 %v3065_v30  ;;  %2499 = vmatpush3.msra.mxu1 %v2793_v27 }
 0x10a   :  { %2401 = vmatprep.mubr.f32.mxu0 %v3079_v18 }
 0x10b   :  { %2501 = vmatmul.mubr.f32.vlgmr.msra.gmra.mxu1 %v2862_v44 }
 0x10c   :  { %2503 = vmatprep.mubr.f32.mxu1 %v2886_v61 }
 0x10d   :  { %2402 = vmatmul.mubr.f32.gmra.mxu0 %v3090_v52 }
 0x10e   :  { %2460 = vmatprep.mubr.f32.mxu0 %v2848_v8 }
 0x10f   :  { %2504 = vmatmul.mubr.f32.gmra.mxu1 %v2919_v21 }
 0x110   :  { %2506 = vmatprep.mubr.f32.mxu1 %v2936_v51 }
 0x111   :  { %2461 = vmatmul.mubr.f32.vlgmr.msra.gmra.mxu0 %v2862_v44 }
 0x112   :  { %2463 = vmatprep.mubr.f32.mxu0 %v2886_v61  ;;  %v3209_v27 = vpop.f32.mrf.mxu1 }
 0x113   :  { %2507 = vmatmul.mubr.f32.gmra.mxu1 %v2950_v6 }
 0x114   :  { %2509 = vmatprep.mubr.f32.mxu1 %v2964_v42  ;;  %v3211_v34 = vpop.f32.mrf.mxu1 }
 0x115   :  { %2464 = vmatmul.mubr.f32.gmra.mxu0 %v2919_v21 }
 0x116   :  { %2466 = vmatprep.mubr.f32.mxu0 %v2936_v51 }
 0x117   :  { %2510 = vmatmul.mubr.f32.gmra.mxu1 %v2978_v16 }
 0x118   :  { %2512 = vmatprep.mubr.f32.mxu1 %v2992_v54 }
 0x119   :  { %2467 = vmatmul.mubr.f32.gmra.mxu0 %v2950_v6 }
 0x11a   :  { %2469 = vmatprep.mubr.f32.mxu0 %v2964_v42  ;;  %v2305_v8 = vpop.f32.mrf.mxu0 }
 0x11b   :  { %2513 = vmatmul.mubr.f32.gmra.mxu1 %v3006_v36 }
 0x11c   :  { %2515 = vmatprep.mubr.f32.mxu1 %v3020_v20  ;;  %v437_v19 = vpop.f32.mrf.mxu0 }
 0x11d   :  { %2470 = vmatmul.mubr.f32.gmra.mxu0 %v2978_v16  ;;  %v438_v33 = vadd.f32 %v3288_v62, %v437_v19 }
 0x11e   :  { %2472 = vmatprep.mubr.f32.mxu0 %v2992_v54 }
 0x11f   :  { %2516 = vmatmul.mubr.f32.gmra.mxu1 %v3034_v1 }
 0x120   :  { %2518 = vmatprep.mubr.f32.mxu1 %v3048_v2 }
 0x121   :  { %2473 = vmatmul.mubr.f32.gmra.mxu0 %v3006_v36 }
 0x122   :  { %2475 = vmatprep.mubr.f32.mxu0 %v3020_v20 }
 0x123   :  { %2519 = vmatmul.mubr.f32.gmra.mxu1 %v3062_v32 }
 0x124   :  { %2521 = vmatprep.mubr.f32.mxu1 %v3076_v45 }
 0x125   :  { %2476 = vmatmul.mubr.f32.gmra.mxu0 %v3034_v1 }
 0x126   :  { %2478 = vmatprep.mubr.f32.mxu0 %v3048_v2 }
 0x127   :  { %2522 = vmatmul.mubr.f32.gmra.mxu1 %v3087_v40 }
 0x129   :  { %2479 = vmatmul.mubr.f32.gmra.mxu0 %v3062_v32 }
 0x12a   :  { %2481 = vmatprep.mubr.f32.mxu0 %v3076_v45  ;;  %v3213_v50 = vpop.f32.mrf.mxu1 }
 0x12c   :  { %v3215_v13 = vpop.f32.mrf.mxu1 }
 0x12d   :  { %2482 = vmatmul.mubr.f32.gmra.mxu0 %v3087_v40 }
 0x132   :  { %v3219_v46 = vpop.f32.mrf.mxu0 }
 0x134   :  { %v3223_v61 = vpop.f32.mrf.mxu0 }
 0x143   :  { %v3217_v44 = vpop.f32.mrf.mxu1 }
 0x145   :  { %v3221_v48 = vpop.f32.mrf.mxu1 }
 0x14b   :  { %v3227_v15 = vpop.f32.mrf.mxu0 }
 0x14d   :  { %v3231_v22 = vpop.f32.mrf.mxu0 }
 0x15b   :  { %v3225_v14 = vpop.f32.mrf.mxu1 }
 0x15d   :  { %v3229_v21 = vpop.f32.mrf.mxu1 }
 0x163   :  { %v3235_v51 = vpop.f32.mrf.mxu0 }
 0x165   :  { %v3239_v55 = vpop.f32.mrf.mxu0 }
 0x174   :  { %v3233_v28 = vpop.f32.mrf.mxu1 }
 0x176   :  { %v3237_v53 = vpop.f32.mrf.mxu1 }
 0x17c   :  { %v3243_v7 = vpop.f32.mrf.mxu0 }
 0x17e   :  { %v3247_v42 = vpop.f32.mrf.mxu0 }
 0x18c   :  { %v3241_v6 = vpop.f32.mrf.mxu1 }
 0x18e   :  { %v3245_v18 = vpop.f32.mrf.mxu1 }
 0x194   :  { %v3251_v16 = vpop.f32.mrf.mxu0 }
 0x196   :  { %v3255_v54 = vpop.f32.mrf.mxu0 }
 0x1a5   :  { %v3249_v47 = vpop.f32.mrf.mxu1 }
 0x1a6   :  { %3624 = vst [vmem:[#allocation16_spill] sm:$0xff] %v3249_v47 }
 0x1a7   :  { %v3253_v12 = vpop.f32.mrf.mxu1 }
 0x1a8   :  { %3625 = vst [vmem:[#allocation17_spill] sm:$0xff] %v3253_v12  ;;  %v685_v12 = vadd.f32 %v3205_v11, %v428_v23  ;;  %v458_v11 = vadd.f32 %v3288_v62, %v3223_v61  ;;  %v478_v61 = vadd.f32 %v3288_v62, %v3231_v22 }
 0x1a9   :  { %v2422_v30 = vpop.f32.mrf.mxu1 }
 0x1ab   :  { %v1042_v57 = vpop.f32.mrf.mxu1 }
 0x1ad   :  { %v3257_v36 = vpop.f32.mrf.mxu0  ;;  %v2425_v37 = vpop.f32.mrf.mxu1 }
 0x1af   :  { %v3259_v39 = vpop.f32.mrf.mxu0  ;;  %v3261_v20 = vpop.f32.mrf.mxu1 }
 0x1b0   :  { %3626 = vst [vmem:[#allocation18_spill] sm:$0xff] %v3259_v39 }
 0x1b1   :  { %v2382_v31 = vpop.f32.mrf.mxu0  ;;  %v3263_v1 = vpop.f32.mrf.mxu1 }
 0x1b3   :  { %v856_v29 = vpop.f32.mrf.mxu0  ;;  %v3265_v2 = vpop.f32.mrf.mxu1 }
 0x1b5   :  { %v2385_v32 = vpop.f32.mrf.mxu0 }
 0x1b7   :  { %v870_v41 = vpop.f32.mrf.mxu0  ;;  %v3267_v0 = vpop.f32.mrf.mxu1 }
 0x1b9   :  { %v2388_v45 = vpop.f32.mrf.mxu0  ;;  %v3269_v56 = vpop.f32.mrf.mxu1 }
 0x1bb   :  { %v884_v49 = vpop.f32.mrf.mxu0  ;;  %v3271_v58 = vpop.f32.mrf.mxu1 }
 0x1bd   :  { %v3273_v35 = vpop.f32.mrf.mxu0  ;;  %v3275_v60 = vpop.f32.mrf.mxu1 }
 0x1bf   :  { %v3277_v59 = vpop.f32.mrf.mxu0  ;;  %v3279_v40 = vpop.f32.mrf.mxu1 }
 0x1c0   :  { %3627 = vst [vmem:[#allocation19_spill] sm:$0xff] %v3279_v40  ;;  %v864_v40 = vadd.f32 %v2382_v31, %v685_v12  ;;  %v488_v12 = vadd.f32 %v3227_v15, %v3288_v62 }
 0x1c1   :  { %v3281_v52 = vpop.f32.mrf.mxu0  ;;  %v3283_v38 = vpop.f32.mrf.mxu1 }
 0x1c2   :  { %3628 = vst [vmem:[#allocation20_spill] sm:$0xff] %v3283_v38  ;;  %v721_v15 = vadd.f32 %v3217_v44, %v488_v12 }
 0x1c3   :  { %v3290_v63 = vpop.f32.mrf.mxu0  ;;  %v3292_v3 = vpop.f32.mrf.mxu1 }
 0x1c4   :  { %3629 = vst [vmem:[#allocation21_spill] sm:$0xff] %v3292_v3  ;;  %v448_v3 = vadd.f32 %v2305_v8, %v3288_v62 }
 0x1c5   :  { %v3294_v4 = vpop.f32.mrf.mxu0  ;;  %v3296_v5 = vpop.f32.mrf.mxu1 }
 0x1c6   :  { %3630 = vst [vmem:[#allocation22_spill] sm:$0xff] %v3296_v5  ;;  %v679_v5 = vadd.f32 %v3207_v17, %v418_v9  ;;  %v697_v43 = vadd.f32 %v3209_v27, %v448_v3  ;;  %v691_v17 = vadd.f32 %v3211_v34, %v438_v33  ;;  %v1051_v9 = vadd.f32 %v2422_v30, %v864_v40 }
 0x1c7   :  { %v3299_v24 = vpop.f32.mrf.mxu0  ;;  %v3301_v25 = vpop.f32.mrf.mxu1  ;;  %v508_v33 = vadd.f32 %v3235_v51, %v3288_v62  ;;  %v906_v51 = vadd.f32 %v3273_v35, %v721_v15 }
 0x1c8   :  { %3631 = vst [vmem:[#allocation23_spill] sm:$0xff] %v3301_v25  ;;  %v878_v19 = vadd.f32 %v2385_v32, %v697_v43 }
 0x1c9   :  { %v3304_v26 = vpop.f32.mrf.mxu0  ;;  %v3306_v10 = vpop.f32.mrf.mxu1 }
 0x1ca   :  { %3632 = vst [vmem:[#allocation24_spill] sm:$0xff] %v3304_v26  ;;  %3633 = vst [vmem:[#allocation25_spill] sm:$0xff] %v3306_v10  ;;  %v468_v10 = vadd.f32 %v3219_v46, %v3288_v62  ;;  %v857_v26 = vadd.f32 %v856_v29, %v679_v5  ;;  %v871_v46 = vadd.f32 %v870_v41, %v691_v17 }
 0x1cb   :  { %v3310_v38 = vpop.f32.mrf.mxu0  ;;  %v2502_v47 = vpop.f32.mrf.mxu1  ;;  %v703_v5 = vadd.f32 %v3215_v13, %v458_v11  ;;  %v1067_v34 = vadd.f32 %v2425_v37, %v878_v19  ;;  %v733_v11 = vadd.f32 %v3225_v14, %v508_v33  ;;  %v548_v14 = vadd.f32 %v3251_v16, %v3288_v62 }
 0x1cc   :  { %3634 = vst [vmem:[#allocation26_spill] sm:$0xff] %v3310_v38  ;;  %v709_v27 = vadd.f32 %v3213_v50, %v468_v10  ;;  %v1043_v3 = vadd.f32 %v1042_v57, %v857_v26  ;;  %v1059_v41 = vadd.f32 %v3261_v20, %v871_v46  ;;  %v715_v10 = vadd.f32 %v3221_v48, %v478_v61 }
 0x1cd   :  { %v3314_v39 = vpop.f32.mrf.mxu0  ;;  %v1426_v25 = vpop.f32.mrf.mxu1  ;;  %v885_v26 = vadd.f32 %v884_v49, %v703_v5  ;;  %v1538_v49 = vld [vmem:[#allocation4] sm:$0xff]  ;;  %v757_v5 = vadd.f32 %v3241_v6, %v548_v14 }
 0x1ce   :  { %3635 = vst [vmem:[#allocation27_spill] sm:$0xff] %v3314_v39  ;;  %v892_v30 = vadd.f32 %v2388_v45, %v709_v27  ;;  %v899_v17 = vadd.f32 %v3277_v59, %v715_v10 }
 0x1cf   :  { %v3321_v8 = vpop.f32.mrf.mxu0  ;;  %v2505_v23 = vpop.f32.mrf.mxu1 }
 0x1d0   :  { %3636 = vst [vmem:[#allocation28_spill] sm:$0xff] %v3321_v8  ;;  %v1083_v44 = vadd.f32 %v3263_v1, %v892_v30  ;;  %v1091_v46 = vadd.f32 %v3269_v56, %v899_v17 }
 0x1d1   :  { %v2462_v31 = vpop.f32.mrf.mxu0  ;;  %v1438_v39 = vpop.f32.mrf.mxu1 }
 0x1d2   :  { %v1264_v29 = vadd.f32 %v2462_v31, %v1051_v9  ;;  %v1099_v31 = vadd.f32 %v3267_v0, %v906_v51 }
 0x1d3   :  { %v1257_v8 = vpop.f32.mrf.mxu0  ;;  %v2508_v38 = vpop.f32.mrf.mxu1 }
 0x1d4   :  { %v1433_v32 = vadd.f32 %v2502_v47, %v1264_v29  ;;  %v1258_v40 = vadd.f32 %v1257_v8, %v1043_v3  ;;  %v498_v47 = vadd.f32 %v3288_v62, %v3239_v55  ;;  %v1075_v55 = vadd.f32 %v3265_v2, %v885_v26  ;;  %v3639_v26 = vld [vmem:[#allocation24_spill] sm:$0xff] }
 0x1d5   :  { %v2465_v50 = vpop.f32.mrf.mxu0  ;;  %v1450_v57 = vpop.f32.mrf.mxu1  ;;  %v920_v2 = vadd.f32 %v3281_v52, %v733_v11  ;;  %v3645_v14 = vld [vmem:[#allocation27_spill] sm:$0xff] }
 0x1d6   :  { %1522 = vst.msk [vmem:[#allocation6 + $0x8] sm:$0xff] %vm49_vm1, %v1433_v32  ;;  %v1427_v13 = vadd.f32 %v1426_v25, %v1258_v40  ;;  %v1276_v22 = vadd.f32 %v2465_v50, %v1067_v34  ;;  %v528_v25 = vadd.f32 %v3243_v7, %v3288_v62  ;;  %v727_v9 = vadd.f32 %v3229_v21, %v498_v47 }
 0x1d7   :  { %v1269_v37 = vpop.f32.mrf.mxu0  ;;  %v2511_v45 = vpop.f32.mrf.mxu1  ;;  %v1539_v7 = vmul.f32 0.65, %v1538_v49  ;;  %v538_v21 = vadd.f32 %v3288_v62, %v3255_v54  ;;  %v1115_v54 = vadd.f32 %v3271_v58, %v920_v2  ;;  %v568_v40 = vadd.f32 %v3257_v36, %v3288_v62  ;;  %v3642_v49 = vld [vmem:[#allocation26_spill] sm:$0xff] }
 0x1d8   :  { %1521 = vst.msk [vmem:[#allocation6] sm:$0xff] %vm49_vm1, %v1427_v13  ;;  %v1270_v43 = vadd.f32 %v1269_v37, %v1059_v41  ;;  %v1445_v20 = vadd.f32 %v2505_v23, %v1276_v22  ;;  %v518_v23 = vadd.f32 %v3288_v62, %v3247_v42  ;;  %v913_v42 = vadd.f32 %v3290_v63, %v727_v9  ;;  %v3638_v41 = vld [vmem:[#allocation19_spill] sm:$0xff]  ;;  %v3644_v9 = vld [vmem:[#allocation21_spill] sm:$0xff] }
 0x1d9   :  { %v2468_v48 = vpop.f32.mrf.mxu0  ;;  %v1462_v8 = vpop.f32.mrf.mxu1  ;;  %v751_v32 = vadd.f32 %v3245_v18, %v538_v21 }
 0x1da   :  { %1524 = vst.msk [vmem:[#allocation6 + $0x18] sm:$0xff] %vm49_vm1, %v1445_v20  ;;  %v1288_v1 = vadd.f32 %v2468_v48, %v1083_v44  ;;  %v1439_v35 = vadd.f32 %v1438_v39, %v1270_v43  ;;  %v745_v39 = vadd.f32 %v3233_v28, %v528_v25  ;;  %v739_v52 = vadd.f32 %v3237_v53, %v518_v23  ;;  %v3640_v44 = vld [vmem:[#allocation16_spill] sm:$0xff] }
 0x1db   :  { %v1281_v19 = vpop.f32.mrf.mxu0  ;;  %v2514_v12 = vpop.f32.mrf.mxu1  ;;  %v1107_v53 = vadd.f32 %v3275_v60, %v913_v42  ;;  %v948_v60 = vadd.f32 %v3639_v26, %v757_v5  ;;  %v769_v51 = vadd.f32 %v3640_v44, %v568_v40  ;;  %v941_v11 = vadd.f32 %v3642_v49, %v751_v32 }
 0x1dc   :  { %1523 = vst.msk [vmem:[#allocation6 + $0x10] sm:$0xff] %vm49_vm1, %v1439_v35  ;;  %v1282_v59 = vadd.f32 %v1281_v19, %v1075_v55  ;;  %v1457_v27 = vadd.f32 %v2508_v38, %v1288_v1  ;;  %v934_v38 = vadd.f32 %v3294_v4, %v745_v39  ;;  %v927_v6 = vadd.f32 %v3299_v24, %v739_v52  ;;  %v3643_v55 = vld [vmem:[#allocation17_spill] sm:$0xff] }
 0x1dd   :  { %v2471_v3 = vpop.f32.mrf.mxu0  ;;  %v1474_v16 = vpop.f32.mrf.mxu1  ;;  %v2667_v24 = vmov 0.0   ;;  %v1147_v23 = vadd.f32 %v3644_v9, %v948_v60  ;;  %v962_v19 = vadd.f32 %v3645_v14, %v769_v51 }
 0x1de   :  { %1526 = vst.msk [vmem:[#allocation6 + $0x28] sm:$0xff] %vm49_vm1, %v1457_v27  ;;  %v1300_v0 = vadd.f32 %v2471_v3, %v1099_v31  ;;  %v1451_v29 = vadd.f32 %v1450_v57, %v1282_v59  ;;  %v3637_v57 = vld [vmem:[#allocation18_spill] sm:$0xff]  ;;  %v1131_v36 = vadd.f32 %v3638_v41, %v934_v38  ;;  %v3647_v27 = vld [vmem:[#allocation28_spill] sm:$0xff]  ;;  %v3649_v38 = vld [vmem:[#allocation25_spill] sm:$0xff] }
 0x1df   :  { %v1293_v28 = vpop.f32.mrf.mxu0  ;;  %v1537_v61 = vld [vmem:[#allocation6] sm:$0xff]  ;;  %v2517_v34 = vpop.f32.mrf.mxu1  ;;  %v558_v18 = vadd.f32 %v3288_v62, %v3637_v57  ;;  %v3641_v62 = vld [vmem:[#allocation20_spill] sm:$0xff] }
 0x1e0   :  { %1525 = vst.msk [vmem:[#allocation6 + $0x20] sm:$0xff] %vm49_vm1, %v1451_v29  ;;  %v1294_v63 = vadd.f32 %v1293_v28, %v1091_v46  ;;  %v1469_v30 = vadd.f32 %v2511_v45, %v1300_v0  ;;  %v1540_v56 = vadd.f32 %v1539_v7, %v1537_v61  ;;  %v1123_v43 = vadd.f32 %v3641_v62, %v927_v6  ;;  %v3646_v59 = vld [vmem:[#allocation22_spill] sm:$0xff]  ;;  %v3648_v46 = vld [vmem:[#allocation23_spill] sm:$0xff] }
 0x1e1   :  { %v2474_v4 = vpop.f32.mrf.mxu0  ;;  %v1486_v15 = vpop.f32.mrf.mxu1  ;;  %v763_v17 = vadd.f32 %v3643_v55, %v558_v18  ;;  %v1163_v0 = vadd.f32 %v3648_v46, %v962_v19  ;;  %v1570_v6 = vld [vmem:[#allocation6 + $0x8] sm:$0xff] }
 0x1e2   :  { %1528 = vst.msk [vmem:[#allocation6 + $0x38] sm:$0xff] %vm49_vm1, %v1469_v30  ;;  %v1312_v33 = vadd.f32 %v2474_v4, %v1115_v54  ;;  %v1463_v58 = vadd.f32 %v1462_v8, %v1294_v63  ;;  %1558 = vrot.lane.b32.xlu0 %v1540_v56, %s2666_s4  ;;  %v2109_v50 = vmul.f32 -1.442695, %v1540_v56  ;;  %vm1541_vm2 = vcmp.gt.f32.partialorder %v1540_v56, 0.0 }
 0x1e3   :  { %v1305_v13 = vpop.f32.mrf.mxu0  ;;  %v3378_v22 = vsel %vm1541_vm2, 1.0, %v2667_v24  ;;  %v2520_v10 = vpop.f32.mrf.mxu1  ;;  %v955_v39 = vadd.f32 %v3647_v27, %v763_v17 }
 0x1e4   :  { %1527 = vst.msk [vmem:[#allocation6 + $0x30] sm:$0xff] %vm49_vm1, %v1463_v58  ;;  %2533 = vpow2.f32 %v2109_v50  ;;  %v1306_v47 = vadd.f32 %v1305_v13, %v1107_v53  ;;  %v1481_v37 = vadd.f32 %v2514_v12, %v1312_v33  ;;  %v1550_v45 = vmul.f32 100.0, %v3378_v22  ;;  %v1603_v13 = vld [vmem:[#allocation6 + $0x10] sm:$0xff] }
 0x1e5   :  { %v2477_v20 = vpop.f32.mrf.mxu0  ;;  %v1498_v35 = vpop.f32.mrf.mxu1  ;;  %v1155_v28 = vadd.f32 %v3649_v38, %v955_v39 }
 0x1e6   :  { %1530 = vst.msk [vmem:[#allocation6 + $0x48] sm:$0xff] %vm49_vm1, %v1481_v37  ;;  %v1324_v25 = vadd.f32 %v2477_v20, %v1131_v36  ;;  %v1475_v48 = vadd.f32 %v1474_v16, %v1306_v47  ;;  %v1551_v8 = vsub.f32 %v1539_v7, %v1550_v45  ;;  %v1139_v7 = vadd.f32 %v3646_v59, %v941_v11  ;;  %v1636_v11 = vld [vmem:[#allocation6 + $0x18] sm:$0xff] }
 0x1e7   :  { %v1317_v1 = vpop.f32.mrf.mxu0  ;;  %v2523_v16 = vpop.f32.mrf.mxu1  ;;  %v1669_v19 = vld [vmem:[#allocation6 + $0x20] sm:$0xff] }
 0x1e8   :  { %1529 = vst.msk [vmem:[#allocation6 + $0x40] sm:$0xff] %vm49_vm1, %v1475_v48  ;;  %v1318_v12 = vadd.f32 %v1317_v1, %v1123_v43  ;;  %v1493_v31 = vadd.f32 %v2517_v34, %v1324_v25  ;;  %1562 = vrot.lane.b32.xlu1 %v1551_v8, %s2668_s26  ;;  %1552 = vst.msk [vmem:[#allocation4] sm:$0xff] %vm49_vm1, %v1551_v8 }
 0x1e9   :  { %v2480_v2 = vpop.f32.mrf.mxu0  ;;  %v1510_v63 = vpop.f32.mrf.mxu1 }
 0x1ea   :  { %1532 = vst.msk [vmem:[#allocation6 + $0x58] sm:$0xff] %vm49_vm1, %v1493_v31  ;;  %v1336_v21 = vadd.f32 %v2480_v2, %v1147_v23  ;;  %v1487_v42 = vadd.f32 %v1486_v15, %v1318_v12 }
 0x1eb   :  { %v1329_v3 = vpop.f32.mrf.mxu0 }
 0x1ec   :  { %1531 = vst.msk [vmem:[#allocation6 + $0x50] sm:$0xff] %vm49_vm1, %v1487_v42  ;;  %v1330_v29 = vadd.f32 %v1329_v3, %v1139_v7  ;;  %v1505_v52 = vadd.f32 %v2520_v10, %v1336_v21 }
 0x1ed   :  { %v2483_v5 = vpop.f32.mrf.mxu0 }
 0x1ee   :  { %1534 = vst.msk [vmem:[#allocation6 + $0x68] sm:$0xff] %vm49_vm1, %v1505_v52  ;;  %v1348_v61 = vadd.f32 %v2483_v5, %v1163_v0  ;;  %v1499_v34 = vadd.f32 %v1498_v35, %v1330_v29 }
 0x1ef   :  { %v1341_v54 = vpop.f32.mrf.mxu0  ;;  %v1571_v30 = vld [vmem:[#allocation4] sm:$0xff] }
 0x1f0   :  { %1533 = vst.msk [vmem:[#allocation6 + $0x60] sm:$0xff] %vm49_vm1, %v1499_v34  ;;  %v1342_v56 = vadd.f32 %v1341_v54, %v1155_v28  ;;  %v1517_v32 = vadd.f32 %v2523_v16, %v1348_v61  ;;  %v1572_v40 = vmul.f32 0.65, %v1571_v30  ;;  %v1702_v16 = vld [vmem:[#allocation6 + $0x28] sm:$0xff] }
 0x1f1   :  { %v2534_v53 = vpop.eup %2533 }
 0x1f2   :  { %v1547_v4 = vadd.f32 1.0, %v2534_v53  ;;  %1536 = vst.msk [vmem:[#allocation6 + $0x78] sm:$0xff] %vm49_vm1, %v1517_v32  ;;  %v1511_v15 = vadd.f32 %v1510_v63, %v1342_v56  ;;  %v1573_v33 = vadd.f32 %v1572_v40, %v1570_v6  ;;  %v1735_v63 = vld [vmem:[#allocation6 + $0x30] sm:$0xff] }
 0x1f4   :  { %2535 = vrcp.f32 %v1547_v4  ;;  %1535 = vst.msk [vmem:[#allocation6 + $0x70] sm:$0xff] %vm49_vm1, %v1511_v15  ;;  %1591 = vrot.lane.b32.xlu0 %v1573_v33, %s2666_s4  ;;  %v2111_v58 = vmul.f32 -1.442695, %v1573_v33  ;;  %vm1574_vm3 = vcmp.gt.f32.partialorder %v1573_v33, 0.0 }
 0x1f5   :  { %v3404_v50 = vsel %vm1574_vm3, 1.0, %v2667_v24 }
 0x1f6   :  { %2537 = vpow2.f32 %v2111_v58  ;;  %v1583_v57 = vmul.f32 100.0, %v3404_v50 }
 0x1f8   :  { %v1584_v18 = vsub.f32 %v1572_v40, %v1583_v57  ;;  %v1768_v57 = vld [vmem:[#allocation6 + $0x38] sm:$0xff] }
 0x1fa   :  { %1595 = vrot.lane.b32.xlu1 %v1584_v18, %s2668_s26  ;;  %1585 = vst.msk [vmem:[#allocation4] sm:$0xff] %vm49_vm1, %v1584_v18 }
 0x201   :  { %v2536_v41 = vpop.eup %2535  ;;  %v1604_v36 = vld [vmem:[#allocation4] sm:$0xff] }
 0x202   :  { %1554 = vrot.lane.b32.xlu0 %v2536_v41, %s2669_s27  ;;  %v1605_v26 = vmul.f32 0.65, %v1604_v36 }
 0x203   :  { %v2538_v60 = vpop.eup %2537 }
 0x204   :  { %v1580_v10 = vadd.f32 1.0, %v2538_v60  ;;  %v1606_v47 = vadd.f32 %v1605_v26, %v1603_v13 }
 0x206   :  { %2539 = vrcp.f32 %v1580_v10  ;;  %1624 = vrot.lane.b32.xlu1 %v1606_v47, %s2666_s4  ;;  %v2113_v37 = vmul.f32 -1.442695, %v1606_v47  ;;  %vm1607_vm4 = vcmp.gt.f32.partialorder %v1606_v47, 0.0 }
 0x207   :  { %v3412_v45 = vsel %vm1607_vm4, 1.0, %v2667_v24 }
 0x208   :  { %2541 = vpow2.f32 %v2113_v37  ;;  %v1616_v44 = vmul.f32 100.0, %v3412_v45 }
 0x20a   :  { %v1617_v51 = vsub.f32 %v1605_v26, %v1616_v44 }
 0x20c   :  { %1628 = vrot.lane.b32.xlu0 %v1617_v51, %s2668_s26  ;;  %1618 = vst.msk [vmem:[#allocation4] sm:$0xff] %vm49_vm1, %v1617_v51 }
 0x213   :  { %v2540_v62 = vpop.eup %2539  ;;  %v1637_v43 = vld [vmem:[#allocation4] sm:$0xff] }
 0x214   :  { %1587 = vrot.lane.b32.xlu1 %v2540_v62, %s2669_s27  ;;  %v1638_v20 = vmul.f32 0.65, %v1637_v43  ;;  %v1801_v62 = vld [vmem:[#allocation6 + $0x40] sm:$0xff] }
 0x215   :  { %v2542_v49 = vpop.eup %2541 }
 0x216   :  { %v1613_v25 = vadd.f32 1.0, %v2542_v49  ;;  %v1639_v48 = vadd.f32 %v1638_v20, %v1636_v11 }
 0x218   :  { %2543 = vrcp.f32 %v1613_v25  ;;  %1657 = vrot.lane.b32.xlu0 %v1639_v48, %s2666_s4  ;;  %v2115_v8 = vmul.f32 -1.442695, %v1639_v48  ;;  %vm1640_vm5 = vcmp.gt.f32.partialorder %v1639_v48, 0.0 }
 0x219   :  { %v3420_v55 = vsel %vm1640_vm5, 1.0, %v2667_v24 }
 0x21a   :  { %2545 = vpow2.f32 %v2115_v8  ;;  %v1649_v17 = vmul.f32 100.0, %v3420_v55 }
 0x21c   :  { %v1650_v1 = vsub.f32 %v1638_v20, %v1649_v17 }
 0x21e   :  { %1661 = vrot.lane.b32.xlu1 %v1650_v1, %s2668_s26  ;;  %1651 = vst.msk [vmem:[#allocation4] sm:$0xff] %vm49_vm1, %v1650_v1 }
 0x225   :  { %v2544_v35 = vpop.eup %2543  ;;  %v1670_v9 = vld [vmem:[#allocation4] sm:$0xff] }
 0x226   :  { %1620 = vrot.lane.b32.xlu0 %v2544_v35, %s2669_s27  ;;  %v1671_v23 = vmul.f32 0.65, %v1670_v9 }
 0x227   :  { %v2546_v14 = vpop.eup %2545 }
 0x228   :  { %v1646_v12 = vadd.f32 1.0, %v2546_v14  ;;  %v1672_v31 = vadd.f32 %v1671_v23, %v1669_v19 }
 0x22a   :  { %2547 = vrcp.f32 %v1646_v12  ;;  %1690 = vrot.lane.b32.xlu1 %v1672_v31, %s2666_s4  ;;  %v2117_v2 = vmul.f32 -1.442695, %v1672_v31  ;;  %vm1673_vm6 = vcmp.gt.f32.partialorder %v1672_v31, 0.0 }
 0x22b   :  { %v3428_v59 = vsel %vm1673_vm6, 1.0, %v2667_v24 }
 0x22c   :  { %2549 = vpow2.f32 %v2117_v2  ;;  %v1682_v7 = vmul.f32 100.0, %v3428_v59 }
 0x22e   :  { %v1683_v27 = vsub.f32 %v1671_v23, %v1682_v7  ;;  %v1834_v7 = vld [vmem:[#allocation6 + $0x48] sm:$0xff] }
 0x230   :  { %1694 = vrot.lane.b32.xlu0 %v1683_v27, %s2668_s26  ;;  %1684 = vst.msk [vmem:[#allocation4] sm:$0xff] %vm49_vm1, %v1683_v27 }
 0x237   :  { %v2548_v39 = vpop.eup %2547  ;;  %v1703_v21 = vld [vmem:[#allocation4] sm:$0xff] }
 0x238   :  { %1653 = vrot.lane.b32.xlu1 %v2548_v39, %s2669_s27  ;;  %v1704_v42 = vmul.f32 0.65, %v1703_v21 }
 0x239   :  { %v2550_v3 = vpop.eup %2549 }
 0x23a   :  { %v1679_v46 = vadd.f32 1.0, %v2550_v3  ;;  %v1705_v0 = vadd.f32 %v1704_v42, %v1702_v16 }
 0x23c   :  { %2551 = vrcp.f32 %v1679_v46  ;;  %1723 = vrot.lane.b32.xlu0 %v1705_v0, %s2666_s4  ;;  %v2119_v29 = vmul.f32 -1.442695, %v1705_v0  ;;  %vm1706_vm7 = vcmp.gt.f32.partialorder %v1705_v0, 0.0 }
 0x23d   :  { %v3436_v52 = vsel %vm1706_vm7, 1.0, %v2667_v24 }
 0x23e   :  { %2553 = vpow2.f32 %v2119_v29  ;;  %v1715_v5 = vmul.f32 100.0, %v3436_v52 }
 0x240   :  { %v1716_v38 = vsub.f32 %v1704_v42, %v1715_v5 }
 0x242   :  { %1727 = vrot.lane.b32.xlu1 %v1716_v38, %s2668_s26  ;;  %1717 = vst.msk [vmem:[#allocation4] sm:$0xff] %vm49_vm1, %v1716_v38 }
 0x249   :  { %v2552_v28 = vpop.eup %2551  ;;  %v1736_v61 = vld [vmem:[#allocation4] sm:$0xff] }
 0x24a   :  { %1686 = vrot.lane.b32.xlu0 %v2552_v28, %s2669_s27  ;;  %v1737_v34 = vmul.f32 0.65, %v1736_v61 }
 0x24b   :  { %v2554_v54 = vpop.eup %2553 }
 0x24c   :  { %v1712_v30 = vadd.f32 1.0, %v2554_v54  ;;  %v1738_v56 = vadd.f32 %v1737_v34, %v1735_v63  ;;  %v1867_v63 = vld [vmem:[#allocation6 + $0x50] sm:$0xff] }
 0x24e   :  { %2555 = vrcp.f32 %v1712_v30  ;;  %1756 = vrot.lane.b32.xlu1 %v1738_v56, %s2666_s4  ;;  %v2121_v32 = vmul.f32 -1.442695, %v1738_v56  ;;  %vm1739_vm8 = vcmp.gt.f32.partialorder %v1738_v56, 0.0 }
 0x24f   :  { %v3444_v40 = vsel %vm1739_vm8, 1.0, %v2667_v24 }
 0x250   :  { %2557 = vpow2.f32 %v2121_v32  ;;  %v1748_v53 = vmul.f32 100.0, %v3444_v40 }
 0x252   :  { %v1749_v6 = vsub.f32 %v1737_v34, %v1748_v53 }
 0x254   :  { %1760 = vrot.lane.b32.xlu0 %v1749_v6, %s2668_s26  ;;  %1750 = vst.msk [vmem:[#allocation4] sm:$0xff] %vm49_vm1, %v1749_v6  ;;  %v1559_v10 = vpop.permute.xlu0 %1558 }
 0x25a   :  { %v1563_v1 = vpop.permute.xlu1 %1562 }
 0x25b   :  { %v2556_v4 = vpop.eup %2555  ;;  %v1769_v15 = vld [vmem:[#allocation4] sm:$0xff] }
 0x25c   :  { %1719 = vrot.lane.b32.xlu1 %v2556_v4, %s2669_s27  ;;  %v1770_v33 = vmul.f32 0.65, %v1769_v15 }
 0x25d   :  { %v2558_v58 = vpop.eup %2557 }
 0x25e   :  { %v1745_v18 = vadd.f32 1.0, %v2558_v58  ;;  %v1771_v41 = vadd.f32 %v1770_v33, %v1768_v57 }
 0x260   :  { %2559 = vrcp.f32 %v1745_v18  ;;  %1789 = vrot.lane.b32.xlu0 %v1771_v41, %s2666_s4  ;;  %v2123_v36 = vmul.f32 -1.442695, %v1771_v41  ;;  %vm1772_vm9 = vcmp.gt.f32.partialorder %v1771_v41, 0.0 }
 0x261   :  { %v3452_v26 = vsel %vm1772_vm9, 1.0, %v2667_v24 }
 0x262   :  { %2561 = vpow2.f32 %v2123_v36  ;;  %v1781_v60 = vmul.f32 100.0, %v3452_v26 }
 0x264   :  { %v1782_v13 = vsub.f32 %v1770_v33, %v1781_v60 }
 0x266   :  { %1793 = vrot.lane.b32.xlu1 %v1782_v13, %s2668_s26  ;;  %1783 = vst.msk [vmem:[#allocation4] sm:$0xff] %vm49_vm1, %v1782_v13  ;;  %v1592_v20 = vpop.permute.xlu0 %1591 }
 0x26c   :  { %v1596_v14 = vpop.permute.xlu1 %1595 }
 0x26d   :  { %v2560_v47 = vpop.eup %2559  ;;  %v1802_v37 = vld [vmem:[#allocation4] sm:$0xff] }
 0x26e   :  { %1752 = vrot.lane.b32.xlu1 %v2560_v47, %s2669_s27  ;;  %v1803_v44 = vmul.f32 0.65, %v1802_v37 }
 0x26f   :  { %v2562_v51 = vpop.eup %2561 }
 0x270   :  { %v1778_v43 = vadd.f32 1.0, %v2562_v51  ;;  %v1804_v49 = vadd.f32 %v1803_v44, %v1801_v62 }
 0x272   :  { %2563 = vrcp.f32 %v1778_v43  ;;  %1822 = vrot.lane.b32.xlu1 %v1804_v49, %s2666_s4  ;;  %v2125_v11 = vmul.f32 -1.442695, %v1804_v49  ;;  %vm1805_vm10 = vcmp.gt.f32.partialorder %v1804_v49, 0.0 }
 0x273   :  { %v3460_v25 = vsel %vm1805_vm10, 1.0, %v2667_v24 }
 0x274   :  { %2565 = vpow2.f32 %v2125_v11  ;;  %v1555_v48 = vpop.permute.xlu0 %1554  ;;  %v1814_v8 = vmul.f32 100.0, %v3460_v25 }
 0x275   :  { %v1565_v17 = vsel %vm49_vm1, %v3378_v22, %v1555_v48 }
 0x276   :  { %v1566_v35 = vsel %vm43_vm0, %v1565_v17, %v1559_v10  ;;  %v1815_v9 = vsub.f32 %v1803_v44, %v1814_v8  ;;  %v1900_v10 = vld [vmem:[#allocation6 + $0x58] sm:$0xff] }
 0x277   :  { %v1568_v23 = vsel %vm1567_vm11, %v1566_v35, %v1563_v1 }
 0x278   :  { %1569 = vst [vmem:[#allocation10] sm:$0xff] %v1568_v23  ;;  %1826 = vrot.lane.b32.xlu0 %v1815_v9, %s2668_s26  ;;  %1816 = vst.msk [vmem:[#allocation4] sm:$0xff] %vm49_vm1, %v1815_v9  ;;  %v1625_v27 = vpop.permute.xlu1 %1624  ;;  %v1933_v23 = vld [vmem:[#allocation6 + $0x60] sm:$0xff] }
 0x27e   :  { %v1629_v38 = vpop.permute.xlu0 %1628 }
 0x27f   :  { %v2564_v19 = vpop.eup %2563  ;;  %v1835_v12 = vld [vmem:[#allocation4] sm:$0xff] }
 0x280   :  { %1785 = vrot.lane.b32.xlu0 %v2564_v19, %s2669_s27  ;;  %v1836_v31 = vmul.f32 0.65, %v1835_v12 }
 0x281   :  { %v2566_v2 = vpop.eup %2565 }
 0x282   :  { %v1811_v22 = vadd.f32 1.0, %v2566_v2  ;;  %v1837_v39 = vadd.f32 %v1836_v31, %v1834_v7 }
 0x284   :  { %2567 = vrcp.f32 %v1811_v22  ;;  %1855 = vrot.lane.b32.xlu0 %v1837_v39, %s2666_s4  ;;  %v2127_v21 = vmul.f32 -1.442695, %v1837_v39  ;;  %vm1838_vm12 = vcmp.gt.f32.partialorder %v1837_v39, 0.0 }
 0x285   :  { %v3472_v42 = vsel %vm1838_vm12, 1.0, %v2667_v24 }
 0x286   :  { %2569 = vpow2.f32 %v2127_v21  ;;  %v1588_v3 = vpop.permute.xlu1 %1587  ;;  %v1847_v16 = vmul.f32 100.0, %v3472_v42 }
 0x287   :  { %v1598_v46 = vsel %vm49_vm1, %v3404_v50, %v1588_v3 }
 0x288   :  { %v1599_v0 = vsel %vm43_vm0, %v1598_v46, %v1592_v20  ;;  %v1848_v29 = vsub.f32 %v1836_v31, %v1847_v16 }
 0x289   :  { %v1600_v5 = vsel %vm1567_vm11, %v1599_v0, %v1596_v14 }
 0x28a   :  { %1602 = vst [vmem:[#allocation10 + $0x8] sm:$0xff] %v1600_v5  ;;  %1859 = vrot.lane.b32.xlu1 %v1848_v29, %s2668_s26  ;;  %1849 = vst.msk [vmem:[#allocation4] sm:$0xff] %vm49_vm1, %v1848_v29  ;;  %v1658_v50 = vpop.permute.xlu0 %1657  ;;  %v1966_v5 = vld [vmem:[#allocation6 + $0x68] sm:$0xff] }
 0x290   :  { %v1662_v18 = vpop.permute.xlu1 %1661 }
 0x291   :  { %v2568_v28 = vpop.eup %2567  ;;  %v1868_v61 = vld [vmem:[#allocation4] sm:$0xff] }
 0x292   :  { %1818 = vrot.lane.b32.xlu1 %v2568_v28, %s2669_s27  ;;  %v1869_v34 = vmul.f32 0.65, %v1868_v61 }
 0x293   :  { %v2570_v54 = vpop.eup %2569 }
 0x294   :  { %v1844_v30 = vadd.f32 1.0, %v2570_v54  ;;  %v1870_v56 = vadd.f32 %v1869_v34, %v1867_v63 }
 0x296   :  { %2571 = vrcp.f32 %v1844_v30  ;;  %1888 = vrot.lane.b32.xlu1 %v1870_v56, %s2666_s4  ;;  %v2129_v32 = vmul.f32 -1.442695, %v1870_v56  ;;  %vm1871_vm13 = vcmp.gt.f32.partialorder %v1870_v56, 0.0 }
 0x297   :  { %v3484_v53 = vsel %vm1871_vm13, 1.0, %v2667_v24 }
 0x298   :  { %2573 = vpow2.f32 %v2129_v32  ;;  %v1621_v6 = vpop.permute.xlu0 %1620  ;;  %v1880_v4 = vmul.f32 100.0, %v3484_v53 }
 0x299   :  { %v1631_v15 = vsel %vm49_vm1, %v3412_v45, %v1621_v6 }
 0x29a   :  { %v1632_v33 = vsel %vm43_vm0, %v1631_v15, %v1625_v27  ;;  %v1881_v58 = vsub.f32 %v1869_v34, %v1880_v4 }
 0x29b   :  { %v1633_v57 = vsel %vm1567_vm11, %v1632_v33, %v1629_v38 }
 0x29c   :  { %1635 = vst [vmem:[#allocation10 + $0x10] sm:$0xff] %v1633_v57  ;;  %1892 = vrot.lane.b32.xlu0 %v1881_v58, %s2668_s26  ;;  %1882 = vst.msk [vmem:[#allocation4] sm:$0xff] %vm49_vm1, %v1881_v58  ;;  %v1691_v45 = vpop.permute.xlu1 %1690  ;;  %v1999_v58 = vld [vmem:[#allocation6 + $0x70] sm:$0xff] }
 0x2a2   :  { %v1695_v8 = vpop.permute.xlu0 %1694 }
 0x2a3   :  { %v2572_v41 = vpop.eup %2571  ;;  %v1901_v36 = vld [vmem:[#allocation4] sm:$0xff] }
 0x2a4   :  { %1851 = vrot.lane.b32.xlu0 %v2572_v41, %s2669_s27  ;;  %v1902_v60 = vmul.f32 0.65, %v1901_v36 }
 0x2a5   :  { %v2574_v13 = vpop.eup %2573 }
 0x2a6   :  { %v1877_v47 = vadd.f32 1.0, %v2574_v13  ;;  %v1903_v37 = vadd.f32 %v1902_v60, %v1900_v10 }
 0x2a8   :  { %2575 = vrcp.f32 %v1877_v47  ;;  %1921 = vrot.lane.b32.xlu0 %v1903_v37, %s2666_s4  ;;  %v2131_v44 = vmul.f32 -1.442695, %v1903_v37  ;;  %vm1904_vm14 = vcmp.gt.f32.partialorder %v1903_v37, 0.0 }
 0x2a9   :  { %v3496_v51 = vsel %vm1904_vm14, 1.0, %v2667_v24 }
 0x2aa   :  { %2577 = vpow2.f32 %v2131_v44  ;;  %v1654_v62 = vpop.permute.xlu1 %1653  ;;  %v1913_v43 = vmul.f32 100.0, %v3496_v51 }
 0x2ab   :  { %v1664_v20 = vsel %vm49_vm1, %v3420_v55, %v1654_v62 }
 0x2ac   :  { %v1665_v49 = vsel %vm43_vm0, %v1664_v20, %v1658_v50  ;;  %v1914_v11 = vsub.f32 %v1902_v60, %v1913_v43 }
 0x2ad   :  { %v1666_v48 = vsel %vm1567_vm11, %v1665_v49, %v1662_v18 }
 0x2ae   :  { %1668 = vst [vmem:[#allocation10 + $0x18] sm:$0xff] %v1666_v48  ;;  %1925 = vrot.lane.b32.xlu1 %v1914_v11, %s2668_s26  ;;  %1915 = vst.msk [vmem:[#allocation4] sm:$0xff] %vm49_vm1, %v1914_v11  ;;  %v1724_v55 = vpop.permute.xlu0 %1723  ;;  %v2032_v48 = vld [vmem:[#allocation6 + $0x78] sm:$0xff] }
 0x2b4   :  { %v1728_v3 = vpop.permute.xlu1 %1727 }
 0x2b5   :  { %v2576_v17 = vpop.eup %2575  ;;  %v1934_v1 = vld [vmem:[#allocation4] sm:$0xff] }
 0x2b6   :  { %1884 = vrot.lane.b32.xlu1 %v2576_v17, %s2669_s27  ;;  %v1935_v35 = vmul.f32 0.65, %v1934_v1 }
 0x2b7   :  { %v2578_v9 = vpop.eup %2577 }
 0x2b8   :  { %v1910_v14 = vadd.f32 1.0, %v2578_v9  ;;  %v1936_v19 = vadd.f32 %v1935_v35, %v1933_v23 }
 0x2ba   :  { %2579 = vrcp.f32 %v1910_v14  ;;  %1954 = vrot.lane.b32.xlu1 %v1936_v19, %s2666_s4  ;;  %v2133_v12 = vmul.f32 -1.442695, %v1936_v19  ;;  %vm1937_vm15 = vcmp.gt.f32.partialorder %v1936_v19, 0.0 }
 0x2bb   :  { %v3508_v31 = vsel %vm1937_vm15, 1.0, %v2667_v24 }
 0x2bc   :  { %2581 = vpow2.f32 %v2133_v12  ;;  %v1687_v2 = vpop.permute.xlu0 %1686  ;;  %v1946_v7 = vmul.f32 100.0, %v3508_v31 }
 0x2bd   :  { %v1697_v22 = vsel %vm49_vm1, %v3428_v59, %v1687_v2 }
 0x2be   :  { %v1698_v27 = vsel %vm43_vm0, %v1697_v22, %v1691_v45  ;;  %v1947_v39 = vsub.f32 %v1935_v35, %v1946_v7 }
 0x2bf   :  { %v1699_v21 = vsel %vm1567_vm11, %v1698_v27, %v1695_v8 }
 0x2c0   :  { %1701 = vst [vmem:[#allocation10 + $0x20] sm:$0xff] %v1699_v21  ;;  %1958 = vrot.lane.b32.xlu0 %v1947_v39, %s2668_s26  ;;  %1948 = vst.msk [vmem:[#allocation4] sm:$0xff] %vm49_vm1, %v1947_v39  ;;  %v1757_v59 = vpop.permute.xlu1 %1756 }
 0x2c6   :  { %v1761_v47 = vpop.permute.xlu0 %1760 }
 0x2c7   :  { %v2580_v16 = vpop.eup %2579  ;;  %v1967_v46 = vld [vmem:[#allocation4] sm:$0xff] }
 0x2c8   :  { %1917 = vrot.lane.b32.xlu0 %v2580_v16, %s2669_s27  ;;  %v1968_v0 = vmul.f32 0.65, %v1967_v46  ;;  %v2068_v16 = vld [vmem:[#allocation2] sm:$0xff]  ;;  %v2070_v46 = vld [vmem:[#allocation3] sm:$0xff] }
 0x2c9   :  { %v2582_v29 = vpop.eup %2581  ;;  %2069 = vst.msk [vmem:[#allocation11] sm:$0xff] %vm43_vm0, %v2068_v16  ;;  %2072 = vst.msk [vmem:[#allocation11 + $0x8] sm:$0xff] %vm43_vm0, %v2070_v46 }
 0x2ca   :  { %v1943_v38 = vadd.f32 1.0, %v2582_v29  ;;  %v1969_v28 = vadd.f32 %v1968_v0, %v1966_v5 }
 0x2cc   :  { %2583 = vrcp.f32 %v1943_v38  ;;  %1987 = vrot.lane.b32.xlu0 %v1969_v28, %s2666_s4  ;;  %v2135_v61 = vmul.f32 -1.442695, %v1969_v28  ;;  %vm1970_vm2 = vcmp.gt.f32.partialorder %v1969_v28, 0.0 }
 0x2cd   :  { %v3520_v34 = vsel %vm1970_vm2, 1.0, %v2667_v24 }
 0x2ce   :  { %2585 = vpow2.f32 %v2135_v61  ;;  %v1720_v54 = vpop.permute.xlu1 %1719  ;;  %v1979_v63 = vmul.f32 100.0, %v3520_v34 }
 0x2cf   :  { %v1730_v30 = vsel %vm49_vm1, %v3436_v52, %v1720_v54 }
 0x2d0   :  { %v1731_v50 = vsel %vm43_vm0, %v1730_v30, %v1724_v55  ;;  %v1980_v56 = vsub.f32 %v1968_v0, %v1979_v63 }
 0x2d1   :  { %v1732_v32 = vsel %vm1567_vm11, %v1731_v50, %v1728_v3 }
 0x2d2   :  { %1734 = vst [vmem:[#allocation10 + $0x28] sm:$0xff] %v1732_v32  ;;  %1991 = vrot.lane.b32.xlu1 %v1980_v56, %s2668_s26  ;;  %1981 = vst.msk [vmem:[#allocation4] sm:$0xff] %vm49_vm1, %v1980_v56  ;;  %v1790_v62 = vpop.permute.xlu0 %1789 }
 0x2d8   :  { %v1794_v18 = vpop.permute.xlu1 %1793 }
 0x2d9   :  { %v2584_v6 = vpop.eup %2583  ;;  %v2000_v4 = vld [vmem:[#allocation4] sm:$0xff] }
 0x2da   :  { %1950 = vrot.lane.b32.xlu1 %v2584_v6, %s2669_s27  ;;  %v2001_v15 = vmul.f32 0.65, %v2000_v4 }
 0x2db   :  { %v2586_v33 = vpop.eup %2585 }
 0x2dc   :  { %v1976_v57 = vadd.f32 1.0, %v2586_v33  ;;  %v2002_v52 = vadd.f32 %v2001_v15, %v1999_v58 }
 0x2de   :  { %2587 = vrcp.f32 %v1976_v57  ;;  %2020 = vrot.lane.b32.xlu1 %v2002_v52, %s2666_s4  ;;  %vm2003_vm3 = vcmp.gt.f32.partialorder %v2002_v52, 0.0  ;;  %v2137_v41 = vmul.f32 -1.442695, %v2002_v52 }
 0x2df   :  { %v3532_v36 = vsel %vm2003_vm3, 1.0, %v2667_v24 }
 0x2e0   :  { %2589 = vpow2.f32 %v2137_v41  ;;  %v2012_v60 = vmul.f32 100.0, %v3532_v36  ;;  %v1753_v13 = vpop.permute.xlu1 %1752 }
 0x2e1   :  { %v1763_v10 = vsel %vm49_vm1, %v3444_v40, %v1753_v13 }
 0x2e2   :  { %v2013_v45 = vsub.f32 %v2001_v15, %v2012_v60  ;;  %v1764_v37 = vsel %vm43_vm0, %v1763_v10, %v1757_v59 }
 0x2e3   :  { %v1765_v44 = vsel %vm1567_vm11, %v1764_v37, %v1761_v47 }
 0x2e4   :  { %2014 = vst.msk [vmem:[#allocation4] sm:$0xff] %vm49_vm1, %v2013_v45  ;;  %1767 = vst [vmem:[#allocation10 + $0x30] sm:$0xff] %v1765_v44  ;;  %v1823_v2 = vpop.permute.xlu1 %1822 }
 0x2ea   :  { %v1827_v17 = vpop.permute.xlu0 %1826 }
 0x2eb   :  { %v2588_v43 = vpop.eup %2587  ;;  %v2033_v20 = vld [vmem:[#allocation4] sm:$0xff] }
 0x2ec   :  { %1983 = vrot.lane.b32.xlu0 %v2588_v43, %s2669_s27  ;;  %v2034_v49 = vmul.f32 0.65, %v2033_v20 }
 0x2ed   :  { %v2590_v11 = vpop.eup %2589 }
 0x2ee   :  { %v2009_v8 = vadd.f32 1.0, %v2590_v11  ;;  %v2035_v40 = vadd.f32 %v2034_v49, %v2032_v48 }
 0x2f0   :  { %2591 = vrcp.f32 %v2009_v8  ;;  %2053 = vrot.lane.b32.xlu0 %v2035_v40, %s2666_s4  ;;  %v2139_v1 = vmul.f32 -1.442695, %v2035_v40  ;;  %vm2036_vm4 = vcmp.gt.f32.partialorder %v2035_v40, 0.0 }
 0x2f1   :  { %v3543_v35 = vsel %vm2036_vm4, 1.0, %v2667_v24 }
 0x2f2   :  { %2593 = vpow2.f32 %v2139_v1  ;;  %v1786_v9 = vpop.permute.xlu0 %1785  ;;  %v2045_v23 = vmul.f32 100.0, %v3543_v35 }
 0x2f3   :  { %v1796_v14 = vsel %vm49_vm1, %v3452_v26, %v1786_v9 }
 0x2f4   :  { %v1797_v55 = vsel %vm43_vm0, %v1796_v14, %v1790_v62  ;;  %v2046_v19 = vsub.f32 %v2034_v49, %v2045_v23 }
 0x2f5   :  { %v1798_v12 = vsel %vm1567_vm11, %v1797_v55, %v1794_v18 }
 0x2f6   :  { %1800 = vst [vmem:[#allocation10 + $0x38] sm:$0xff] %v1798_v12  ;;  %2047 = vst.msk [vmem:[#allocation4] sm:$0xff] %vm49_vm1, %v2046_v19 }
 0x2fc   :  { %v1860_v27 = vpop.permute.xlu1 %1859 }
 0x2fd   :  { %v2592_v7 = vpop.eup %2591 }
 0x2fe   :  { %2016 = vrot.lane.b32.xlu1 %v2592_v7, %s2669_s27 }
 0x2ff   :  { %v2594_v24 = vpop.eup %2593 }
 0x300   :  { %v2042_v22 = vadd.f32 1.0, %v2594_v24 }
 0x302   :  { %2595 = vrcp.f32 %v2042_v22  ;;  %2057 = vrot.lane.b32.xlu1 %v2046_v19, %s2668_s26 }
 0x304   :  { %v1819_v39 = vpop.permute.xlu1 %1818 }
 0x305   :  { %v1829_v26 = vsel %vm49_vm1, %v3460_v25, %v1819_v39 }
 0x306   :  { %v1830_v21 = vsel %vm43_vm0, %v1829_v26, %v1823_v2 }
 0x307   :  { %v1831_v3 = vsel %vm1567_vm11, %v1830_v21, %v1827_v17 }
 0x308   :  { %1833 = vst [vmem:[#allocation10 + $0x40] sm:$0xff] %v1831_v3 }
 0x309   :  { %2628 = shalt.err (!%p2625_p9)
}
 0x30a   :  { %2096 = dma.vmem_to_hbm [thread:$0]  %s2091_s29, 256, %s3607_s6, [#allocation12], %s2664_s24, %s2664_s24, %s2665_s25   ;;  %v1856_v25 = vpop.permute.xlu0 %1855  ;;  %v1889_v61 = vpop.permute.xlu1 %1888 }
 0x30b   :  { %s2671_s6 = smov [#allocation10]  }
 0x30c   :  { %s2078_s9 = sshll.u32 %s2671_s6, 4  ;;  %s2079_s9 = int_to_ptr.vmem [resolvable:$true] %s2078_s9 }
 0x30d   :  { %s2637_s0 = scalar_lea.vmem %s2079_s9, 2048  ;;  %p2642_p11 = scmp.lt.s32.totalorder %s2079_s9, %s2079_s9 }
 0x30e   :  { %v1893_v29 = vpop.permute.xlu0 %1892  ;;  %p2638_p10 = scmp.ne.s32.totalorder %s2079_s9, %s2637_s0  ;;  %p2643_p12 = scmp.lt.s32.totalorder %s2637_s0, %s2637_s0 }
 0x30f   :  { %v2596_v0 = vpop.eup %2595 }
 0x310   :  { %2049 = vrot.lane.b32.xlu0 %v2596_v0, %s2669_s27  ;;  %p2644_p13 = por %p2643_p12, %p2642_p11 }
 0x312   :  { %p2645_p0 = pnand %p2644_p13, %p2638_p10 }
 0x314   :  { %2024 = vrot.lane.b32.xlu0 %v2013_v45, %s2668_s26 }
 0x316   :  { %v1852_v5 = vpop.permute.xlu0 %1851 }
 0x317   :  { %v1862_v38 = vsel %vm49_vm1, %v3472_v42, %v1852_v5 }
 0x318   :  { %v1863_v59 = vsel %vm43_vm0, %v1862_v38, %v1856_v25 }
 0x319   :  { %v1864_v28 = vsel %vm1567_vm11, %v1863_v59, %v1860_v27 }
 0x31a   :  { %1866 = vst [vmem:[#allocation10 + $0x48] sm:$0xff] %v1864_v28  ;;  %v1922_v32 = vpop.permute.xlu0 %1921 }
 0x320   :  { %v1926_v54 = vpop.permute.xlu1 %1925 }
 0x328   :  { %v1885_v63 = vpop.permute.xlu1 %1884 }
 0x329   :  { %v1895_v30 = vsel %vm49_vm1, %v3484_v53, %v1885_v63 }
 0x32a   :  { %v1896_v50 = vsel %vm43_vm0, %v1895_v30, %v1889_v61 }
 0x32b   :  { %v1897_v56 = vsel %vm1567_vm11, %v1896_v50, %v1893_v29 }
 0x32c   :  { %1899 = vst [vmem:[#allocation10 + $0x50] sm:$0xff] %v1897_v56  ;;  %v1955_v58 = vpop.permute.xlu1 %1954 }
 0x332   :  { %v1959_v6 = vpop.permute.xlu0 %1958 }
 0x33a   :  { %v1918_v4 = vpop.permute.xlu0 %1917 }
 0x33b   :  { %v1928_v42 = vsel %vm49_vm1, %v3496_v51, %v1918_v4 }
 0x33c   :  { %v1929_v15 = vsel %vm43_vm0, %v1928_v42, %v1922_v32 }
 0x33d   :  { %v1930_v33 = vsel %vm1567_vm11, %v1929_v15, %v1926_v54 }
 0x33e   :  { %1932 = vst [vmem:[#allocation10 + $0x58] sm:$0xff] %v1930_v33  ;;  %v1988_v60 = vpop.permute.xlu0 %1987 }
 0x344   :  { %v1992_v57 = vpop.permute.xlu1 %1991 }
 0x34c   :  { %v1951_v18 = vpop.permute.xlu1 %1950 }
 0x34d   :  { %v1961_v53 = vsel %vm49_vm1, %v3508_v31, %v1951_v18 }
 0x34e   :  { %v1962_v52 = vsel %vm43_vm0, %v1961_v53, %v1955_v58 }
 0x34f   :  { %v1963_v41 = vsel %vm1567_vm11, %v1962_v52, %v1959_v6 }
 0x350   :  { %1965 = vst [vmem:[#allocation10 + $0x60] sm:$0xff] %v1963_v41  ;;  %v2021_v45 = vpop.permute.xlu1 %2020 }
 0x35e   :  { %v1984_v13 = vpop.permute.xlu0 %1983 }
 0x35f   :  { %v1994_v51 = vsel %vm49_vm1, %v3520_v34, %v1984_v13 }
 0x360   :  { %v1995_v10 = vsel %vm43_vm0, %v1994_v51, %v1988_v60 }
 0x361   :  { %v1996_v47 = vsel %vm1567_vm11, %v1995_v10, %v1992_v57 }
 0x362   :  { %1998 = vst [vmem:[#allocation10 + $0x68] sm:$0xff] %v1996_v47  ;;  %v2054_v37 = vpop.permute.xlu0 %2053 }
 0x370   :  { %v2017_v44 = vpop.permute.xlu1 %2016 }
 0x371   :  { %v2027_v31 = vsel %vm49_vm1, %v3532_v36, %v2017_v44 }
 0x372   :  { %v2028_v11 = vsel %vm43_vm0, %v2027_v31, %v2021_v45 }
 0x374   :  { %v2058_v20 = vpop.permute.xlu1 %2057 }
 0x382   :  { %v2050_v62 = vpop.permute.xlu0 %2049 }
 0x383   :  { %v2060_v43 = vsel %vm49_vm1, %v3543_v35, %v2050_v62 }
 0x384   :  { %v2061_v34 = vsel %vm43_vm0, %v2060_v43, %v2054_v37 }
 0x385   :  { %v2062_v49 = vsel %vm1567_vm11, %v2061_v34, %v2058_v20 }
 0x386   :  { %2064 = vst [vmem:[#allocation10 + $0x78] sm:$0xff] %v2062_v49  ;;  %v2025_v48 = vpop.permute.xlu0 %2024 }
 0x387   :  { %v2029_v8 = vsel %vm1567_vm11, %v2028_v11, %v2025_v48 }
 0x388   :  { %2031 = vst [vmem:[#allocation10 + $0x70] sm:$0xff] %v2029_v8 }
 0x389   :  { %2648 = shalt.err (!%p2645_p0)
}
 0x38a   :  { %2084 = dma.vmem_to_hbm [thread:$0]  %s2079_s9, 2048, %s3606_s5, [#allocation9], %s2664_s24, %s2664_s24, %s2665_s25  }
 0x38b   :  { %2659 = dma.done.wait [#allocation9], 2048  }
 0x38c   :  { %2660 = vsyncadd [#allocation9], 4294965248 }
 0x38d   :  { %2661 = dma.done.wait [#allocation12], 256  }
 0x38e   :  { %2662 = vsyncadd [#allocation12], 4294967040 }
 0x38f   :  { %2103 = vsyncpa [#allocation8], 1 }
 0x390   :  { %2104 = vsyncpa [#allocation9], 1 }
 0x391   :  { %2105 = vsyncpa [#allocation12], 1 }

</bundles_post_ra>
